<compile_context>
chip_gen: v7x
topology: tpu7x:2x2x1
jax: 0.10.0
libtpu: 0.0.40
codegen_flags: <defaults>
</compile_context>

<pallas_src>
import functools

import jax
import jax.numpy as jnp
from jax.experimental import pallas as pl
from jax.experimental.pallas import tpu as pltpu


def _xception_down_kernel(x_ref, w1_ref, w2_ref, ws_ref, pool_ref, o_ref,
                          *, H, W, Cin, Cout, eps):
    HW = H * W
    # (Cin, H*W) channel-major input block -> (H*W, Cin) spatial-major (channels on lanes).
    x = x_ref[...].astype(jnp.float32).T

    def reflect_pad(a):
        # ReflectionPad2d(1): (H, W, C) -> (H+2, W+2, C)
        a = jnp.concatenate([a[1:2], a, a[H - 2:H - 1]], axis=0)
        a = jnp.concatenate([a[:, 1:2], a, a[:, W - 2:W - 1]], axis=1)
        return a

    def im2col(a2d, C):
        # (H*W, C) -> (H*W, 9*C): the 9 reflection-padded 3x3 taps, tap-major on the lane dim.
        ap = reflect_pad(a2d.reshape(H, W, C))
        taps = [ap[kh:kh + H, kw:kw + W, :].reshape(HW, C)
                for kh in range(3) for kw in range(3)]
        return jnp.concatenate(taps, axis=1)

    def instance_norm(y):
        # InstanceNorm2d(affine=False): per-channel stats over spatial axis, biased variance.
        mean = jnp.mean(y, axis=0, keepdims=True)
        cen = y - mean
        var = jnp.mean(cen * cen, axis=0, keepdims=True)
        return cen * jax.lax.rsqrt(var + eps)

    # rep branch: pad -> sepconv(Cin->Cout) -> IN -> ReLU -> pad -> sepconv(Cout->Cout) -> IN
    y = jnp.dot(im2col(x, Cin), w1_ref[...], preferred_element_type=jnp.float32)   # (HW, Cout)
    y = jnp.maximum(instance_norm(y), 0.0)
    y = jnp.dot(im2col(y, Cout), w2_ref[...], preferred_element_type=jnp.float32)  # (HW, Cout)
    y = instance_norm(y)

    # skip branch: 1x1 conv -> IN
    skip = instance_norm(jnp.dot(x, ws_ref[...], preferred_element_type=jnp.float32))

    z = y + skip                                                                    # (HW, Cout)

    # AvgPool2d(kernel=4, stride=2, padding=1), count_include_pad=True, as one matmul.
    pooled = jnp.dot(pool_ref[...], z, preferred_element_type=jnp.float32)          # (HoWo, Cout)

    # Store channel-major so the wrapper's reshape back to NCHW is metadata-only.
    o_ref[...] = pooled.T.astype(o_ref.dtype)


def xception_block_down(x, dw1, pw1, dw2, pw2, skip_w, *, eps=1e-5):
    """XceptionBlockDown forward. x: (N, Cin, H, W) f32 -> (N, Cout, H//2, W//2)."""
    N, Cin, H, W = x.shape
    Cout = pw1.shape[0]
    assert H % 2 == 0 and W % 2 == 0 and H >= 4 and W >= 4
    # TODO(synk): the identity-skip variant (in_channels == out_channels) is not wired up;
    # with Cin != Cout the module always uses the 1x1-conv + InstanceNorm skip path.
    assert Cin != Cout
    # TODO(synk): dropout > 0 (training) would need a pltpu.prng_random_bits mask; the module
    # default dropout=0.0 adds no layer, so nothing is emitted here.
    Ho, Wo = H // 2, W // 2
    HW, HoWo = H * W, Ho * Wo

    # Fuse depthwise-3x3 + pointwise-1x1 into one effective 3x3 conv, flattened to
    # (9*C, Cout) in the tap-major / channel-minor order the kernel's im2col uses.
    def fuse_sep(dw, pw):
        w_eff = pw[:, :, 0, 0][:, :, None, None] * dw[:, 0][None]      # (Cout, C, 3, 3)
        return jnp.transpose(w_eff, (2, 3, 1, 0)).reshape(9 * w_eff.shape[1], w_eff.shape[0])

    w1 = fuse_sep(dw1, pw1)                      # (9*Cin, Cout)
    w2 = fuse_sep(dw2, pw2)                      # (9*Cout, Cout)
    ws = skip_w[:, :, 0, 0].T                    # (Cin, Cout)

    # Constant AvgPool2d(4, 2, 1) matrix (count_include_pad=True => always divide by 16).
    hi, ohi = jnp.arange(H), jnp.arange(Ho)
    wi, owi = jnp.arange(W), jnp.arange(Wo)
    rmask = (hi[None, :] >= 2 * ohi[:, None] - 1) & (hi[None, :] <= 2 * ohi[:, None] + 2)
    cmask = (wi[None, :] >= 2 * owi[:, None] - 1) & (wi[None, :] <= 2 * owi[:, None] + 2)
    pool_mat = (rmask[:, None, :, None] & cmask[None, :, None, :]).astype(jnp.float32)
    pool_mat = pool_mat.reshape(HoWo, HW) * (1.0 / 16.0)

    x_flat = x.reshape(N, Cin, HW)               # metadata-only reshape, no HBM pass

    kern = functools.partial(_xception_down_kernel,
                             H=H, W=W, Cin=Cin, Cout=Cout, eps=float(eps))

    flops = 2 * N * HW * Cout * (9 * Cin + 9 * Cout + Cin + HoWo)
    bytes_accessed = 4 * (N * Cin * HW + 9 * Cin * Cout + 9 * Cout * Cout
                          + Cin * Cout + HoWo * HW + N * Cout * HoWo)

    out = pl.pallas_call(
        kern,
        out_shape=jax.ShapeDtypeStruct((N, Cout, HoWo), x.dtype),
        grid=(N,),
        in_specs=[
            pl.BlockSpec((None, Cin, HW), lambda n: (n, 0, 0)),
            pl.BlockSpec((9 * Cin, Cout), lambda n: (0, 0)),
            pl.BlockSpec((9 * Cout, Cout), lambda n: (0, 0)),
            pl.BlockSpec((Cin, Cout), lambda n: (0, 0)),
            pl.BlockSpec((HoWo, HW), lambda n: (0, 0)),
        ],
        out_specs=pl.BlockSpec((None, Cout, HoWo), lambda n: (n, 0, 0)),
        compiler_params=pltpu.CompilerParams(dimension_semantics=("parallel",)),
        cost_estimate=pl.CostEstimate(flops=flops, transcendentals=3 * N * Cout,
                                      bytes_accessed=bytes_accessed),
    )(x_flat, w1, w2, ws, pool_mat)

    return out.reshape(N, Cout, Ho, Wo)          # metadata-only reshape back to NCHW


def _reference(x, dw1, pw1, dw2, pw2, skip_w, *, eps=1e-5):
    """Pure-JAX reference mirroring the PyTorch XceptionBlockDown forward."""
    prec = jax.lax.Precision.HIGHEST
    dn = ("NCHW", "OIHW", "NCHW")

    def inorm(y):
        m = y.mean(axis=(2, 3), keepdims=True)
        v = ((y - m) ** 2).mean(axis=(2, 3), keepdims=True)
        return (y - m) * jax.lax.rsqrt(v + eps)

    def sep_conv(a, dw, pw):
        a = jnp.pad(a, ((0, 0), (0, 0), (1, 1), (1, 1)), mode="reflect")
        a = jax.lax.conv_general_dilated(a, dw, (1, 1), "VALID",
                                         feature_group_count=a.shape[1],
                                         dimension_numbers=dn, precision=prec)
        return jax.lax.conv_general_dilated(a, pw, (1, 1), "VALID",
                                            dimension_numbers=dn, precision=prec)

    y = jnp.maximum(inorm(sep_conv(x, dw1, pw1)), 0.0)
    y = inorm(sep_conv(y, dw2, pw2))
    skip = inorm(jax.lax.conv_general_dilated(x, skip_w, (1, 1), "VALID",
                                              dimension_numbers=dn, precision=prec))
    z = y + skip
    s = jax.lax.reduce_window(z, 0.0, jax.lax.add, (1, 1, 4, 4), (1, 1, 2, 2),
                              ((0, 0), (0, 0), (1, 1), (1, 1)))
    return s / 16.0   # AvgPool2d(4, 2, 1), count_include_pad=True


if __name__ == "__main__":
    N, Cin, Cout, H, W = 2, 4, 8, 16, 16

    key = jax.random.PRNGKey(0)
    ks = jax.random.split(key, 6)

    def uni(k, shape, fan_in):
        b = float(fan_in) ** -0.5
        return jax.random.uniform(k, shape, jnp.float32, -b, b)

    dw1 = uni(ks[0], (Cin, 1, 3, 3), 9)           # depthwise 3x3 (groups=Cin)
    pw1 = uni(ks[1], (Cout, Cin, 1, 1), Cin)      # pointwise 1x1
    dw2 = uni(ks[2], (Cout, 1, 3, 3), 9)
    pw2 = uni(ks[3], (Cout, Cout, 1, 1), Cout)
    skip_w = uni(ks[4], (Cout, Cin, 1, 1), Cin)   # skip 1x1 conv
    x = jax.random.normal(ks[5], (N, Cin, H, W), jnp.float32)

    out = jax.block_until_ready(xception_block_down(x, dw1, pw1, dw2, pw2, skip_w))
    assert out.shape == (N, Cout, H // 2, W // 2), out.shape

    ref = jax.block_until_ready(_reference(x, dw1, pw1, dw2, pw2, skip_w))
    err = float(jnp.max(jnp.abs(out - ref)))
    assert err < 2e-2, err

    print("KERNEL_OK")
</pallas_src>

<mosaic_0001>
module attributes {stable_mosaic.version = 11 : i64} {
  func.func @_xception_down_kernel(%arg0: i32, %arg1: memref<1x4x256xf32, #tpu.memory_space<vmem>>, %arg2: memref<36x8xf32, #tpu.memory_space<vmem>>, %arg3: memref<72x8xf32, #tpu.memory_space<vmem>>, %arg4: memref<4x8xf32, #tpu.memory_space<vmem>>, %arg5: memref<64x256xf32, #tpu.memory_space<vmem>>, %arg6: memref<1x8x64xf32, #tpu.memory_space<vmem>>) attributes {dimension_semantics = [#tpu.dimension_semantics<parallel>], iteration_bounds = array<i64: 2>, scalar_prefetch = 0 : i64, scratch_operands = 0 : i64, tpu.core_type = #tpu.core_type<tc>, window_params = [{transform_indices = @transform_0, window_bounds = array<i64: 1, 4, 256>}, {pipeline_mode = #tpu.pipeline_mode<synchronous>, transform_indices = @transform_1, window_bounds = array<i64: 36, 8>}, {pipeline_mode = #tpu.pipeline_mode<synchronous>, transform_indices = @transform_2, window_bounds = array<i64: 72, 8>}, {pipeline_mode = #tpu.pipeline_mode<synchronous>, transform_indices = @transform_3, window_bounds = array<i64: 4, 8>}, {pipeline_mode = #tpu.pipeline_mode<synchronous>, transform_indices = @transform_4, window_bounds = array<i64: 64, 256>}, {transform_indices = @transform_5, window_bounds = array<i64: 1, 8, 64>}]} {
    %c0 = arith.constant 0 : index
    %c0_0 = arith.constant 0 : index
    %c0_1 = arith.constant 0 : index
    %0 = vector.load %arg1[%c0, %c0_0, %c0_1] : memref<1x4x256xf32, #tpu.memory_space<vmem>>, vector<1x4x256xf32>
    %1 = vector.shape_cast %0 : vector<1x4x256xf32> to vector<4x256xf32>
    %2 = tpu.transpose %1, [1, 0] : vector<4x256xf32> -> vector<256x4xf32>
    %3 = vector.shape_cast %2 : vector<256x4xf32> to vector<16x16x4xf32>
    %4 = vector.extract_strided_slice %3 {offsets = [1, 0, 0], sizes = [1, 16, 4], strides = [1, 1, 1]} : vector<16x16x4xf32> to vector<1x16x4xf32>
    %5 = vector.extract_strided_slice %3 {offsets = [14, 0, 0], sizes = [1, 16, 4], strides = [1, 1, 1]} : vector<16x16x4xf32> to vector<1x16x4xf32>
    %6 = tpu.concatenate %4, %3, %5 in 0 : vector<1x16x4xf32>, vector<16x16x4xf32>, vector<1x16x4xf32> -> vector<18x16x4xf32>
    %7 = vector.extract_strided_slice %6 {offsets = [0, 1, 0], sizes = [18, 1, 4], strides = [1, 1, 1]} : vector<18x16x4xf32> to vector<18x1x4xf32>
    %8 = vector.extract_strided_slice %6 {offsets = [0, 14, 0], sizes = [18, 1, 4], strides = [1, 1, 1]} : vector<18x16x4xf32> to vector<18x1x4xf32>
    %9 = tpu.concatenate %7, %6, %8 in 1 : vector<18x1x4xf32>, vector<18x16x4xf32>, vector<18x1x4xf32> -> vector<18x18x4xf32>
    %10 = vector.extract_strided_slice %9 {offsets = [0, 0, 0], sizes = [16, 16, 4], strides = [1, 1, 1]} : vector<18x18x4xf32> to vector<16x16x4xf32>
    %11 = vector.shape_cast %10 : vector<16x16x4xf32> to vector<256x4xf32>
    %12 = vector.extract_strided_slice %9 {offsets = [0, 1, 0], sizes = [16, 16, 4], strides = [1, 1, 1]} : vector<18x18x4xf32> to vector<16x16x4xf32>
    %13 = vector.shape_cast %12 : vector<16x16x4xf32> to vector<256x4xf32>
    %14 = vector.extract_strided_slice %9 {offsets = [0, 2, 0], sizes = [16, 16, 4], strides = [1, 1, 1]} : vector<18x18x4xf32> to vector<16x16x4xf32>
    %15 = vector.shape_cast %14 : vector<16x16x4xf32> to vector<256x4xf32>
    %16 = vector.extract_strided_slice %9 {offsets = [1, 0, 0], sizes = [16, 16, 4], strides = [1, 1, 1]} : vector<18x18x4xf32> to vector<16x16x4xf32>
    %17 = vector.shape_cast %16 : vector<16x16x4xf32> to vector<256x4xf32>
    %18 = vector.extract_strided_slice %9 {offsets = [1, 1, 0], sizes = [16, 16, 4], strides = [1, 1, 1]} : vector<18x18x4xf32> to vector<16x16x4xf32>
    %19 = vector.shape_cast %18 : vector<16x16x4xf32> to vector<256x4xf32>
    %20 = vector.extract_strided_slice %9 {offsets = [1, 2, 0], sizes = [16, 16, 4], strides = [1, 1, 1]} : vector<18x18x4xf32> to vector<16x16x4xf32>
    %21 = vector.shape_cast %20 : vector<16x16x4xf32> to vector<256x4xf32>
    %22 = vector.extract_strided_slice %9 {offsets = [2, 0, 0], sizes = [16, 16, 4], strides = [1, 1, 1]} : vector<18x18x4xf32> to vector<16x16x4xf32>
    %23 = vector.shape_cast %22 : vector<16x16x4xf32> to vector<256x4xf32>
    %24 = vector.extract_strided_slice %9 {offsets = [2, 1, 0], sizes = [16, 16, 4], strides = [1, 1, 1]} : vector<18x18x4xf32> to vector<16x16x4xf32>
    %25 = vector.shape_cast %24 : vector<16x16x4xf32> to vector<256x4xf32>
    %26 = vector.extract_strided_slice %9 {offsets = [2, 2, 0], sizes = [16, 16, 4], strides = [1, 1, 1]} : vector<18x18x4xf32> to vector<16x16x4xf32>
    %27 = vector.shape_cast %26 : vector<16x16x4xf32> to vector<256x4xf32>
    %28 = tpu.concatenate %11, %13, %15, %17, %19, %21, %23, %25, %27 in 1 : vector<256x4xf32>, vector<256x4xf32>, vector<256x4xf32>, vector<256x4xf32>, vector<256x4xf32>, vector<256x4xf32>, vector<256x4xf32>, vector<256x4xf32>, vector<256x4xf32> -> vector<256x36xf32>
    %c0_2 = arith.constant 0 : index
    %c0_3 = arith.constant 0 : index
    %29 = vector.load %arg2[%c0_2, %c0_3] : memref<36x8xf32, #tpu.memory_space<vmem>>, vector<36x8xf32>
    %cst = arith.constant dense<0.000000e+00> : vector<256x8xf32>
    %30 = tpu.matmul %28, %29, %cst {dimension_numbers = #tpu.dot_dimension_numbers<[1], [0], [0], [1], [0, 0, 1, 1], [], []>} : vector<256x36xf32>, vector<36x8xf32>, vector<256x8xf32> -> vector<256x8xf32>
    %cst_4 = arith.constant dense<0.000000e+00> : vector<8xf32>
    %31 = vector.multi_reduction <add>, %30, %cst_4 [0] : vector<256x8xf32> to vector<8xf32>
    %32 = vector.shape_cast %31 : vector<8xf32> to vector<1x8xf32>
    %cst_5 = arith.constant 2.560000e+02 : f32
    %33 = vector.broadcast %cst_5 : f32 to vector<1x8xf32>
    %34 = arith.divf %32, %33 : vector<1x8xf32>
    %35 = vector.broadcast %34 : vector<1x8xf32> to vector<256x8xf32>
    %36 = arith.subf %30, %35 : vector<256x8xf32>
    %37 = arith.mulf %36, %36 : vector<256x8xf32>
    %cst_6 = arith.constant dense<0.000000e+00> : vector<8xf32>
    %38 = vector.multi_reduction <add>, %37, %cst_6 [0] : vector<256x8xf32> to vector<8xf32>
    %39 = vector.shape_cast %38 : vector<8xf32> to vector<1x8xf32>
    %cst_7 = arith.constant 2.560000e+02 : f32
    %40 = vector.broadcast %cst_7 : f32 to vector<1x8xf32>
    %41 = arith.divf %39, %40 : vector<1x8xf32>
    %cst_8 = arith.constant 9.99999974E-6 : f32
    %42 = vector.broadcast %cst_8 : f32 to vector<1x8xf32>
    %43 = arith.addf %41, %42 : vector<1x8xf32>
    %44 = math.rsqrt %43 : vector<1x8xf32>
    %45 = vector.broadcast %44 : vector<1x8xf32> to vector<256x8xf32>
    %46 = arith.mulf %36, %45 : vector<256x8xf32>
    %cst_9 = arith.constant 0.000000e+00 : f32
    %47 = vector.broadcast %cst_9 : f32 to vector<256x8xf32>
    %48 = arith.maximumf %46, %47 : vector<256x8xf32>
    %49 = vector.shape_cast %48 : vector<256x8xf32> to vector<16x16x8xf32>
    %50 = vector.extract_strided_slice %49 {offsets = [1, 0, 0], sizes = [1, 16, 8], strides = [1, 1, 1]} : vector<16x16x8xf32> to vector<1x16x8xf32>
    %51 = vector.extract_strided_slice %49 {offsets = [14, 0, 0], sizes = [1, 16, 8], strides = [1, 1, 1]} : vector<16x16x8xf32> to vector<1x16x8xf32>
    %52 = tpu.concatenate %50, %49, %51 in 0 : vector<1x16x8xf32>, vector<16x16x8xf32>, vector<1x16x8xf32> -> vector<18x16x8xf32>
    %53 = vector.extract_strided_slice %52 {offsets = [0, 1, 0], sizes = [18, 1, 8], strides = [1, 1, 1]} : vector<18x16x8xf32> to vector<18x1x8xf32>
    %54 = vector.extract_strided_slice %52 {offsets = [0, 14, 0], sizes = [18, 1, 8], strides = [1, 1, 1]} : vector<18x16x8xf32> to vector<18x1x8xf32>
    %55 = tpu.concatenate %53, %52, %54 in 1 : vector<18x1x8xf32>, vector<18x16x8xf32>, vector<18x1x8xf32> -> vector<18x18x8xf32>
    %56 = vector.extract_strided_slice %55 {offsets = [0, 0, 0], sizes = [16, 16, 8], strides = [1, 1, 1]} : vector<18x18x8xf32> to vector<16x16x8xf32>
    %57 = vector.shape_cast %56 : vector<16x16x8xf32> to vector<256x8xf32>
    %58 = vector.extract_strided_slice %55 {offsets = [0, 1, 0], sizes = [16, 16, 8], strides = [1, 1, 1]} : vector<18x18x8xf32> to vector<16x16x8xf32>
    %59 = vector.shape_cast %58 : vector<16x16x8xf32> to vector<256x8xf32>
    %60 = vector.extract_strided_slice %55 {offsets = [0, 2, 0], sizes = [16, 16, 8], strides = [1, 1, 1]} : vector<18x18x8xf32> to vector<16x16x8xf32>
    %61 = vector.shape_cast %60 : vector<16x16x8xf32> to vector<256x8xf32>
    %62 = vector.extract_strided_slice %55 {offsets = [1, 0, 0], sizes = [16, 16, 8], strides = [1, 1, 1]} : vector<18x18x8xf32> to vector<16x16x8xf32>
    %63 = vector.shape_cast %62 : vector<16x16x8xf32> to vector<256x8xf32>
    %64 = vector.extract_strided_slice %55 {offsets = [1, 1, 0], sizes = [16, 16, 8], strides = [1, 1, 1]} : vector<18x18x8xf32> to vector<16x16x8xf32>
    %65 = vector.shape_cast %64 : vector<16x16x8xf32> to vector<256x8xf32>
    %66 = vector.extract_strided_slice %55 {offsets = [1, 2, 0], sizes = [16, 16, 8], strides = [1, 1, 1]} : vector<18x18x8xf32> to vector<16x16x8xf32>
    %67 = vector.shape_cast %66 : vector<16x16x8xf32> to vector<256x8xf32>
    %68 = vector.extract_strided_slice %55 {offsets = [2, 0, 0], sizes = [16, 16, 8], strides = [1, 1, 1]} : vector<18x18x8xf32> to vector<16x16x8xf32>
    %69 = vector.shape_cast %68 : vector<16x16x8xf32> to vector<256x8xf32>
    %70 = vector.extract_strided_slice %55 {offsets = [2, 1, 0], sizes = [16, 16, 8], strides = [1, 1, 1]} : vector<18x18x8xf32> to vector<16x16x8xf32>
    %71 = vector.shape_cast %70 : vector<16x16x8xf32> to vector<256x8xf32>
    %72 = vector.extract_strided_slice %55 {offsets = [2, 2, 0], sizes = [16, 16, 8], strides = [1, 1, 1]} : vector<18x18x8xf32> to vector<16x16x8xf32>
    %73 = vector.shape_cast %72 : vector<16x16x8xf32> to vector<256x8xf32>
    %74 = tpu.concatenate %57, %59, %61, %63, %65, %67, %69, %71, %73 in 1 : vector<256x8xf32>, vector<256x8xf32>, vector<256x8xf32>, vector<256x8xf32>, vector<256x8xf32>, vector<256x8xf32>, vector<256x8xf32>, vector<256x8xf32>, vector<256x8xf32> -> vector<256x72xf32>
    %c0_10 = arith.constant 0 : index
    %c0_11 = arith.constant 0 : index
    %75 = vector.load %arg3[%c0_10, %c0_11] : memref<72x8xf32, #tpu.memory_space<vmem>>, vector<72x8xf32>
    %cst_12 = arith.constant dense<0.000000e+00> : vector<256x8xf32>
    %76 = tpu.matmul %74, %75, %cst_12 {dimension_numbers = #tpu.dot_dimension_numbers<[1], [0], [0], [1], [0, 0, 1, 1], [], []>} : vector<256x72xf32>, vector<72x8xf32>, vector<256x8xf32> -> vector<256x8xf32>
    %cst_13 = arith.constant dense<0.000000e+00> : vector<8xf32>
    %77 = vector.multi_reduction <add>, %76, %cst_13 [0] : vector<256x8xf32> to vector<8xf32>
    %78 = vector.shape_cast %77 : vector<8xf32> to vector<1x8xf32>
    %cst_14 = arith.constant 2.560000e+02 : f32
    %79 = vector.broadcast %cst_14 : f32 to vector<1x8xf32>
    %80 = arith.divf %78, %79 : vector<1x8xf32>
    %81 = vector.broadcast %80 : vector<1x8xf32> to vector<256x8xf32>
    %82 = arith.subf %76, %81 : vector<256x8xf32>
    %83 = arith.mulf %82, %82 : vector<256x8xf32>
    %cst_15 = arith.constant dense<0.000000e+00> : vector<8xf32>
    %84 = vector.multi_reduction <add>, %83, %cst_15 [0] : vector<256x8xf32> to vector<8xf32>
    %85 = vector.shape_cast %84 : vector<8xf32> to vector<1x8xf32>
    %cst_16 = arith.constant 2.560000e+02 : f32
    %86 = vector.broadcast %cst_16 : f32 to vector<1x8xf32>
    %87 = arith.divf %85, %86 : vector<1x8xf32>
    %cst_17 = arith.constant 9.99999974E-6 : f32
    %88 = vector.broadcast %cst_17 : f32 to vector<1x8xf32>
    %89 = arith.addf %87, %88 : vector<1x8xf32>
    %90 = math.rsqrt %89 : vector<1x8xf32>
    %91 = vector.broadcast %90 : vector<1x8xf32> to vector<256x8xf32>
    %92 = arith.mulf %82, %91 : vector<256x8xf32>
    %c0_18 = arith.constant 0 : index
    %c0_19 = arith.constant 0 : index
    %93 = vector.load %arg4[%c0_18, %c0_19] : memref<4x8xf32, #tpu.memory_space<vmem>>, vector<4x8xf32>
    %cst_20 = arith.constant dense<0.000000e+00> : vector<256x8xf32>
    %94 = tpu.matmul %2, %93, %cst_20 {dimension_numbers = #tpu.dot_dimension_numbers<[1], [0], [0], [1], [0, 0, 1, 1], [], []>} : vector<256x4xf32>, vector<4x8xf32>, vector<256x8xf32> -> vector<256x8xf32>
    %cst_21 = arith.constant dense<0.000000e+00> : vector<8xf32>
    %95 = vector.multi_reduction <add>, %94, %cst_21 [0] : vector<256x8xf32> to vector<8xf32>
    %96 = vector.shape_cast %95 : vector<8xf32> to vector<1x8xf32>
    %cst_22 = arith.constant 2.560000e+02 : f32
    %97 = vector.broadcast %cst_22 : f32 to vector<1x8xf32>
    %98 = arith.divf %96, %97 : vector<1x8xf32>
    %99 = vector.broadcast %98 : vector<1x8xf32> to vector<256x8xf32>
    %100 = arith.subf %94, %99 : vector<256x8xf32>
    %101 = arith.mulf %100, %100 : vector<256x8xf32>
    %cst_23 = arith.constant dense<0.000000e+00> : vector<8xf32>
    %102 = vector.multi_reduction <add>, %101, %cst_23 [0] : vector<256x8xf32> to vector<8xf32>
    %103 = vector.shape_cast %102 : vector<8xf32> to vector<1x8xf32>
    %cst_24 = arith.constant 2.560000e+02 : f32
    %104 = vector.broadcast %cst_24 : f32 to vector<1x8xf32>
    %105 = arith.divf %103, %104 : vector<1x8xf32>
    %cst_25 = arith.constant 9.99999974E-6 : f32
    %106 = vector.broadcast %cst_25 : f32 to vector<1x8xf32>
    %107 = arith.addf %105, %106 : vector<1x8xf32>
    %108 = math.rsqrt %107 : vector<1x8xf32>
    %109 = vector.broadcast %108 : vector<1x8xf32> to vector<256x8xf32>
    %110 = arith.mulf %100, %109 : vector<256x8xf32>
    %111 = arith.addf %92, %110 : vector<256x8xf32>
    %c0_26 = arith.constant 0 : index
    %c0_27 = arith.constant 0 : index
    %112 = vector.load %arg5[%c0_26, %c0_27] : memref<64x256xf32, #tpu.memory_space<vmem>>, vector<64x256xf32>
    %cst_28 = arith.constant dense<0.000000e+00> : vector<64x8xf32>
    %113 = tpu.matmul %112, %111, %cst_28 {dimension_numbers = #tpu.dot_dimension_numbers<[1], [0], [0], [1], [0, 0, 1, 1], [], []>} : vector<64x256xf32>, vector<256x8xf32>, vector<64x8xf32> -> vector<64x8xf32>
    %114 = tpu.transpose %113, [1, 0] : vector<64x8xf32> -> vector<8x64xf32>
    %c0_29 = arith.constant 0 : index
    %c0_30 = arith.constant 0 : index
    %c0_31 = arith.constant 0 : index
    %115 = vector.load %arg6[%c0_29, %c0_30, %c0_31] : memref<1x8x64xf32, #tpu.memory_space<vmem>>, vector<1x8x64xf32>
    %116 = vector.shape_cast %115 : vector<1x8x64xf32> to vector<8x64xf32>
    %117 = vector.shape_cast %114 : vector<8x64xf32> to vector<1x8x64xf32>
    tpu.vector_store %arg6[%c0_29, %c0_30, %c0_31], %117 {strides = array<i32>} : memref<1x8x64xf32, #tpu.memory_space<vmem>>, vector<1x8x64xf32>,
    return
  }
  func.func @transform_0(%arg0: i32) -> (i32, i32, i32) {
    %c0_i32 = arith.constant 0 : i32
    %c0_i32_0 = arith.constant 0 : i32
    %c0_i32_1 = arith.constant 0 : i32
    return %arg0, %c0_i32, %c0_i32_0 : i32, i32, i32
  }
  func.func @transform_1(%arg0: i32) -> (i32, i32) {
    %c0_i32 = arith.constant 0 : i32
    %c0_i32_0 = arith.constant 0 : i32
    %c0_i32_1 = arith.constant 0 : i32
    return %c0_i32, %c0_i32_0 : i32, i32
  }
  func.func @transform_2(%arg0: i32) -> (i32, i32) {
    %c0_i32 = arith.constant 0 : i32
    %c0_i32_0 = arith.constant 0 : i32
    %c0_i32_1 = arith.constant 0 : i32
    return %c0_i32, %c0_i32_0 : i32, i32
  }
  func.func @transform_3(%arg0: i32) -> (i32, i32) {
    %c0_i32 = arith.constant 0 : i32
    %c0_i32_0 = arith.constant 0 : i32
    %c0_i32_1 = arith.constant 0 : i32
    return %c0_i32, %c0_i32_0 : i32, i32
  }
  func.func @transform_4(%arg0: i32) -> (i32, i32) {
    %c0_i32 = arith.constant 0 : i32
    %c0_i32_0 = arith.constant 0 : i32
    %c0_i32_1 = arith.constant 0 : i32
    return %c0_i32, %c0_i32_0 : i32, i32
  }
  func.func @transform_5(%arg0: i32) -> (i32, i32, i32) {
    %c0_i32 = arith.constant 0 : i32
    %c0_i32_0 = arith.constant 0 : i32
    %c0_i32_1 = arith.constant 0 : i32
    return %arg0, %c0_i32, %c0_i32_0 : i32, i32, i32
  }
}

</mosaic_0001>

<bundles_post_ra>
// kernel: tpu_custom_call.1
= control target key start
LH: loop header
LB: loop body
LE: loop exit
PB: predicated region body
PF: predicated region fallthrough
CT: control target
= control target key end

     0   :  { %10 = vsyncpa [#allocation3], 0  ;;  %s10143_s0 = inlined_call_operand.hbm [shape: f32[2,4,256], index: 0, kind: input, shape index: {}]   ;;  %s10144_s1 = inlined_call_operand.vmem [shape: f32[36,8], index: 1, kind: input, shape index: {}]   ;;  %s10145_s2 = inlined_call_operand.vmem [shape: f32[72,8], index: 2, kind: input, shape index: {}]   ;;  %s10146_s3 = inlined_call_operand.vmem [shape: f32[4,8], index: 3, kind: input, shape index: {}]   ;;  %s10147_s4 = inlined_call_operand.vmem [shape: f32[64,256], index: 4, kind: input, shape index: {}]   ;;  %s10148_s5 = inlined_call_operand.hbm [shape: f32[2,8,64], index: 5, kind: output, shape index: {}]  }
   0x1   :  { %12 = vsyncpa [#allocation3 + $0x1], 0 }
   0x2   :  { %13 = vsyncpa [#allocation4], 0 }
   0x3   :  { %15 = vsyncpa [#allocation4 + $0x1], 0  ;;  %s5823_s18 = smov 0   ;;  %s5825_s19 = smov 0  }
   0x4   :  { %s5827_s20 = smov 0   ;;  %s5829_s21 = smov 0  }
   0x5 LB: > { %s5844_s22 = sadd.s32 4294967295, %s5777_s21   ;;  %s5106_s23 = sadd.s32 4294967294, %s5777_s21   ;;  %s5777_s21 = sphi %s5829_s21, %s10531_s21   ;;  %s5773_s20 = sphi %s5827_s20, %s10530_s20   ;;  %s5769_s19 = sphi %s5825_s19, %s10529_s19   ;;  %s5765_s18 = sphi %s5823_s18, %s10528_s18  }
   0x6   : > { %s5848_s24 = sadd.s32 1, %s5777_s21   ;;  %s28_s25 = sadd.s32 1, %s5773_s20 }
   0x7   : > { %s25_s26 = ssub.s32 %s5777_s21, %s5848_s24  ;;  %p35_p0 = scmp.ne.s32.totalorder %s5773_s20, %s5769_s19 }
   0x8   : > { %p26_p1 = scmp.eq.s32.totalorder %s25_s26, 0  ;;  %p36_p2 = scmp.eq.s32.totalorder %s5777_s21, 0 }
   0x9   : > { %p41_p3 = scmp.ne.s32.totalorder %s5769_s19, %s5765_s18  ;;  %p42_p4 = scmp.eq.s32.totalorder %s5844_s22, 0 }
   0xa   : > { %s5860_s27 = scalar_select %p26_p1, %s5773_s20, %s28_s25  }
   0xb   : > { %p5862_p5 = por %p36_p2, %p35_p0  ;;  %p5866_p6 = por %p42_p4, %p41_p3 }
   0xc   : > { %p149_p7 = scmp.eq.s32.totalorder %s5844_s22, 1  ;;  %p155_p8 = scmp.eq.s32.totalorder %s5106_s23, 1 }
   0xd   : > { %p5627_p10 = scmp.lt.s32.totalorder %s5777_s21, 2  ;;  %s187_s7 = sand.u32 1, %s5773_s20  }
   0xe   : > { %p5873_p11 = por %p149_p7, %p35_p0  ;;  %p5877_p12 = por %p155_p8, %p41_p3 }
   0xf   : > { %s5217_s8 = sshll.u32 %s5777_s21, 7  ;;  %s5109_s9 = sshll.u32 %s187_s7, 3 }
  0x10   : > { %s10261_s30 = scalar_select %p5873_p11, 1, 0 }
  0x11   : > { %s10262_s6 = scalar_select %p5877_p12, 1, 0 }
  0x12   : > { %s5886_s12 = scalar_lea.hbm %s10143_s0, %s5217_s8  ;;  %s191_s13 = scalar_lea.vmem [#allocation2], %s5109_s9 }
  0x13   : > { %s199_s14 = sshll.u32 %s191_s13, 4  ;;  %p5890_p13 = pnand %p5627_p10, %p5862_p5  ;;  %s5894_s14 = int_to_ptr.vmem [resolvable:$true] %s199_s14 }
  0x14   : > { %s188_s16 = scalar_lea.sflag [#allocation3], %s187_s7  ;;  %s5681_s17 = scalar_lea.hbm %s5886_s12, 128 }
  0x15   : > { %p5682_p2 = scmp.ne.s32.totalorder %s5886_s12, %s5681_s17  ;;  %p5683_p3 = pneg %p5890_p13 }
  0x16   : > { %s5686_s26 = scalar_lea.hbm %s10143_s0, 256  ;;  %p5687_p5 = scmp.lt.u32.totalorder %s5886_s12, %s10143_s0 }
  0x17   : > { %p5684_p4 = pnand %p5683_p3, %p5682_p2  ;;  %p5688_p8 = scmp.lt.u32.totalorder %s5686_s26, %s5681_s17 }
  0x18   : > { %p5690_p9 = scmp.lt.u32.totalorder %s5681_s17, %s5886_s12 }
  0x19   : > { %p5685_p7 = pneg %p5684_p4  ;;  %p5689_p10 = por %p5688_p8, %p5687_p5 }
  0x1b   : > { %p5691_p0 = por %p5690_p9, %p5689_p10 }
  0x1d   : > { %p5692_p1 = pnand %p5691_p0, %p5685_p7 }
  0x1f   : > { %5695 = shalt.err (!%p5692_p1)
}
  0x20   : > { %s5696_s7 = scalar_lea.vmem %s5894_s14, 128  ;;  %s5779_s9 = smov [#allocation2]  }
  0x21   : > { %p5697_p2 = scmp.ne.s32.totalorder %s5894_s14, %s5696_s7  ;;  %s5701_s10 = sshll.u32 %s5779_s9, 4  ;;  %s5702_s10 = int_to_ptr.vmem [resolvable:$false] %s5701_s10 }
  0x22   : > { %s5703_s11 = scalar_lea.vmem %s5702_s10, 256  ;;  %p5704_p11 = scmp.lt.s32.totalorder %s5894_s14, %s5702_s10 }
  0x23   : > { %p5699_p4 = pnand %p5697_p2, %p5683_p3  ;;  %p5705_p5 = scmp.lt.s32.totalorder %s5703_s11, %s5696_s7 }
  0x25   : > { %p5700_p12 = pneg %p5699_p4  ;;  %p5706_p8 = por %p5705_p5, %p5704_p11 }
  0x27   : > { %p5707_p9 = pnand %p5706_p8, %p5700_p12 }
  0x29   : > { %5710 = shalt.err (!%p5707_p9)
}
  0x2a   : > { %5622 = dma.hbm_to_vmem [thread:$0]  (!%p5890_p13), %s5886_s12, 128, %s5894_s14, %s188_s16  }
  0x2b   : > { %p10264_p0 = scmp.lt.s32.totalorder %s5777_s21, 3  ;;  %p10265_p1 = scmp.ge.s32.totalorder %s5777_s21, 1 }
  0x2d   : > { %p205_p3 = pnand %p10265_p1, %p10264_p0 }
  0x2f   : > { %208 = sbr.rel (%p205_p3) target bundleno = 2579 (0xa13), region = 40 }
  0x36   : > { %s5928_s13 = sand.u32 1, %s5769_s19  }
  0x37   : > { %s5113_s17 = sshll.u32 %s5928_s13, 3  ;;  %s211_s23 = scalar_lea.sflag [#allocation3], %s5928_s13 }
  0x38   : > { %s214_s15 = scalar_lea.vmem [#allocation2], %s5113_s17 }
  0x39   : > { %5756 = dma.done.wait (%p5866_p6), %s211_s23, 128  }
  0x3a   : > { %5758 = vsyncadd (%p5866_p6), %s211_s23, 4294967168  ;;  %v241_v0 = vld [vmem:[%s214_s15] sm:$0xff]  ;;  %vm373_vm0 = vcmask 1040384   ;;  %s5780_s12 = smov 12   ;;  %vm563_vm1 = vcmask 1046528   ;;  %s5781_s29 = smov 16  }
  0x3b   : > { %245 = vxpose.xlu0.b32.start.end [1/1] (short) %v241_v0, 128  ;;  %v243_v1 = vcombine.high %v241_v0, %v241_v0  ;;  %s5782_s14 = smov 4   ;;  %vm639_vm2 = vcmask 1045504   ;;  %s5783_s16 = smov 20   ;;  %vm1827_vm3 = vcmask 1043456   ;;  %vm1465_vm4 = vcmask 31744  }
  0x3c   : > { %s5784_s25 = smov 8   ;;  %s5785_s26 = smov 28   ;;  %vm1496_vm5 = vcmask 64512   ;;  %vm1527_vm6 = vcmask 97280   ;;  %vm1560_vm7 = vcmask 130048   ;;  %vm1593_vm8 = vcmask 162816  }
  0x3d   : > { %s5786_s28 = smov 24   ;;  %s5787_s8 = smov 32   ;;  %vm1626_vm9 = vcmask 195584   ;;  %vm1659_vm10 = vcmask 228352   ;;  %vm1692_vm11 = vcmask 261120   ;;  %vm1730_vm12 = vcmask 293888  }
  0x3e   : > { %s5790_s23 = smov 56   ;;  %s5791_s7 = smov 64   ;;  %vm3604_vm13 = vcmask 326656   ;;  %vm3637_vm14 = vcmask 392192   ;;  %vm3670_vm15 = vcmask 457728  }
  0x3f   : > { %s5023_s15 = scalar_lea.sflag [#allocation4], %s5928_s13  ;;  %p10525_p11 = scmp.ne.s32.totalorder %s10261_s30, 0 }
  0x78   : > { %277 = vxpose.xlu0.b32.start.end [1/1] (short) %v243_v1, 128 }
  0xbb   : > { %v5938_v2 = vpop.trf.xlu0 }
  0xbc   : > { %10266 = vst [vmem:[#allocation8_spill] sm:$0xff] %v5938_v2  ;;  %v326_v3 = vrot.slane %v5938_v2, 1  ;;  %v377_v4 = vrot.slane %v5938_v2, 7 }
  0xbe   : > { %v5943_v5 = vsel %vm373_vm0, %v326_v3, %v377_v4 }
  0xbf   : > { %907 = vrot.lane.b32.xlu1 %v5943_v5, %s5780_s12  ;;  %v5947_v6 = vpop.trf.xlu0  ;;  %v569_v10 = vrot.slane %v5943_v5, 1  ;;  %v645_v24 = vrot.slane %v5943_v5, 2 }
  0xc0   : > { %10267 = vst [vmem:[#allocation9_spill] sm:$0xff] %v5947_v6  ;;  %v378_v7 = vrot.slane %v5947_v6, 7  ;;  %v470_v9 = vrot.slane %v5947_v6, 5 }
  0xc2   : > { %v5951_v8 = vsel %vm373_vm0, %v377_v4, %v378_v7  ;;  %v518_v15 = vsel %vm373_vm0, %v378_v7, %v470_v9 }
  0xc3   : > { %909 = vrot.lane.b32.xlu1 %v5951_v8, %s5780_s12  ;;  %v570_v11 = vrot.slane %v5951_v8, 1  ;;  %v5958_v12 = vpop.trf.xlu0  ;;  %v572_v16 = vrot.slane %v518_v15, 1  ;;  %v646_v19 = vrot.slane %v5951_v8, 2  ;;  %v648_v36 = vrot.slane %v518_v15, 2 }
  0xc4   : > { %10268 = vst [vmem:[#allocation10_spill] sm:$0xff] %v5958_v12  ;;  %v325_v20 = vrot.slane %v5958_v12, 1  ;;  %v374_v21 = vrot.slane %v5958_v12, 7 }
  0xc5   : > { %v571_v13 = vsel %vm563_vm1, %v569_v10, %v570_v11  ;;  %v573_v18 = vsel %vm563_vm1, %v570_v11, %v572_v16  ;;  %v647_v25 = vsel %vm639_vm2, %v645_v24, %v646_v19  ;;  %v649_v40 = vsel %vm639_vm2, %v646_v19, %v648_v36  ;;  %v1726_v24 = vld [vmem:[%s10144_s1 + $0x8] sm:$0xff]  ;;  %v1728_v36 = vld [vmem:[%s10144_s1 + $0x18] sm:$0xff] }
  0xc6   : > { %v5979_v26 = vsel %vm373_vm0, %v325_v20, %v374_v21 }
  0xc7   : > { %1003 = vrot.lane.b32.xlu1 %v571_v13, %s5781_s29  ;;  %v5962_v14 = vpop.trf.xlu0  ;;  %v564_v29 = vrot.slane %v5979_v26, 1  ;;  %v640_v62 = vrot.slane %v5979_v26, 2 }
  0xc8   : > { %10269 = vst [vmem:[#allocation11_spill] sm:$0xff] %v5962_v14  ;;  %v375_v22 = vrot.slane %v5962_v14, 7  ;;  %v469_v53 = vrot.slane %v5962_v14, 5 }
  0xca   : > { %v5982_v27 = vsel %vm373_vm0, %v374_v21, %v375_v22  ;;  %v517_v57 = vsel %vm373_vm0, %v375_v22, %v469_v53  ;;  %v1725_v22 = vld [vmem:[%s10144_s1] sm:$0xff] }
  0xcb   : > { %731 = vrot.lane.b32.xlu1 %v571_v13, %s5782_s14  ;;  %v5966_v17 = vpop.trf.xlu0  ;;  %v565_v30 = vrot.slane %v5982_v27, 1  ;;  %v567_v60 = vrot.slane %v517_v57, 1  ;;  %v641_v3 = vrot.slane %v5982_v27, 2  ;;  %v643_v11 = vrot.slane %v517_v57, 2 }
  0xcc   : > { %10270 = vst [vmem:[#allocation12_spill] sm:$0xff] %v5966_v17 }
  0xcd   : > { %v5996_v35 = vsel %vm563_vm1, %v564_v29, %v565_v30  ;;  %v568_v1 = vsel %vm563_vm1, %v565_v30, %v567_v60  ;;  %v642_v9 = vsel %vm639_vm2, %v640_v62, %v641_v3  ;;  %v644_v16 = vsel %vm639_vm2, %v641_v3, %v643_v11 }
  0xce   : > { %v5559_v30 = vpack.c.bf16 %v1726_v24, %v1725_v22  ;;  %v380_v11 = vrot.slane %v5966_v17, 7 }
  0xcf   : > { %1005 = vrot.lane.b32.xlu1 %v573_v18, %s5781_s29  ;;  %v5974_v23 = vpop.trf.xlu0 }
  0xd0   : > { %10271 = vst [vmem:[#allocation13_spill] sm:$0xff] %v5974_v23  ;;  %5560 = vmatprep.subr.bf16.mxu0 %v5559_v30 }
  0xd1   : > { %5562 = vmatpush3.bf16.msra.mxu0 %v5559_v30  ;;  %v381_v30 = vrot.slane %v5974_v23, 7 }
  0xd3   : > { %1099 = vrot.lane.b32.xlu1 %v647_v25, %s5783_s16  ;;  %v5985_v28 = vpop.trf.xlu0 }
  0xd4   : > { %10272 = vst [vmem:[#allocation14_spill] sm:$0xff] %v5985_v28  ;;  %v328_v31 = vrot.slane %v5985_v28, 1  ;;  %v383_v32 = vrot.slane %v5985_v28, 7 }
  0xd6   : > { %v6003_v38 = vsel %vm373_vm0, %v328_v31, %v383_v32 }
  0xd7   : > { %733 = vrot.lane.b32.xlu1 %v573_v18, %s5782_s14  ;;  %v5992_v33 = vpop.trf.xlu0  ;;  %10275 = vst [vmem:[#allocation17_spill] sm:$0xff] %v6003_v38  ;;  %v579_v41 = vrot.slane %v6003_v38, 1  ;;  %v655_v47 = vrot.slane %v6003_v38, 2 }
  0xd8   : > { %10273 = vst [vmem:[#allocation15_spill] sm:$0xff] %v5992_v33  ;;  %v384_v34 = vrot.slane %v5992_v33, 7  ;;  %v472_v45 = vrot.slane %v5992_v33, 5 }
  0xda   : > { %v6000_v37 = vsel %vm373_vm0, %v383_v32, %v384_v34  ;;  %v520_v49 = vsel %vm373_vm0, %v384_v34, %v472_v45  ;;  %v1727_v34 = vld [vmem:[%s10144_s1 + $0x10] sm:$0xff] }
  0xdb   : > { %821 = vrot.lane.b32.xlu1 %v647_v25, %s5784_s25  ;;  %10274 = vst [vmem:[#allocation16_spill] sm:$0xff] %v6000_v37  ;;  %v6005_v39 = vpop.trf.xlu0  ;;  %v580_v42 = vrot.slane %v6000_v37, 1  ;;  %v656_v48 = vrot.slane %v6000_v37, 2  ;;  %v582_v52 = vrot.slane %v520_v49, 1  ;;  %v658_v56 = vrot.slane %v520_v49, 2 }
  0xdc   : > { %10276 = vst [vmem:[#allocation18_spill] sm:$0xff] %v6005_v39  ;;  %v329_v63 = vrot.slane %v6005_v39, 1  ;;  %v386_v0 = vrot.slane %v6005_v39, 7 }
  0xdd   : > { %1285 = vrot.lane.b32.xlu0 %v5996_v35, %s5785_s26  ;;  %v6018_v44 = vsel %vm563_vm1, %v579_v41, %v580_v42  ;;  %v6036_v51 = vsel %vm639_vm2, %v655_v47, %v656_v48  ;;  %v6046_v55 = vsel %vm563_vm1, %v580_v42, %v582_v52  ;;  %v6056_v59 = vsel %vm639_vm2, %v656_v48, %v658_v56 }
  0xde   : > { %v6077_v10 = vsel %vm373_vm0, %v329_v63, %v386_v0  ;;  %v5563_v42 = vpack.c.bf16 %v1728_v36, %v1727_v34  ;;  %v6200_v34 = vsel %vm373_vm0, %v380_v11, %v381_v30 }
  0xdf   : > { %1101 = vrot.lane.b32.xlu1 %v649_v40, %s5783_s16  ;;  %v6013_v43 = vpop.trf.xlu0  ;;  %10284 = vst [vmem:[#allocation26_spill] sm:$0xff] %v6077_v10  ;;  %v584_v18 = vrot.slane %v6077_v10, 1  ;;  %v660_v31 = vrot.slane %v6077_v10, 2  ;;  %10297 = vst [vmem:[#allocation39_spill] sm:$0xff] %v6200_v34 }
  0xe0   : > { %10277 = vst [vmem:[#allocation19_spill] sm:$0xff] %v6013_v43  ;;  %v387_v4 = vrot.slane %v6013_v43, 7  ;;  %v473_v25 = vrot.slane %v6013_v43, 5  ;;  %5564 = vmatprep.subr.bf16.mxu0 %v5563_v42  ;;  %v651_v43 = vrot.slane %v6200_v34, 2 }
  0xe1   : > { %919 = vrot.lane.b32.xlu0 %v6003_v38, %s5780_s12  ;;  %5566 = vmatpush3.bf16.msra.mxu0 %v5563_v42 }
  0xe2   : > { %v6080_v13 = vsel %vm373_vm0, %v386_v0, %v387_v4 }
  0xe3   : > { %823 = vrot.lane.b32.xlu1 %v649_v40, %s5784_s25  ;;  %v6022_v46 = vpop.trf.xlu0  ;;  %10285 = vst [vmem:[#allocation27_spill] sm:$0xff] %v6080_v13  ;;  %v585_v19 = vrot.slane %v6080_v13, 1  ;;  %v661_v32 = vrot.slane %v6080_v13, 2  ;;  %v521_v40 = vsel %vm373_vm0, %v387_v4, %v473_v25  ;;  %v327_v4 = vrot.slane %v5966_v17, 1 }
  0xe4   : > { %10278 = vst [vmem:[#allocation20_spill] sm:$0xff] %v6022_v46  ;;  %v587_v47 = vrot.slane %v521_v40, 1  ;;  %v663_v52 = vrot.slane %v521_v40, 2  ;;  %v330_v60 = vrot.slane %v6022_v46, 1  ;;  %v389_v62 = vrot.slane %v6022_v46, 7 }
  0xe5   : > { %1293 = vrot.lane.b32.xlu0 %v6018_v44, %s5785_s26  ;;  %v6096_v21 = vsel %vm563_vm1, %v584_v18, %v585_v19  ;;  %v6127_v45 = vsel %vm639_vm2, %v660_v31, %v661_v32  ;;  %v6180_v22 = vsel %vm373_vm0, %v327_v4, %v380_v11  ;;  %v471_v11 = vrot.slane %v5974_v23, 5 }
  0xe6   : > { %v6139_v49 = vsel %vm563_vm1, %v585_v19, %v587_v47  ;;  %v6148_v56 = vsel %vm639_vm2, %v661_v32, %v663_v52  ;;  %v574_v47 = vrot.slane %v6180_v22, 1  ;;  %v650_v46 = vrot.slane %v6180_v22, 2 }
  0xe7   : > { %1195 = vrot.lane.b32.xlu1 %v5979_v26, %s5786_s28  ;;  %v6031_v50 = vpop.trf.xlu0 }
  0xe8   : > { %10279 = vst [vmem:[#allocation21_spill] sm:$0xff] %v6031_v50  ;;  %v390_v63 = vrot.slane %v6031_v50, 7  ;;  %v474_v31 = vrot.slane %v6031_v50, 5 }
  0xe9   : > { %1015 = vrot.lane.b32.xlu0 %v6018_v44, %s5781_s29 }
  0xea   : > { %v6167_v3 = vsel %vm373_vm0, %v389_v62, %v390_v63  ;;  %v522_v36 = vsel %vm373_vm0, %v390_v63, %v474_v31 }
  0xeb   : > { %911 = vrot.lane.b32.xlu1 %v5979_v26, %s5780_s12  ;;  %v6041_v54 = vpop.trf.xlu0  ;;  %v590_v19 = vrot.slane %v6167_v3, 1  ;;  %v666_v32 = vrot.slane %v6167_v3, 2  ;;  %v592_v52 = vrot.slane %v522_v36, 1  ;;  %v668_v63 = vrot.slane %v522_v36, 2 }
  0xec   : > { %10280 = vst [vmem:[#allocation22_spill] sm:$0xff] %v6041_v54 }
  0xed   : > { %1383 = vrot.lane.b32.xlu0 %v6036_v51, %s5787_s8  ;;  %v6229_v31 = vsel %vm639_vm2, %v666_v32, %v668_v63 }
  0xef   : > { %1197 = vrot.lane.b32.xlu1 %v5982_v27, %s5786_s28  ;;  %v6051_v58 = vpop.trf.xlu0 }
  0xf0   : > { %10281 = vst [vmem:[#allocation23_spill] sm:$0xff] %v6051_v58  ;;  %v475_v17 = vrot.slane %v6051_v58, 5 }
  0xf1   : > { %1017 = vrot.lane.b32.xlu0 %v6046_v55, %s5781_s29 }
  0xf3   : > { %727 = vrot.lane.b32.xlu1 %v5996_v35, %s5782_s14  ;;  %v6060_v61 = vpop.trf.xlu0 }
  0xf4   : > { %10282 = vst [vmem:[#allocation24_spill] sm:$0xff] %v6060_v61 }
  0xf5   : > { %1385 = vrot.lane.b32.xlu0 %v6056_v59, %s5787_s8 }
  0xf7   : > { %729 = vrot.lane.b32.xlu1 %v568_v1, %s5782_s14  ;;  %v6071_v7 = vpop.trf.xlu0 }
  0xf8   : > { %10283 = vst [vmem:[#allocation25_spill] sm:$0xff] %v6071_v7 }
  0xf9   : > { %829 = vrot.lane.b32.xlu0 %v6036_v51, %s5784_s25 }
  0xfb   : > { %817 = vrot.lane.b32.xlu1 %v642_v9, %s5784_s25  ;;  %v6083_v15 = vpop.trf.xlu0 }
  0xfc   : > { %10286 = vst [vmem:[#allocation28_spill] sm:$0xff] %v6083_v15 }
  0xfd   : > { %1207 = vrot.lane.b32.xlu0 %v6077_v10, %s5786_s28 }
  0xff   : > { %819 = vrot.lane.b32.xlu1 %v644_v16, %s5784_s25  ;;  %v6091_v20 = vpop.trf.xlu0 }
 0x100   : > { %10287 = vst [vmem:[#allocation29_spill] sm:$0xff] %v6091_v20 }
 0x101   : > { %923 = vrot.lane.b32.xlu0 %v6077_v10, %s5780_s12 }
 0x103   : > { %913 = vrot.lane.b32.xlu1 %v5982_v27, %s5780_s12  ;;  %v6107_v29 = vpop.trf.xlu0 }
 0x104   : > { %10288 = vst [vmem:[#allocation30_spill] sm:$0xff] %v6107_v29 }
 0x105   : > { %1297 = vrot.lane.b32.xlu0 %v6096_v21, %s5785_s26 }
 0x107   : > { %1007 = vrot.lane.b32.xlu1 %v5996_v35, %s5781_s29  ;;  %v6122_v41 = vpop.trf.xlu0  ;;  %v1729_v35 = vld [vmem:[%s10144_s1 + $0x20] sm:$0xf] }
 0x108   : > { %10289 = vst [vmem:[#allocation31_spill] sm:$0xff] %v6122_v41  ;;  %5393 = vmatprep.subr.msk.mxu0 %vm1827_vm3, %v1729_v35 }
 0x109   : > { %1019 = vrot.lane.b32.xlu0 %v6096_v21, %s5781_s29  ;;  %5394 = vmatpush3.msk.msra.mxu0 %vm1827_vm3, %v1729_v35  ;;  %v575_v35 = vrot.slane %v6200_v34, 1 }
 0x10b   : > { %1287 = vrot.lane.b32.xlu1 %v568_v1, %s5785_s26  ;;  %v6130_v48 = vpop.trf.xlu0 }
 0x10c   : > { %10290 = vst [vmem:[#allocation32_spill] sm:$0xff] %v6130_v48 }
 0x10d   : > { %1387 = vrot.lane.b32.xlu0 %v6127_v45, %s5787_s8 }
 0x10f   : > { %1375 = vrot.lane.b32.xlu1 %v642_v9, %s5787_s8  ;;  %v6143_v53 = vpop.trf.xlu0 }
 0x110   : > { %10291 = vst [vmem:[#allocation33_spill] sm:$0xff] %v6143_v53 }
 0x111   : > { %1021 = vrot.lane.b32.xlu0 %v6139_v49, %s5781_s29 }
 0x113   : > { %1009 = vrot.lane.b32.xlu1 %v568_v1, %s5781_s29  ;;  %v6151_v57 = vpop.trf.xlu0  ;;  %v6164_v1 = vsel %vm373_vm0, %v330_v60, %v389_v62  ;;  %v576_v60 = vsel %vm563_vm1, %v574_v47, %v575_v35  ;;  %v6218_v62 = vsel %vm563_vm1, %v590_v19, %v592_v52  ;;  %v331_v47 = vrot.slane %v6041_v54, 1 }
 0x114   : > { %10292 = vst [vmem:[#allocation34_spill] sm:$0xff] %v6151_v57  ;;  %10294 = vst [vmem:[#allocation36_spill] sm:$0xff] %v6164_v1  ;;  %v392_v52 = vrot.slane %v6041_v54, 7 }
 0x115   : > { %1389 = vrot.lane.b32.xlu0 %v6148_v56, %s5787_s8 }
 0x117   : > { %1103 = vrot.lane.b32.xlu1 %v642_v9, %s5783_s16  ;;  %v6159_v0 = vpop.trf.xlu0  ;;  %v589_v9 = vrot.slane %v6164_v1, 1 }
 0x118   : > { %10293 = vst [vmem:[#allocation35_spill] sm:$0xff] %v6159_v0 }
 0x119   : > { %833 = vrot.lane.b32.xlu0 %v6127_v45, %s5784_s25  ;;  %v6185_v24 = vsel %vm563_vm1, %v589_v9, %v590_v19  ;;  %v519_v19 = vsel %vm373_vm0, %v381_v30, %v471_v11  ;;  %v6250_v11 = vsel %vm373_vm0, %v331_v47, %v392_v52 }
 0x11a   : > { %v577_v50 = vrot.slane %v519_v19, 1  ;;  %10301 = vst [vmem:[#allocation43_spill] sm:$0xff] %v6250_v11  ;;  %v670_v12 = vrot.slane %v6250_v11, 2 }
 0x11b   : > { %1377 = vrot.lane.b32.xlu1 %v644_v16, %s5787_s8  ;;  %v6172_v18 = vpop.trf.xlu0 }
 0x11c   : > { %10295 = vst [vmem:[#allocation37_spill] sm:$0xff] %v6172_v18  ;;  %v578_v30 = vsel %vm563_vm1, %v575_v35, %v577_v50  ;;  %v652_v50 = vsel %vm639_vm2, %v650_v46, %v651_v43  ;;  %v594_v35 = vrot.slane %v6250_v11, 1 }
 0x11d   : > { %1211 = vrot.lane.b32.xlu0 %v6164_v1, %s5786_s28 }
 0x11f   : > { %1105 = vrot.lane.b32.xlu1 %v644_v16, %s5783_s16  ;;  %v6187_v25 = vpop.trf.xlu0  ;;  %v665_v16 = vrot.slane %v6164_v1, 2 }
 0x120   : > { %10296 = vst [vmem:[#allocation38_spill] sm:$0xff] %v6187_v25 }
 0x121   : > { %927 = vrot.lane.b32.xlu0 %v6164_v1, %s5780_s12  ;;  %v6208_v42 = vsel %vm639_vm2, %v665_v16, %v666_v32  ;;  %v393_v32 = vrot.slane %v6051_v58, 7 }
 0x123   : > { %1199 = vrot.lane.b32.xlu1 %v6180_v22, %s5786_s28  ;;  %v6203_v40 = vpop.trf.xlu0  ;;  %v6257_v39 = vsel %vm373_vm0, %v392_v52, %v393_v32  ;;  %v523_v58 = vsel %vm373_vm0, %v393_v32, %v475_v17 }
 0x124   : > { %10298 = vst [vmem:[#allocation40_spill] sm:$0xff] %v6203_v40  ;;  %v595_v47 = vrot.slane %v6257_v39, 1  ;;  %v671_v6 = vrot.slane %v6257_v39, 2 }
 0x125   : > { %1301 = vrot.lane.b32.xlu0 %v6185_v24, %s5785_s26 }
 0x126   : > { %v6275_v52 = vsel %vm563_vm1, %v594_v35, %v595_v47 }
 0x127   : > { %915 = vrot.lane.b32.xlu1 %v6180_v22, %s5780_s12  ;;  %v6220_v4 = vpop.trf.xlu0 }
 0x128   : > { %10299 = vst [vmem:[#allocation41_spill] sm:$0xff] %v6220_v4 }
 0x129   : > { %1023 = vrot.lane.b32.xlu0 %v6185_v24, %s5781_s29 }
 0x12b   : > { %1201 = vrot.lane.b32.xlu1 %v6200_v34, %s5786_s28  ;;  %v6234_v16 = vpop.trf.xlu0 }
 0x12c   : > { %10300 = vst [vmem:[#allocation42_spill] sm:$0xff] %v6234_v16  ;;  %v597_v16 = vrot.slane %v523_v58, 1 }
 0x12d   : > { %1391 = vrot.lane.b32.xlu0 %v6208_v42, %s5787_s8 }
 0x12f   : > { %1289 = vrot.lane.b32.xlu1 %v576_v60, %s5785_s26  ;;  %v6254_v54 = vpop.trf.xlu0 }
 0x130   : > { %10302 = vst [vmem:[#allocation44_spill] sm:$0xff] %v6254_v54  ;;  %v6297_v54 = vsel %vm639_vm2, %v670_v12, %v671_v6 }
 0x131   : > { %v6224_v9 = vpop.permute.xlu1 %907  ;;  %1025 = vrot.lane.b32.xlu0 %v6218_v62, %s5781_s29 }
 0x133   : > { %917 = vrot.lane.b32.xlu1 %v6200_v34, %s5780_s12  ;;  %v6268_v28 = vpop.trf.xlu0 }
 0x134   : > { %10303 = vst [vmem:[#allocation45_spill] sm:$0xff] %v6268_v28  ;;  %v10171_v35 = vrot.slane %v6268_v28, 7 }
 0x135   : > { %v6236_v36 = vpop.permute.xlu1 %909  ;;  %1393 = vrot.lane.b32.xlu0 %v6229_v31, %s5787_s8 }
 0x137   : > { %1011 = vrot.lane.b32.xlu1 %v576_v60, %s5781_s29  ;;  %v6283_v14 = vpop.trf.xlu0 }
 0x138   : > { %10304 = vst [vmem:[#allocation46_spill] sm:$0xff] %v6283_v14  ;;  %v420_v2 = vrot.slane %v6283_v14, 7  ;;  %v484_v1 = vrot.slane %v6283_v14, 5  ;;  %v673_v14 = vrot.slane %v523_v58, 2 }
 0x139   : > { %v6244_v63 = vpop.permute.xlu1 %1003  ;;  %837 = vrot.lane.b32.xlu0 %v6208_v42, %s5784_s25 }
 0x13a   : > { %v6303_v10 = vsel %vm373_vm0, %v10171_v35, %v420_v2  ;;  %v6310_v32 = vsel %vm373_vm0, %v420_v2, %v484_v1 }
 0x13b   : > { %1291 = vrot.lane.b32.xlu1 %v578_v30, %s5785_s26  ;;  %10305 = vst [vmem:[#allocation47_spill] sm:$0xff] %v6303_v10  ;;  %10306 = vst [vmem:[#allocation48_spill] sm:$0xff] %v6310_v32  ;;  %v10175_v4 = vrot.slane %v6303_v10, 1  ;;  %v720_v28 = vrot.slane %v6310_v32, 1  ;;  %v476_v10 = vrot.slane %v6071_v7, 5 }
 0x13d   : > { %v6260_v33 = vpop.permute.xlu1 %731  ;;  %1215 = vrot.lane.b32.xlu0 %v6250_v11, %s5786_s28  ;;  %v6328_v2 = vsel %vm563_vm1, %v10175_v4, %v720_v28 }
 0x13e   : > { %10307 = vst [vmem:[#allocation49_spill] sm:$0xff] %v6328_v2 }
 0x13f   : > { %1379 = vrot.lane.b32.xlu1 %v652_v50, %s5787_s8 }
 0x141   : > { %v6270_v23 = vpop.permute.xlu1 %1005  ;;  %931 = vrot.lane.b32.xlu0 %v6250_v11, %s5780_s12  ;;  %v653_v11 = vrot.slane %v519_v19, 2  ;;  %v6314_v19 = vsel %vm563_vm1, %v595_v47, %v597_v16  ;;  %v332_v16 = vrot.slane %v6060_v61, 1  ;;  %v396_v47 = vrot.slane %v6071_v7, 7 }
 0x143   : > { %735 = vrot.lane.b32.xlu1 %v576_v60, %s5782_s14  ;;  %v654_v12 = vsel %vm639_vm2, %v651_v43, %v653_v11  ;;  %v6331_v43 = vsel %vm639_vm2, %v671_v6, %v673_v14  ;;  %v395_v11 = vrot.slane %v6060_v61, 7 }
 0x145   : > { %v6279_v46 = vpop.permute.xlu1 %1099  ;;  %1305 = vrot.lane.b32.xlu0 %v6275_v52, %s5785_s26  ;;  %v6351_v14 = vsel %vm373_vm0, %v332_v16, %v395_v11 }
 0x146   : > { %10309 = vst [vmem:[#allocation51_spill] sm:$0xff] %v6351_v14 }
 0x147   : > { %1013 = vrot.lane.b32.xlu1 %v578_v30, %s5781_s29 }
 0x149   : > { %v6291_v60 = vpop.permute.xlu1 %733  ;;  %1027 = vrot.lane.b32.xlu0 %v6275_v52, %s5781_s29 }
 0x14b   : > { %1107 = vrot.lane.b32.xlu1 %v652_v50, %s5783_s16 }
 0x14d   : > { %v6305_v17 = vpop.permute.xlu1 %821  ;;  %1395 = vrot.lane.b32.xlu0 %v6297_v54, %s5787_s8 }
 0x14f   : > { %1381 = vrot.lane.b32.xlu1 %v654_v12, %s5787_s8  ;;  %v6318_v35 = vpop.permute.xlu0 %1285 }
 0x151   : > { %v6321_v40 = vpop.permute.xlu1 %1101  ;;  %1029 = vrot.lane.b32.xlu0 %v6314_v19, %s5781_s29 }
 0x153   : > { %737 = vrot.lane.b32.xlu1 %v578_v30, %s5782_s14  ;;  %v6334_v58 = vpop.permute.xlu0 %919  ;;  %v6354_v30 = vsel %vm373_vm0, %v395_v11, %v396_v47 }
 0x154   : > { %10308 = vst [vmem:[#allocation50_spill] sm:$0xff] %v6334_v58  ;;  %10310 = vst [vmem:[#allocation52_spill] sm:$0xff] %v6354_v30  ;;  %v600_v2 = vrot.slane %v6354_v30, 1  ;;  %v676_v18 = vrot.slane %v6354_v30, 2 }
 0x155   : > { %v6336_v1 = vpop.permute.xlu1 %823  ;;  %1397 = vrot.lane.b32.xlu0 %v6331_v43, %s5787_s8 }
 0x157   : > { %825 = vrot.lane.b32.xlu1 %v652_v50, %s5784_s25  ;;  %v6344_v28 = vpop.permute.xlu0 %1293  ;;  %v599_v50 = vrot.slane %v6351_v14, 1 }
 0x159   : > { %v6346_v6 = vpop.permute.xlu1 %1195  ;;  %841 = vrot.lane.b32.xlu0 %v6297_v54, %s5784_s25  ;;  %v6374_v32 = vsel %vm563_vm1, %v599_v50, %v600_v2  ;;  %v524_v50 = vsel %vm373_vm0, %v396_v47, %v476_v10 }
 0x15a   : > { %v678_v10 = vrot.slane %v524_v50, 2 }
 0x15b   : > { %1109 = vrot.lane.b32.xlu1 %v654_v12, %s5783_s16  ;;  %v6357_v4 = vpop.permute.xlu0 %1015 }
 0x15c   : > { %10311 = vst [vmem:[#allocation53_spill] sm:$0xff] %v6357_v4 }
 0x15d   : > { %v6359_v61 = vpop.permute.xlu1 %911  ;;  %1219 = vrot.lane.b32.xlu0 %v6351_v14, %s5786_s28 }
 0x15f   : > { %1203 = vrot.lane.b32.xlu1 %v6003_v38, %s5786_s28  ;;  %v6367_v16 = vpop.permute.xlu0 %1383  ;;  %v675_v38 = vrot.slane %v6351_v14, 2 }
 0x161   : > { %v6369_v11 = vpop.permute.xlu1 %1197  ;;  %935 = vrot.lane.b32.xlu0 %v6351_v14, %s5780_s12 }
 0x163   : > { %827 = vrot.lane.b32.xlu1 %v654_v12, %s5784_s25  ;;  %v6378_v34 = vpop.permute.xlu0 %1017  ;;  %v6392_v12 = vsel %vm639_vm2, %v675_v38, %v676_v18 }
 0x164   : > { %10312 = vst [vmem:[#allocation54_spill] sm:$0xff] %v6378_v34  ;;  %v602_v34 = vrot.slane %v524_v50, 1  ;;  %v399_v50 = vrot.slane %v6091_v20, 7 }
 0x165   : > { %v728_v25 = vpop.permute.xlu1 %727  ;;  %1309 = vrot.lane.b32.xlu0 %v6374_v32, %s5785_s26 }
 0x166   : > { %v6401_v58 = vsel %vm563_vm1, %v600_v2, %v602_v34  ;;  %v1466_v38 = vsel %vm1465_vm4, %v5979_v26, %v728_v25  ;;  %v6415_v34 = vsel %vm639_vm2, %v676_v18, %v678_v10  ;;  %v398_v18 = vrot.slane %v6083_v15, 7 }
 0x167   : > { %1205 = vrot.lane.b32.xlu1 %v6000_v37, %s5786_s28  ;;  %v6386_v4 = vpop.permute.xlu0 %1385  ;;  %10314 = vst [vmem:[#allocation56_spill] sm:$0xff] %v6415_v34 }
 0x169   : > { %v730_v7 = vpop.permute.xlu1 %729  ;;  %1031 = vrot.lane.b32.xlu0 %v6374_v32, %s5781_s29 }
 0x16b   : > { %921 = vrot.lane.b32.xlu1 %v6000_v37, %s5780_s12  ;;  %v6396_v14 = vpop.permute.xlu0 %829 }
 0x16c   : > { %10313 = vst [vmem:[#allocation55_spill] sm:$0xff] %v6396_v14 }
 0x16d   : > { %v818_v30 = vpop.permute.xlu1 %817  ;;  %1399 = vrot.lane.b32.xlu0 %v6392_v12, %s5787_s8 }
 0x16e   : > { %v6412_v14 = vsel %vm1496_vm5, %v1466_v38, %v818_v30  ;;  %v333_v30 = vrot.slane %v6083_v15, 1  ;;  %v6445_v15 = vsel %vm373_vm0, %v398_v18, %v399_v50 }
 0x16f   : > { %1295 = vrot.lane.b32.xlu1 %v6046_v55, %s5785_s26  ;;  %v6405_v47 = vpop.permute.xlu0 %1207  ;;  %v1528_v26 = vsel %vm1527_vm6, %v6412_v14, %v6224_v9  ;;  %10317 = vst [vmem:[#allocation59_spill] sm:$0xff] %v6445_v15 }
 0x170   : > { %v1561_v10 = vsel %vm1560_vm7, %v1528_v26, %v6244_v63  ;;  %v6442_v38 = vsel %vm373_vm0, %v333_v30, %v398_v18 }
 0x171   : > { %v820_v37 = vpop.permute.xlu1 %819  ;;  %1033 = vrot.lane.b32.xlu0 %v6401_v58, %s5781_s29  ;;  %10316 = vst [vmem:[#allocation58_spill] sm:$0xff] %v6442_v38  ;;  %v1594_v63 = vsel %vm1593_vm8, %v1561_v10, %v6279_v46  ;;  %v604_v18 = vrot.slane %v6442_v38, 1 }
 0x172   : > { %v1627_v30 = vsel %vm1626_vm9, %v1594_v63, %v6346_v6 }
 0x173   : > { %739 = vrot.lane.b32.xlu1 %v6018_v44, %s5782_s14  ;;  %v6419_v2 = vpop.permute.xlu0 %923  ;;  %v1660_v6 = vsel %vm1659_vm10, %v1627_v30, %v6318_v35  ;;  %v680_v30 = vrot.slane %v6442_v38, 2 }
 0x174   : > { %10315 = vst [vmem:[#allocation57_spill] sm:$0xff] %v6419_v2  ;;  %v605_v2 = vrot.slane %v6445_v15, 1 }
 0x175   : > { %v6424_v25 = vpop.permute.xlu1 %913  ;;  %1401 = vrot.lane.b32.xlu0 %v6415_v34, %s5787_s8 }
 0x177   : > { %1111 = vrot.lane.b32.xlu1 %v6036_v51, %s5783_s16  ;;  %v6433_v44 = vpop.permute.xlu0 %1297 }
 0x179   : > { %v6437_v9 = vpop.permute.xlu1 %1007  ;;  %845 = vrot.lane.b32.xlu0 %v6392_v12, %s5784_s25 }
 0x17b   : > { %741 = vrot.lane.b32.xlu1 %v6046_v55, %s5782_s14  ;;  %v6449_v51 = vpop.permute.xlu0 %1019  ;;  %v1467_v55 = vsel %vm1465_vm4, %v5982_v27, %v730_v7  ;;  %v6474_v27 = vsel %vm563_vm1, %v604_v18, %v605_v2  ;;  %v477_v7 = vrot.slane %v6091_v20, 5  ;;  %v681_v18 = vrot.slane %v6445_v15, 2 }
 0x17c   : > { %10318 = vst [vmem:[#allocation60_spill] sm:$0xff] %v6449_v51  ;;  %v6466_v46 = vsel %vm1496_vm5, %v1467_v55, %v820_v37 }
 0x17d   : > { %v1288_v26 = vpop.permute.xlu1 %1287  ;;  %1223 = vrot.lane.b32.xlu0 %v6442_v38, %s5786_s28  ;;  %v1529_v37 = vsel %vm1527_vm6, %v6466_v46, %v6236_v36  ;;  %v525_v36 = vsel %vm373_vm0, %v399_v50, %v477_v7 }
 0x17e   : > { %v1562_v35 = vsel %vm1560_vm7, %v1529_v37, %v6270_v23  ;;  %v6505_v23 = vsel %vm639_vm2, %v680_v30, %v681_v18  ;;  %v683_v20 = vrot.slane %v525_v36, 2 }
 0x17f   : > { %1113 = vrot.lane.b32.xlu1 %v6056_v59, %s5783_s16  ;;  %v6463_v51 = vpop.permute.xlu0 %1387 }
 0x181   : > { %v1376_v10 = vpop.permute.xlu1 %1375  ;;  %939 = vrot.lane.b32.xlu0 %v6442_v38, %s5780_s12 }
 0x182   : > { %v1693_v63 = vsel %vm1692_vm11, %v1660_v6, %v1376_v10  ;;  %v1595_v10 = vsel %vm1593_vm8, %v1562_v35, %v6321_v40 }
 0x183   : > { %831 = vrot.lane.b32.xlu1 %v6056_v59, %s5784_s25  ;;  %5395 = vmatprep.mubr.msk.f32.mxu0 %vm1730_vm12, %v1693_v63  ;;  %v6483_v55 = vpop.permute.xlu0 %1021  ;;  %v607_v63 = vrot.slane %v525_v36, 1  ;;  %v1628_v50 = vsel %vm1626_vm9, %v1595_v10, %v6369_v11  ;;  %v334_v10 = vrot.slane %v6107_v29, 1 }
 0x184   : > { %10319 = vst [vmem:[#allocation61_spill] sm:$0xff] %v6483_v55  ;;  %v1661_v7 = vsel %vm1659_vm10, %v1628_v50, %v1288_v26  ;;  %v6530_v26 = vsel %vm639_vm2, %v681_v18, %v683_v20  ;;  %v402_v20 = vrot.slane %v6122_v41, 7 }
 0x185   : > { %v6485_v34 = vpop.permute.xlu1 %1009  ;;  %1313 = vrot.lane.b32.xlu0 %v6474_v27, %s5785_s26  ;;  %v6518_v30 = vsel %vm563_vm1, %v605_v2, %v607_v63  ;;  %10321 = vst [vmem:[#allocation63_spill] sm:$0xff] %v6530_v26  ;;  %v401_v63 = vrot.slane %v6107_v29, 7 }
 0x187   : > { %1209 = vrot.lane.b32.xlu1 %v6080_v13, %s5786_s28  ;;  %v6495_v59 = vpop.permute.xlu0 %1389 }
 0x189   : > { %v6500_v6 = vpop.permute.xlu1 %1103  ;;  %1035 = vrot.lane.b32.xlu0 %v6474_v27, %s5781_s29 }
 0x18b   : > { %925 = vrot.lane.b32.xlu1 %v6080_v13, %s5780_s12  ;;  %v6509_v37 = vpop.permute.xlu0 %833 }
 0x18c   : > { %10320 = vst [vmem:[#allocation62_spill] sm:$0xff] %v6509_v37 }
 0x18d   : > { %v1378_v40 = vpop.permute.xlu1 %1377  ;;  %1403 = vrot.lane.b32.xlu0 %v6505_v23, %s5787_s8 }
 0x18e   : > { %v1694_v35 = vsel %vm1692_vm11, %v1661_v7, %v1378_v40  ;;  %v6557_v40 = vsel %vm373_vm0, %v401_v63, %v402_v20 }
 0x18f   : > { %1299 = vrot.lane.b32.xlu1 %v6139_v49, %s5785_s26  ;;  %5396 = vmatmul.mubr.msk.f32.vlgmr.msra.gmra.mrb[0].mxu0 %vm1730_vm12, %v1694_v35  ;;  %v6523_v38 = vpop.permute.xlu0 %1211  ;;  %10325 = vst [vmem:[#allocation67_spill] sm:$0xff] %v6557_v40  ;;  %v610_v29 = vrot.slane %v6557_v40, 1 }
 0x191   : > { %v6525_v11 = vpop.permute.xlu1 %1105  ;;  %1037 = vrot.lane.b32.xlu0 %v6518_v30, %s5781_s29 }
 0x193   : > { %743 = vrot.lane.b32.xlu1 %v6096_v21, %s5782_s14  ;;  %v6534_v2 = vpop.permute.xlu0 %927  ;;  %v6550_v21 = vsel %vm373_vm0, %v334_v10, %v401_v63 }
 0x194   : > { %10322 = vst [vmem:[#allocation64_spill] sm:$0xff] %v6534_v2  ;;  %10323 = vst [vmem:[#allocation65_spill] sm:$0xff] %v6550_v21  ;;  %v609_v10 = vrot.slane %v6550_v21, 1 }
 0x195   : > { %v1200_v36 = vpop.permute.xlu1 %1199  ;;  %1405 = vrot.lane.b32.xlu0 %v6530_v26, %s5787_s8  ;;  %v685_v26 = vrot.slane %v6550_v21, 2 }
 0x196   : > { %v6576_v13 = vsel %vm563_vm1, %v609_v10, %v610_v29 }
 0x197   : > { %1115 = vrot.lane.b32.xlu1 %v6127_v45, %s5783_s16  ;;  %v6542_v50 = vpop.permute.xlu0 %1301  ;;  %10327 = vst [vmem:[#allocation69_spill] sm:$0xff] %v6576_v13 }
 0x199   : > { %v6545_v18 = vpop.permute.xlu1 %915  ;;  %849 = vrot.lane.b32.xlu0 %v6505_v23, %s5784_s25 }
 0x19b   : > { %745 = vrot.lane.b32.xlu1 %v6139_v49, %s5782_s14  ;;  %v6554_v7 = vpop.permute.xlu0 %1023 }
 0x19c   : > { %10324 = vst [vmem:[#allocation66_spill] sm:$0xff] %v6554_v7  ;;  %v478_v7 = vrot.slane %v6122_v41, 5  ;;  %v1468_v41 = vsel %vm1465_vm4, %v5943_v5, %v6260_v33 }
 0x19d   : > { %v6559_v45 = vpop.permute.xlu1 %1201  ;;  %1227 = vrot.lane.b32.xlu0 %v6550_v21, %s5786_s28 }
 0x19e   : > { %v526_v10 = vsel %vm373_vm0, %v402_v20, %v478_v7 }
 0x19f   : > { %1117 = vrot.lane.b32.xlu1 %v6148_v56, %s5783_s16  ;;  %v6565_v35 = vpop.permute.xlu0 %1391 }
 0x1a1   : > { %v1290_v49 = vpop.permute.xlu1 %1289  ;;  %943 = vrot.lane.b32.xlu0 %v6550_v21, %s5780_s12  ;;  %v1499_v21 = vsel %vm1496_vm5, %v1468_v41, %v6305_v17 }
 0x1a3   : > { %835 = vrot.lane.b32.xlu1 %v6148_v56, %s5784_s25  ;;  %v6573_v63 = vpop.permute.xlu0 %1025  ;;  %v686_v56 = vrot.slane %v6557_v40, 2 }
 0x1a4   : > { %10326 = vst [vmem:[#allocation68_spill] sm:$0xff] %v6573_v63 }
 0x1a5   : > { %v6579_v2 = vpop.permute.xlu1 %917  ;;  %1317 = vrot.lane.b32.xlu0 %v6576_v13, %s5785_s26  ;;  %v6604_v40 = vsel %vm639_vm2, %v685_v26, %v686_v56 }
 0x1a7   : > { %1213 = vrot.lane.b32.xlu1 %v6167_v3, %s5786_s28  ;;  %v6585_v37 = vpop.permute.xlu0 %1393 }
 0x1a8   : > { %10328 = vst [vmem:[#allocation70_spill] sm:$0xff] %v6585_v37  ;;  %v612_v37 = vrot.slane %v526_v10, 1 }
 0x1a9   : > { %v6589_v63 = vpop.permute.xlu1 %1011  ;;  %1039 = vrot.lane.b32.xlu0 %v6576_v13, %s5781_s29  ;;  %v1530_v13 = vsel %vm1527_vm6, %v1499_v21, %v6359_v61  ;;  %v688_v61 = vrot.slane %v526_v10, 2 }
 0x1aa   : > { %v1563_v5 = vsel %vm1560_vm7, %v1530_v13, %v6437_v9  ;;  %v6620_v26 = vsel %vm563_vm1, %v610_v29, %v612_v37 }
 0x1ab   : > { %929 = vrot.lane.b32.xlu1 %v6167_v3, %s5780_s12  ;;  %v6599_v55 = vpop.permute.xlu0 %837  ;;  %v1596_v33 = vsel %vm1593_vm8, %v1563_v5, %v6500_v6  ;;  %v6632_v6 = vsel %vm639_vm2, %v686_v56, %v688_v61  ;;  %v1469_v56 = vsel %vm1465_vm4, %v5951_v8, %v6291_v60 }
 0x1ac   : > { %v1629_v17 = vsel %vm1626_vm9, %v1596_v33, %v1200_v36  ;;  %v335_v36 = vrot.slane %v6130_v48, 1  ;;  %v1500_v5 = vsel %vm1496_vm5, %v1469_v56, %v6336_v1 }
 0x1ad   : > { %v1292_v20 = vpop.permute.xlu1 %1291  ;;  %1407 = vrot.lane.b32.xlu0 %v6604_v40, %s5787_s8  ;;  %v1662_v21 = vsel %vm1659_vm10, %v1629_v17, %v1290_v49  ;;  %v405_v49 = vrot.slane %v6143_v53, 7  ;;  %v1531_v61 = vsel %vm1527_vm6, %v1500_v5, %v6424_v25 }
 0x1ae   : > { %v1564_v8 = vsel %vm1560_vm7, %v1531_v61, %v6485_v34 }
 0x1af   : > { %1303 = vrot.lane.b32.xlu1 %v6218_v62, %s5785_s26  ;;  %v6616_v41 = vpop.permute.xlu0 %1215 }
 0x1b1   : > { %v1380_v7 = vpop.permute.xlu1 %1379  ;;  %1041 = vrot.lane.b32.xlu0 %v6620_v26, %s5781_s29 }
 0x1b2   : > { %v1695_v13 = vsel %vm1692_vm11, %v1662_v21, %v1380_v7 }
 0x1b3   : > { %747 = vrot.lane.b32.xlu1 %v6185_v24, %s5782_s14  ;;  %5398 = vmatprep.mubr.msk.f32.mxu0 %vm1730_vm12, %v1695_v13  ;;  %v6629_v9 = vpop.permute.xlu0 %931  ;;  %v404_v24 = vrot.slane %v6130_v48, 7 }
 0x1b5   : > { %v6634_v29 = vpop.permute.xlu1 %735  ;;  %1409 = vrot.lane.b32.xlu0 %v6632_v6, %s5787_s8  ;;  %v6659_v33 = vsel %vm373_vm0, %v335_v36, %v404_v24  ;;  %v6662_v17 = vsel %vm373_vm0, %v404_v24, %v405_v49  ;;  %v479_v24 = vrot.slane %v6143_v53, 5 }
 0x1b6   : > { %10329 = vst [vmem:[#allocation71_spill] sm:$0xff] %v6659_v33  ;;  %v614_v25 = vrot.slane %v6659_v33, 1  ;;  %v615_v7 = vrot.slane %v6662_v17, 1  ;;  %v691_v5 = vrot.slane %v6662_v17, 2 }
 0x1b7   : > { %1119 = vrot.lane.b32.xlu1 %v6208_v42, %s5783_s16  ;;  %v6640_v37 = vpop.permute.xlu0 %1305 }
 0x1b9   : > { %v6645_v10 = vpop.permute.xlu1 %1013  ;;  %853 = vrot.lane.b32.xlu0 %v6604_v40, %s5784_s25 }
 0x1bb   : > { %749 = vrot.lane.b32.xlu1 %v6218_v62, %s5782_s14  ;;  %v6654_v42 = vpop.permute.xlu0 %1027  ;;  %v1597_v62 = vsel %vm1593_vm8, %v1564_v8, %v6525_v11  ;;  %v527_v8 = vsel %vm373_vm0, %v405_v49, %v479_v24 }
 0x1bc   : > { %v1630_v1 = vsel %vm1626_vm9, %v1597_v62, %v6559_v45  ;;  %v6690_v45 = vsel %vm563_vm1, %v614_v25, %v615_v7  ;;  %v617_v25 = vrot.slane %v527_v8, 1 }
 0x1bd   : > { %v1108_v21 = vpop.permute.xlu1 %1107  ;;  %1231 = vrot.lane.b32.xlu0 %v6659_v33, %s5786_s28  ;;  %v1663_v13 = vsel %vm1659_vm10, %v1630_v1, %v1292_v20 }
 0x1be   : > { %v6725_v24 = vsel %vm563_vm1, %v615_v7, %v617_v25 }
 0x1bf   : > { %1121 = vrot.lane.b32.xlu1 %v6229_v31, %s5783_s16  ;;  %v6674_v60 = vpop.permute.xlu0 %1395 }
 0x1c1   : > { %v1382_v36 = vpop.permute.xlu1 %1381  ;;  %947 = vrot.lane.b32.xlu0 %v6659_v33, %s5780_s12 }
 0x1c2   : > { %v1696_v34 = vsel %vm1692_vm11, %v1663_v13, %v1382_v36  ;;  %v1532_v36 = vsel %vm1527_vm6, %v6412_v14, %v6545_v18 }
 0x1c3   : > { %839 = vrot.lane.b32.xlu1 %v6229_v31, %s5784_s25  ;;  %5399 = vmatmul.mubr.msk.f32.gmra.mrb[2].mxu0 %vm1730_vm12, %v1696_v34  ;;  %v6687_v11 = vpop.permute.xlu0 %1029  ;;  %v690_v31 = vrot.slane %v6659_v33, 2  ;;  %v1565_v34 = vsel %vm1560_vm7, %v1532_v36, %v6589_v63  ;;  %v1533_v36 = vsel %vm1527_vm6, %v6466_v46, %v6579_v2  ;;  %v1470_v46 = vsel %vm1465_vm4, %v6180_v22, %v6634_v29  ;;  %v10331_v29 = vld [vmem:[#allocation50_spill] sm:$0xff] }
 0x1c4   : > { %v1598_v53 = vsel %vm1593_vm8, %v1565_v34, %v1108_v21 }
 0x1c5   : > { %v6693_v56 = vpop.permute.xlu1 %737  ;;  %1321 = vrot.lane.b32.xlu0 %v6690_v45, %s5785_s26  ;;  %v6711_v1 = vsel %vm639_vm2, %v690_v31, %v691_v5  ;;  %v693_v31 = vrot.slane %v527_v8, 2 }
 0x1c7   : > { %1217 = vrot.lane.b32.xlu1 %v6257_v39, %s5786_s28  ;;  %v6699_v20 = vpop.permute.xlu0 %1397  ;;  %v6740_v7 = vsel %vm639_vm2, %v691_v5, %v693_v31 }
 0x1c9   : > { %v826_v61 = vpop.permute.xlu1 %825  ;;  %1043 = vrot.lane.b32.xlu0 %v6690_v45, %s5781_s29 }
 0x1cb   : > { %933 = vrot.lane.b32.xlu1 %v6257_v39, %s5780_s12  ;;  %v6708_v62 = vpop.permute.xlu0 %841 }
 0x1cd   : > { %v1110_v13 = vpop.permute.xlu1 %1109  ;;  %1411 = vrot.lane.b32.xlu0 %v6711_v1, %s5787_s8 }
 0x1cf   : > { %1307 = vrot.lane.b32.xlu1 %v6314_v19, %s5785_s26  ;;  %v6720_v49 = vpop.permute.xlu0 %1219 }
 0x1d1   : > { %v1204_v48 = vpop.permute.xlu1 %1203  ;;  %1045 = vrot.lane.b32.xlu0 %v6725_v24, %s5781_s29 }
 0x1d2   : > { %v1631_v14 = vsel %vm1626_vm9, %v1598_v53, %v1204_v48  ;;  %v336_v53 = vrot.slane %v6151_v57, 1 }
 0x1d3   : > { %v1664_v18 = vsel %vm1659_vm10, %v1631_v14, %v6344_v28  ;;  %751 = vrot.lane.b32.xlu1 %v6275_v52, %s5782_s14  ;;  %v6735_v33 = vpop.permute.xlu0 %935  ;;  %v407_v52 = vrot.slane %v6151_v57, 7  ;;  %v408_v28 = vrot.slane %v6159_v0, 7 }
 0x1d4   : > { %v1697_v63 = vsel %vm1692_vm11, %v1664_v18, %v6367_v16 }
 0x1d5   : > { %v6742_v21 = vpop.permute.xlu1 %827  ;;  %5401 = vmatprep.mubr.msk.f32.mxu0 %vm1730_vm12, %v1697_v63  ;;  %1413 = vrot.lane.b32.xlu0 %v6740_v7, %s5787_s8  ;;  %v6761_v8 = vsel %vm373_vm0, %v336_v53, %v407_v52 }
 0x1d6   : > { %10330 = vst [vmem:[#allocation72_spill] sm:$0xff] %v6761_v8  ;;  %v619_v14 = vrot.slane %v6761_v8, 1 }
 0x1d7   : > { %1123 = vrot.lane.b32.xlu1 %v6297_v54, %s5783_s16  ;;  %v6749_v48 = vpop.permute.xlu0 %1309  ;;  %v6764_v54 = vsel %vm373_vm0, %v407_v52, %v408_v28 }
 0x1d8   : > { %v620_v18 = vrot.slane %v6764_v54, 1 }
 0x1d9   : > { %v1206_v16 = vpop.permute.xlu1 %1205  ;;  %857 = vrot.lane.b32.xlu0 %v6711_v1, %s5784_s25 }
 0x1db   : > { %753 = vrot.lane.b32.xlu1 %v6314_v19, %s5782_s14  ;;  %v6758_v5 = vpop.permute.xlu0 %1031  ;;  %v1566_v19 = vsel %vm1560_vm7, %v1533_v36, %v6645_v10  ;;  %v1501_v10 = vsel %vm1496_vm5, %v1470_v46, %v826_v61  ;;  %v480_v36 = vrot.slane %v6159_v0, 5 }
 0x1dc   : > { %v1599_v31 = vsel %vm1593_vm8, %v1566_v19, %v1110_v13  ;;  %v1534_v61 = vsel %vm1527_vm6, %v1501_v10, %v10331_v29 }
 0x1dd   : > { %v6766_v25 = vpop.permute.xlu1 %921  ;;  %1235 = vrot.lane.b32.xlu0 %v6761_v8, %s5786_s28  ;;  %v1632_v63 = vsel %vm1626_vm9, %v1599_v31, %v1206_v16  ;;  %v6798_v16 = vsel %vm563_vm1, %v619_v14, %v620_v18  ;;  %v696_v31 = vrot.slane %v6764_v54, 2  ;;  %v528_v46 = vsel %vm373_vm0, %v408_v28, %v480_v36 }
 0x1df   : > { %1125 = vrot.lane.b32.xlu1 %v6331_v43, %s5783_s16  ;;  %v6777_v34 = vpop.permute.xlu0 %1399 }
 0x1e1   : > { %v1296_v53 = vpop.permute.xlu1 %1295  ;;  %951 = vrot.lane.b32.xlu0 %v6761_v8, %s5780_s12 }
 0x1e2   : > { %v1665_v2 = vsel %vm1659_vm10, %v1632_v63, %v1296_v53  ;;  %v10333_v63 = vld [vmem:[#allocation53_spill] sm:$0xff] }
 0x1e3   : > { %843 = vrot.lane.b32.xlu1 %v6331_v43, %s5784_s25  ;;  %v6792_v13 = vpop.permute.xlu0 %1033  ;;  %v1698_v52 = vsel %vm1692_vm11, %v1665_v2, %v6386_v4  ;;  %v10332_v43 = vld [vmem:[#allocation52_spill] sm:$0xff]  ;;  %v695_v4 = vrot.slane %v6761_v8, 2  ;;  %v1567_v53 = vsel %vm1560_vm7, %v1534_v61, %v10333_v63  ;;  %v622_v63 = vrot.slane %v528_v46, 1 }
 0x1e4   : > { %5402 = vmatmul.mubr.msk.f32.gmra.mrb[4].mxu0 %vm1730_vm12, %v1698_v52 }
 0x1e5   : > { %v740_v22 = vpop.permute.xlu1 %739  ;;  %1325 = vrot.lane.b32.xlu0 %v6798_v16, %s5785_s26  ;;  %v6824_v29 = vsel %vm639_vm2, %v695_v4, %v696_v31  ;;  %v6840_v36 = vsel %vm563_vm1, %v620_v18, %v622_v63 }
 0x1e7   : > { %1221 = vrot.lane.b32.xlu1 %v10332_v43, %s5786_s28  ;;  %v6807_v19 = vpop.permute.xlu0 %1401 }
 0x1e9   : > { %v1112_v14 = vpop.permute.xlu1 %1111  ;;  %1047 = vrot.lane.b32.xlu0 %v6798_v16, %s5781_s29 }
 0x1ea   : > { %v1600_v2 = vsel %vm1593_vm8, %v1567_v53, %v1112_v14 }
 0x1eb   : > { %v1633_v10 = vsel %vm1626_vm9, %v1600_v2, %v6405_v47  ;;  %937 = vrot.lane.b32.xlu1 %v10332_v43, %s5780_s12  ;;  %v6821_v52 = vpop.permute.xlu0 %845 }
 0x1ec   : > { %10334 = vst [vmem:[#allocation50_spill] sm:$0xff] %v6821_v52  ;;  %v1666_v61 = vsel %vm1659_vm10, %v1633_v10, %v6433_v44  ;;  %v698_v44 = vrot.slane %v528_v46, 2  ;;  %v10336_v46 = vld [vmem:[#allocation37_spill] sm:$0xff] }
 0x1ed   : > { %v6828_v0 = vpop.permute.xlu1 %741  ;;  %1415 = vrot.lane.b32.xlu0 %v6824_v29, %s5787_s8  ;;  %v1699_v47 = vsel %vm1692_vm11, %v1666_v61, %v6463_v51  ;;  %v337_v2 = vrot.slane %v10336_v46, 1  ;;  %v410_v10 = vrot.slane %v10336_v46, 7 }
 0x1ee   : > { %5404 = vmatprep.mubr.msk.f32.mxu0 %vm1730_vm12, %v1699_v47  ;;  %v6849_v51 = vsel %vm639_vm2, %v696_v31, %v698_v44  ;;  %v10338_v31 = vld [vmem:[#allocation39_spill] sm:$0xff] }
 0x1ef   : > { %1311 = vrot.lane.b32.xlu1 %v6401_v58, %s5785_s26  ;;  %v6837_v28 = vpop.permute.xlu0 %1223  ;;  %v1471_v47 = vsel %vm1465_vm4, %v10338_v31, %v6693_v56  ;;  %v6876_v57 = vsel %vm373_vm0, %v337_v2, %v410_v10  ;;  %v10341_v56 = vld [vmem:[#allocation54_spill] sm:$0xff] }
 0x1f0   : > { %v1502_v44 = vsel %vm1496_vm5, %v1471_v47, %v6742_v21  ;;  %10340 = vst [vmem:[#allocation73_spill] sm:$0xff] %v6876_v57 }
 0x1f1   : > { %v1114_v4 = vpop.permute.xlu1 %1113  ;;  %1049 = vrot.lane.b32.xlu0 %v6840_v36, %s5781_s29  ;;  %v1535_v46 = vsel %vm1527_vm6, %v1502_v44, %v6766_v25  ;;  %v10343_v25 = vld [vmem:[#allocation17_spill] sm:$0xff] }
 0x1f2   : > { %v1568_v21 = vsel %vm1560_vm7, %v1535_v46, %v10341_v56  ;;  %v1472_v2 = vsel %vm1465_vm4, %v10343_v25, %v740_v22  ;;  %v10344_v56 = vld [vmem:[#allocation55_spill] sm:$0xff] }
 0x1f3   : > { %755 = vrot.lane.b32.xlu1 %v6374_v32, %s5782_s14  ;;  %v6846_v14 = vpop.permute.xlu0 %939  ;;  %v10337_v32 = vld [vmem:[#allocation38_spill] sm:$0xff]  ;;  %v1601_v47 = vsel %vm1593_vm8, %v1568_v21, %v1114_v4  ;;  %v1503_v52 = vsel %vm1496_vm5, %v1472_v2, %v10344_v56 }
 0x1f4   : > { %10335 = vst [vmem:[#allocation53_spill] sm:$0xff] %v6846_v14  ;;  %v411_v61 = vrot.slane %v10337_v32, 7  ;;  %v481_v21 = vrot.slane %v10337_v32, 5 }
 0x1f5   : > { %v6851_v53 = vpop.permute.xlu1 %831  ;;  %1417 = vrot.lane.b32.xlu0 %v6849_v51, %s5787_s8 }
 0x1f6   : > { %v6879_v8 = vsel %vm373_vm0, %v410_v10, %v411_v61  ;;  %v624_v10 = vrot.slane %v6876_v57, 1  ;;  %v529_v56 = vsel %vm373_vm0, %v411_v61, %v481_v21 }
 0x1f7   : > { %1127 = vrot.lane.b32.xlu1 %v6392_v12, %s5783_s16  ;;  %v6857_v18 = vpop.permute.xlu0 %1313  ;;  %v625_v44 = vrot.slane %v6879_v8, 1  ;;  %v701_v2 = vrot.slane %v6879_v8, 2 }
 0x1f9   : > { %v1210_v63 = vpop.permute.xlu1 %1209  ;;  %861 = vrot.lane.b32.xlu0 %v6824_v29, %s5784_s25 }
 0x1fb   : > { %757 = vrot.lane.b32.xlu1 %v6401_v58, %s5782_s14  ;;  %v6871_v12 = vpop.permute.xlu0 %1035  ;;  %v10342_v58 = vld [vmem:[#allocation56_spill] sm:$0xff] }
 0x1fc   : > { %10339 = vst [vmem:[#allocation39_spill] sm:$0xff] %v6871_v12  ;;  %v1634_v12 = vsel %vm1626_vm9, %v1601_v47, %v1210_v63  ;;  %v6910_v63 = vsel %vm563_vm1, %v624_v10, %v625_v44  ;;  %v10346_v10 = vld [vmem:[#allocation60_spill] sm:$0xff] }
 0x1fd   : > { %v6881_v43 = vpop.permute.xlu1 %925  ;;  %1239 = vrot.lane.b32.xlu0 %v6876_v57, %s5786_s28 }
 0x1ff   : > { %1129 = vrot.lane.b32.xlu1 %v10342_v58, %s5783_s16  ;;  %v6889_v31 = vpop.permute.xlu0 %1403 }
 0x201   : > { %v1300_v14 = vpop.permute.xlu1 %1299  ;;  %955 = vrot.lane.b32.xlu0 %v6876_v57, %s5780_s12 }
 0x202   : > { %v1667_v46 = vsel %vm1659_vm10, %v1634_v12, %v1300_v14  ;;  %v10345_v14 = vld [vmem:[#allocation57_spill] sm:$0xff] }
 0x203   : > { %847 = vrot.lane.b32.xlu1 %v10342_v58, %s5784_s25  ;;  %v6904_v22 = vpop.permute.xlu0 %1037  ;;  %v1700_v4 = vsel %vm1692_vm11, %v1667_v46, %v6495_v59  ;;  %v1536_v12 = vsel %vm1527_vm6, %v1503_v52, %v10345_v14  ;;  %v700_v59 = vrot.slane %v6876_v57, 2 }
 0x204   : > { %5405 = vmatmul.mubr.msk.f32.gmra.mrb[6].mxu0 %vm1730_vm12, %v1700_v4  ;;  %v1569_v46 = vsel %vm1560_vm7, %v1536_v12, %v10346_v10  ;;  %v627_v12 = vrot.slane %v529_v56, 1 }
 0x205   : > { %v744_v25 = vpop.permute.xlu1 %743  ;;  %1329 = vrot.lane.b32.xlu0 %v6910_v63, %s5785_s26  ;;  %v6934_v14 = vsel %vm639_vm2, %v700_v59, %v701_v2 }
 0x207   : > { %1225 = vrot.lane.b32.xlu1 %v6445_v15, %s5786_s28  ;;  %v6919_v58 = vpop.permute.xlu0 %1405 }
 0x209   : > { %v1116_v47 = vpop.permute.xlu1 %1115  ;;  %1051 = vrot.lane.b32.xlu0 %v6910_v63, %s5781_s29 }
 0x20a   : > { %v1602_v52 = vsel %vm1593_vm8, %v1569_v46, %v1116_v47 }
 0x20b   : > { %v1635_v4 = vsel %vm1626_vm9, %v1602_v52, %v6523_v38  ;;  %941 = vrot.lane.b32.xlu1 %v6445_v15, %s5780_s12  ;;  %v6944_v21 = vpop.permute.xlu0 %849  ;;  %v6950_v38 = vsel %vm563_vm1, %v625_v44, %v627_v12  ;;  %v10349_v44 = vld [vmem:[#allocation40_spill] sm:$0xff]  ;;  %v10350_v52 = vld [vmem:[#allocation41_spill] sm:$0xff] }
 0x20c   : > { %v1668_v32 = vsel %vm1659_vm10, %v1635_v4, %v6542_v50  ;;  %10347 = vst [vmem:[#allocation54_spill] sm:$0xff] %v6944_v21  ;;  %v703_v50 = vrot.slane %v529_v56, 2  ;;  %v338_v46 = vrot.slane %v10349_v44, 1  ;;  %v413_v56 = vrot.slane %v10349_v44, 7 }
 0x20d   : > { %v6938_v10 = vpop.permute.xlu1 %745  ;;  %1419 = vrot.lane.b32.xlu0 %v6934_v14, %s5787_s8  ;;  %v1701_v61 = vsel %vm1692_vm11, %v1668_v32, %v6565_v35  ;;  %v414_v4 = vrot.slane %v10350_v52, 7 }
 0x20e   : > { %5407 = vmatprep.mubr.msk.f32.mxu0 %vm1730_vm12, %v1701_v61  ;;  %v6959_v35 = vsel %vm639_vm2, %v701_v2, %v703_v50  ;;  %v10351_v2 = vld [vmem:[#allocation16_spill] sm:$0xff]  ;;  %v6984_v44 = vsel %vm373_vm0, %v338_v46, %v413_v56 }
 0x20f   : > { %1315 = vrot.lane.b32.xlu1 %v6518_v30, %s5785_s26  ;;  %v6956_v47 = vpop.permute.xlu0 %1227  ;;  %10348 = vst [vmem:[#allocation56_spill] sm:$0xff] %v6959_v35  ;;  %v1473_v12 = vsel %vm1465_vm4, %v10351_v2, %v6828_v0  ;;  %10353 = vst [vmem:[#allocation55_spill] sm:$0xff] %v6984_v44  ;;  %v6987_v57 = vsel %vm373_vm0, %v413_v56, %v414_v4  ;;  %v10354_v0 = vld [vmem:[#allocation61_spill] sm:$0xff]  ;;  %v629_v56 = vrot.slane %v6984_v44, 1 }
 0x210   : > { %v1504_v50 = vsel %vm1496_vm5, %v1473_v12, %v6851_v53  ;;  %v10355_v53 = vld [vmem:[#allocation63_spill] sm:$0xff] }
 0x211   : > { %v1118_v59 = vpop.permute.xlu1 %1117  ;;  %1053 = vrot.lane.b32.xlu0 %v6950_v38, %s5781_s29 }
 0x213   : > { %759 = vrot.lane.b32.xlu1 %v6474_v27, %s5782_s14  ;;  %v6975_v61 = vpop.permute.xlu0 %943 }
 0x214   : > { %10352 = vst [vmem:[#allocation17_spill] sm:$0xff] %v6975_v61 }
 0x215   : > { %v6961_v32 = vpop.permute.xlu1 %835  ;;  %1421 = vrot.lane.b32.xlu0 %v6959_v35, %s5787_s8 }
 0x217   : > { %1131 = vrot.lane.b32.xlu1 %v6505_v23, %s5783_s16  ;;  %v1537_v23 = vsel %vm1527_vm6, %v1504_v50, %v6881_v43  ;;  %v6998_v46 = vpop.permute.xlu0 %1317  ;;  %v630_v50 = vrot.slane %v6987_v57, 1 }
 0x218   : > { %v1570_v2 = vsel %vm1560_vm7, %v1537_v23, %v10354_v0  ;;  %v10357_v0 = vld [vmem:[#allocation62_spill] sm:$0xff] }
 0x219   : > { %v1214_v27 = vpop.permute.xlu1 %1213  ;;  %865 = vrot.lane.b32.xlu0 %v6934_v14, %s5784_s25  ;;  %v1603_v43 = vsel %vm1593_vm8, %v1570_v2, %v1118_v59  ;;  %v7014_v2 = vsel %vm563_vm1, %v629_v56, %v630_v50 }
 0x21a   : > { %v1636_v61 = vsel %vm1626_vm9, %v1603_v43, %v1214_v27  ;;  %10359 = vst [vmem:[#allocation57_spill] sm:$0xff] %v7014_v2  ;;  %v482_v27 = vrot.slane %v10350_v52, 5  ;;  %v705_v43 = vrot.slane %v6984_v44, 2 }
 0x21b   : > { %761 = vrot.lane.b32.xlu1 %v6518_v30, %s5782_s14  ;;  %v10356_v30 = vld [vmem:[#allocation26_spill] sm:$0xff] }
 0x21c   : > { %v1474_v12 = vsel %vm1465_vm4, %v10356_v30, %v744_v25  ;;  %v10358_v25 = vld [vmem:[#allocation70_spill] sm:$0xff] }
 0x21d   : > { %v930_v15 = vpop.permute.xlu1 %929  ;;  %1243 = vrot.lane.b32.xlu0 %v6984_v44, %s5786_s28  ;;  %v1505_v35 = vsel %vm1496_vm5, %v1474_v12, %v10357_v0  ;;  %v10362_v0 = vld [vmem:[#allocation66_spill] sm:$0xff] }
 0x21f   : > { %1133 = vrot.lane.b32.xlu1 %v10355_v53, %s5783_s16 }
 0x221   : > { %v1304_v21 = vpop.permute.xlu1 %1303  ;;  %959 = vrot.lane.b32.xlu0 %v6984_v44, %s5780_s12 }
 0x222   : > { %v1669_v23 = vsel %vm1659_vm10, %v1636_v61, %v1304_v21  ;;  %v7019_v21 = vpop.permute.xlu0 %1039  ;;  %v10360_v61 = vld [vmem:[#allocation64_spill] sm:$0xff] }
 0x223   : > { %851 = vrot.lane.b32.xlu1 %v10355_v53, %s5784_s25  ;;  %v1702_v59 = vsel %vm1692_vm11, %v1669_v23, %v10358_v25  ;;  %v1538_v12 = vsel %vm1527_vm6, %v1505_v35, %v10360_v61  ;;  %v10361_v53 = vld [vmem:[#allocation67_spill] sm:$0xff]  ;;  %v706_v23 = vrot.slane %v6987_v57, 2 }
 0x224   : > { %5408 = vmatmul.mubr.msk.f32.gmra.mrb[8].mxu0 %vm1730_vm12, %v1702_v59  ;;  %v1571_v25 = vsel %vm1560_vm7, %v1538_v12, %v10362_v0  ;;  %v530_v59 = vsel %vm373_vm0, %v414_v4, %v482_v27 }
 0x225   : > { %v748_v30 = vpop.permute.xlu1 %747  ;;  %1333 = vrot.lane.b32.xlu0 %v7014_v2, %s5785_s26  ;;  %v7040_v44 = vsel %vm639_vm2, %v705_v43, %v706_v23  ;;  %v632_v0 = vrot.slane %v530_v59, 1  ;;  %v708_v4 = vrot.slane %v530_v59, 2  ;;  %v10364_v43 = vld [vmem:[#allocation69_spill] sm:$0xff] }
 0x226   : > { %v7037_v61 = vpop.permute.xlu0 %1407 }
 0x227   : > { %1229 = vrot.lane.b32.xlu1 %v10361_v53, %s5786_s28 }
 0x229   : > { %v1120_v56 = vpop.permute.xlu1 %1119  ;;  %1055 = vrot.lane.b32.xlu0 %v7014_v2, %s5781_s29 }
 0x22a   : > { %v1604_v52 = vsel %vm1593_vm8, %v1571_v25, %v1120_v56 }
 0x22b   : > { %v1637_v35 = vsel %vm1626_vm9, %v1604_v52, %v6616_v41  ;;  %945 = vrot.lane.b32.xlu1 %v10361_v53, %s5780_s12  ;;  %v7054_v52 = vsel %vm563_vm1, %v630_v50, %v632_v0  ;;  %v10366_v50 = vld [vmem:[#allocation42_spill] sm:$0xff] }
 0x22c   : > { %v1670_v12 = vsel %vm1659_vm10, %v1637_v35, %v6640_v37  ;;  %v7058_v37 = vpop.permute.xlu0 %1041  ;;  %v339_v25 = vrot.slane %v10366_v50, 1  ;;  %v416_v59 = vrot.slane %v10366_v50, 7 }
 0x22d   : > { %v7044_v2 = vpop.permute.xlu1 %749  ;;  %1423 = vrot.lane.b32.xlu0 %v7040_v44, %s5787_s8  ;;  %v1703_v41 = vsel %vm1692_vm11, %v1670_v12, %v6674_v60  ;;  %10363 = vst [vmem:[#allocation60_spill] sm:$0xff] %v7058_v37  ;;  %v7063_v60 = vsel %vm639_vm2, %v706_v23, %v708_v4  ;;  %v10367_v12 = vld [vmem:[#allocation44_spill] sm:$0xff]  ;;  %v10368_v23 = vld [vmem:[#allocation27_spill] sm:$0xff] }
 0x22e   : > { %5410 = vmatprep.mubr.msk.f32.mxu0 %vm1730_vm12, %v1703_v41  ;;  %10365 = vst [vmem:[#allocation16_spill] sm:$0xff] %v7063_v60  ;;  %v417_v0 = vrot.slane %v10367_v12, 7  ;;  %v1475_v4 = vsel %vm1465_vm4, %v10368_v23, %v6938_v10  ;;  %v7087_v50 = vsel %vm373_vm0, %v339_v25, %v416_v59  ;;  %v10369_v10 = vld [vmem:[#allocation68_spill] sm:$0xff] }
 0x22f   : > { %1319 = vrot.lane.b32.xlu1 %v6620_v26, %s5785_s26 }
 0x230   : > { %v7073_v35 = vpop.permute.xlu0 %1409  ;;  %v7090_v53 = vsel %vm373_vm0, %v416_v59, %v417_v0  ;;  %v634_v59 = vrot.slane %v7087_v50, 1 }
 0x231   : > { %v1122_v27 = vpop.permute.xlu1 %1121  ;;  %1057 = vrot.lane.b32.xlu0 %v7054_v52, %s5781_s29  ;;  %v635_v23 = vrot.slane %v7090_v53, 1 }
 0x233   : > { %763 = vrot.lane.b32.xlu1 %v10364_v43, %s5782_s14  ;;  %v1506_v43 = vsel %vm1496_vm5, %v1475_v4, %v6961_v32 }
 0x234   : > { %v7094_v37 = vpop.permute.xlu0 %853 }
 0x235   : > { %v7065_v56 = vpop.permute.xlu1 %839  ;;  %1425 = vrot.lane.b32.xlu0 %v7063_v60, %s5787_s8 }
 0x237   : > { %1135 = vrot.lane.b32.xlu1 %v6604_v40, %s5783_s16  ;;  %v1539_v40 = vsel %vm1527_vm6, %v1506_v43, %v930_v15 }
 0x238   : > { %v1572_v32 = vsel %vm1560_vm7, %v1539_v40, %v10369_v10 }
 0x239   : > { %v1218_v41 = vpop.permute.xlu1 %1217  ;;  %869 = vrot.lane.b32.xlu0 %v7040_v44, %s5784_s25  ;;  %v1605_v25 = vsel %vm1593_vm8, %v1572_v32, %v1122_v27  ;;  %v7115_v27 = vpop.permute.xlu0 %1231  ;;  %v483_v32 = vrot.slane %v10367_v12, 5 }
 0x23a   : > { %v1638_v4 = vsel %vm1626_vm9, %v1605_v25, %v1218_v41  ;;  %v7119_v41 = vsel %vm563_vm1, %v634_v59, %v635_v23 }
 0x23b   : > { %765 = vrot.lane.b32.xlu1 %v6620_v26, %s5782_s14  ;;  %v10370_v26 = vld [vmem:[#allocation36_spill] sm:$0xff]  ;;  %v531_v59 = vsel %vm373_vm0, %v417_v0, %v483_v32 }
 0x23c   : > { %v1476_v15 = vsel %vm1465_vm4, %v10370_v26, %v748_v30 }
 0x23d   : > { %v934_v60 = vpop.permute.xlu1 %933  ;;  %1247 = vrot.lane.b32.xlu0 %v7087_v50, %s5786_s28  ;;  %v1507_v10 = vsel %vm1496_vm5, %v1476_v15, %v6599_v55 }
 0x23e   : > { %v1540_v55 = vsel %vm1527_vm6, %v1507_v10, %v6629_v9  ;;  %v637_v10 = vrot.slane %v531_v59, 1 }
 0x23f   : > { %1137 = vrot.lane.b32.xlu1 %v6632_v6, %s5783_s16  ;;  %v1573_v25 = vsel %vm1560_vm7, %v1540_v55, %v6654_v42 }
 0x240   : > { %v7159_v32 = vsel %vm563_vm1, %v635_v23, %v637_v10  ;;  %v10371_v23 = vld [vmem:[#allocation45_spill] sm:$0xff] }
 0x241   : > { %v1308_v43 = vpop.permute.xlu1 %1307  ;;  %963 = vrot.lane.b32.xlu0 %v7087_v50, %s5780_s12 }
 0x242   : > { %v1671_v40 = vsel %vm1659_vm10, %v1638_v4, %v1308_v43  ;;  %v7135_v4 = vpop.permute.xlu0 %947 }
 0x243   : > { %855 = vrot.lane.b32.xlu1 %v6632_v6, %s5784_s25  ;;  %v1704_v30 = vsel %vm1692_vm11, %v1671_v40, %v6699_v20  ;;  %v710_v6 = vrot.slane %v7087_v50, 2  ;;  %v711_v20 = vrot.slane %v7090_v53, 2 }
 0x244   : > { %5411 = vmatmul.mubr.msk.f32.gmra.mrb[10].mxu0 %vm1730_vm12, %v1704_v30 }
 0x245   : > { %v752_v26 = vpop.permute.xlu1 %751  ;;  %1337 = vrot.lane.b32.xlu0 %v7119_v41, %s5785_s26  ;;  %v7143_v40 = vsel %vm639_vm2, %v710_v6, %v711_v20 }
 0x247   : > { %1233 = vrot.lane.b32.xlu1 %v6662_v17, %s5786_s28 }
 0x249   : > { %v1124_v15 = vpop.permute.xlu1 %1123  ;;  %1059 = vrot.lane.b32.xlu0 %v7119_v41, %s5781_s29 }
 0x24a   : > { %v1606_v9 = vsel %vm1593_vm8, %v1573_v25, %v1124_v15  ;;  %v340_v25 = vrot.slane %v10371_v23, 1 }
 0x24b   : > { %v1639_v43 = vsel %vm1626_vm9, %v1606_v9, %v6720_v49  ;;  %949 = vrot.lane.b32.xlu1 %v6662_v17, %s5780_s12  ;;  %v7156_v49 = vpop.permute.xlu0 %1321 }
 0x24c   : > { %v1672_v42 = vsel %vm1659_vm10, %v1639_v43, %v6749_v48  ;;  %v713_v48 = vrot.slane %v531_v59, 2 }
 0x24d   : > { %v7147_v30 = vpop.permute.xlu1 %753  ;;  %1427 = vrot.lane.b32.xlu0 %v7143_v40, %s5787_s8  ;;  %v1705_v0 = vsel %vm1692_vm11, %v1672_v42, %v6777_v34 }
 0x24e   : > { %5413 = vmatprep.mubr.msk.f32.mxu0 %vm1730_vm12, %v1705_v0  ;;  %v7166_v34 = vsel %vm639_vm2, %v711_v20, %v713_v48 }
 0x24f   : > { %1323 = vrot.lane.b32.xlu1 %v6725_v24, %s5785_s26  ;;  %v7172_v15 = vpop.permute.xlu0 %1043 }
 0x251   : > { %v1126_v55 = vpop.permute.xlu1 %1125  ;;  %1061 = vrot.lane.b32.xlu0 %v7159_v32, %s5781_s29 }
 0x253   : > { %767 = vrot.lane.b32.xlu1 %v6690_v45, %s5782_s14  ;;  %v1477_v45 = vsel %vm1465_vm4, %v6167_v3, %v7044_v2  ;;  %v7187_v43 = vpop.permute.xlu0 %1411  ;;  %v10373_v2 = vld [vmem:[#allocation43_spill] sm:$0xff] }
 0x254   : > { %v1508_v20 = vsel %vm1496_vm5, %v1477_v45, %v7065_v56 }
 0x255   : > { %v7168_v6 = vpop.permute.xlu1 %843  ;;  %1429 = vrot.lane.b32.xlu0 %v7166_v34, %s5787_s8  ;;  %v1541_v9 = vsel %vm1527_vm6, %v1508_v20, %v934_v60 }
 0x256   : > { %v1574_v3 = vsel %vm1560_vm7, %v1541_v9, %v6687_v11 }
 0x257   : > { %1139 = vrot.lane.b32.xlu1 %v6711_v1, %s5783_s16  ;;  %v10372_v1 = vrot.slane %v10371_v23, 7  ;;  %v1607_v60 = vsel %vm1593_vm8, %v1574_v3, %v1126_v55 }
 0x259   : > { %v1222_v59 = vpop.permute.xlu1 %1221  ;;  %873 = vrot.lane.b32.xlu0 %v7143_v40, %s5784_s25  ;;  %v516_v42 = vsel %vm373_vm0, %v340_v25, %v10372_v1  ;;  %v7202_v25 = vpop.permute.xlu0 %1045  ;;  %v10374_v1 = vld [vmem:[#allocation47_spill] sm:$0xff] }
 0x25a   : > { %v717_v56 = vrot.slane %v516_v42, 1  ;;  %v1640_v0 = vsel %vm1626_vm9, %v1607_v60, %v1222_v59  ;;  %v10375_v3 = vrot.slane %v10374_v1, 1  ;;  %v722_v60 = vrot.slane %v516_v42, 2 }
 0x25b   : > { %769 = vrot.lane.b32.xlu1 %v6725_v24, %s5782_s14  ;;  %v1478_v24 = vsel %vm1465_vm4, %v10373_v2, %v752_v26 }
 0x25c   : > { %v1509_v11 = vsel %vm1496_vm5, %v1478_v24, %v6708_v62  ;;  %v719_v62 = vsel %vm563_vm1, %v717_v56, %v10375_v3 }
 0x25d   : > { %v938_v10 = vpop.permute.xlu1 %937  ;;  %1251 = vrot.lane.b32.xlu0 %v516_v42, %s5786_s28 }
 0x25f   : > { %1141 = vrot.lane.b32.xlu1 %v6740_v7, %s5783_s16 }
 0x261   : > { %v1312_v48 = vpop.permute.xlu1 %1311  ;;  %967 = vrot.lane.b32.xlu0 %v516_v42, %s5780_s12 }
 0x262   : > { %v1673_v45 = vsel %vm1659_vm10, %v1640_v0, %v1312_v48  ;;  %v7205_v20 = vpop.f32.mrb[0].mxu0  ;;  %v723_v0 = vrot.slane %v10374_v1, 2 }
 0x263   : > { %v2057_v26 = vsel %vm1496_vm5, %v7205_v20, 0.0  ;;  %859 = vrot.lane.b32.xlu1 %v6740_v7, %s5784_s25  ;;  %v7213_v55 = vpop.f32.mrb[1].mxu0  ;;  %v1706_v59 = vsel %vm1692_vm11, %v1673_v45, %v6807_v19  ;;  %v1542_v7 = vsel %vm1527_vm6, %v1509_v11, %v6735_v33  ;;  %v7230_v19 = vpop.permute.xlu0 %1413 }
 0x264   : > { %v2056_v9 = vsel %vm1496_vm5, %v7213_v55, 0.0  ;;  %5414 = vmatmul.mubr.msk.f32.gmra.mrb[12].mxu0 %vm1730_vm12, %v1706_v59  ;;  %v1575_v56 = vsel %vm1560_vm7, %v1542_v7, %v6758_v5  ;;  %v724_v33 = vsel %vm639_vm2, %v722_v60, %v723_v0  ;;  %v1479_v60 = vsel %vm1465_vm4, %v6257_v39, %v7147_v30  ;;  %v10377_v39 = vld [vmem:[#allocation51_spill] sm:$0xff] }
 0x265   : > { %v7223_v2 = vadd.f32 %v2057_v26, %v2056_v9  ;;  %v756_v24 = vpop.permute.xlu1 %755  ;;  %1341 = vrot.lane.b32.xlu0 %v719_v62, %s5785_s26 }
 0x266   : > { %v1480_v30 = vsel %vm1465_vm4, %v10377_v39, %v756_v24 }
 0x267   : > { %1237 = vrot.lane.b32.xlu1 %v6764_v54, %s5786_s28  ;;  %v7247_v59 = vpop.permute.xlu0 %857 }
 0x269   : > { %v1128_v48 = vpop.permute.xlu1 %1127  ;;  %1063 = vrot.lane.b32.xlu0 %v719_v62, %s5781_s29 }
 0x26a   : > { %v1608_v45 = vsel %vm1593_vm8, %v1575_v56, %v1128_v48 }
 0x26b   : > { %v1641_v26 = vsel %vm1626_vm9, %v1608_v45, %v6837_v28  ;;  %953 = vrot.lane.b32.xlu1 %v6764_v54, %s5780_s12  ;;  %v10376_v28 = vld [vmem:[#allocation48_spill] sm:$0xff] }
 0x26c   : > { %v1674_v42 = vsel %vm1659_vm10, %v1641_v26, %v6857_v18  ;;  %v725_v9 = vrot.slane %v10376_v28, 2  ;;  %v7256_v18 = vpop.permute.xlu0 %1235  ;;  %v10379_v28 = vld [vmem:[#allocation53_spill] sm:$0xff] }
 0x26d   : > { %v758_v11 = vpop.permute.xlu1 %757  ;;  %1431 = vrot.lane.b32.xlu0 %v724_v33, %s5787_s8  ;;  %v1707_v5 = vsel %vm1692_vm11, %v1674_v42, %v6889_v31 }
 0x26e   : > { %5416 = vmatprep.mubr.msk.f32.mxu0 %vm1730_vm12, %v1707_v5  ;;  %v7259_v62 = vsel %vm639_vm2, %v723_v0, %v725_v9 }
 0x26f   : > { %1327 = vrot.lane.b32.xlu1 %v6840_v36, %s5785_s26 }
 0x270   : > { %v7268_v48 = vpop.permute.xlu0 %951 }
 0x271   : > { %v1130_v3 = vpop.permute.xlu1 %1129  ;;  %1159 = vrot.lane.b32.xlu0 %v724_v33, %s5783_s16 }
 0x273   : > { %771 = vrot.lane.b32.xlu1 %v6798_v16, %s5782_s14  ;;  %v1510_v16 = vsel %vm1496_vm5, %v1479_v60, %v7168_v6 }
 0x274   : > { %v1543_v0 = vsel %vm1527_vm6, %v1510_v16, %v938_v10  ;;  %v10378_v10 = vld [vmem:[#allocation50_spill] sm:$0xff] }
 0x275   : > { %v848_v31 = vpop.permute.xlu1 %847  ;;  %1161 = vrot.lane.b32.xlu0 %v7259_v62, %s5783_s16  ;;  %v1576_v45 = vsel %vm1560_vm7, %v1543_v0, %v6792_v13  ;;  %v1511_v42 = vsel %vm1496_vm5, %v1480_v30, %v10378_v10 }
 0x276   : > { %v1609_v26 = vsel %vm1593_vm8, %v1576_v45, %v1130_v3  ;;  %v1544_v9 = vsel %vm1527_vm6, %v1511_v42, %v10379_v28  ;;  %v10381_v42 = vld [vmem:[#allocation52_spill] sm:$0xff] }
 0x277   : > { %1143 = vrot.lane.b32.xlu1 %v6824_v29, %s5783_s16  ;;  %v7279_v29 = vpop.permute.xlu0 %1325 }
 0x279   : > { %v1226_v7 = vpop.permute.xlu1 %1225 }
 0x27a   : > { %v1642_v6 = vsel %vm1626_vm9, %v1609_v26, %v1226_v7  ;;  %v10380_v7 = vld [vmem:[#allocation39_spill] sm:$0xff] }
 0x27b   : > { %773 = vrot.lane.b32.xlu1 %v6840_v36, %s5782_s14  ;;  %v7293_v24 = vpop.permute.xlu0 %1047  ;;  %v1577_v60 = vsel %vm1560_vm7, %v1544_v9, %v10380_v7 }
 0x27d   : > { %v942_v56 = vpop.permute.xlu1 %941 }
 0x27f   : > { %1145 = vrot.lane.b32.xlu1 %v6849_v51, %s5783_s16  ;;  %v7306_v16 = vpop.permute.xlu0 %1415 }
 0x281   : > { %v1316_v33 = vpop.permute.xlu1 %1315 }
 0x282   : > { %v1675_v36 = vsel %vm1659_vm10, %v1642_v6, %v1316_v33 }
 0x283   : > { %863 = vrot.lane.b32.xlu1 %v6849_v51, %s5784_s25  ;;  %v1708_v13 = vsel %vm1692_vm11, %v1675_v36, %v6919_v58  ;;  %v7315_v26 = vpop.permute.xlu0 %1049 }
 0x284   : > { %5417 = vmatmul.mubr.msk.f32.gmra.mrb[14].mxu0 %vm1730_vm12, %v1708_v13  ;;  %v1481_v13 = vsel %vm1465_vm4, %v10381_v42, %v758_v11  ;;  %v10383_v11 = vld [vmem:[#allocation58_spill] sm:$0xff] }
 0x285   : > { %v760_v5 = vpop.permute.xlu1 %759  ;;  %v1512_v28 = vsel %vm1496_vm5, %v1481_v13, %v848_v31 }
 0x286   : > { %v1545_v9 = vsel %vm1527_vm6, %v1512_v28, %v942_v56  ;;  %v10384_v56 = vld [vmem:[#allocation54_spill] sm:$0xff] }
 0x287   : > { %1241 = vrot.lane.b32.xlu1 %v6879_v8, %s5786_s28 }
 0x289   : > { %v1132_v3 = vpop.permute.xlu1 %1131 }
 0x28a   : > { %v1610_v51 = vsel %vm1593_vm8, %v1577_v60, %v1132_v3  ;;  %v10382_v60 = vld [vmem:[#allocation56_spill] sm:$0xff] }
 0x28b   : > { %v1643_v58 = vsel %vm1626_vm9, %v1610_v51, %v6956_v47  ;;  %957 = vrot.lane.b32.xlu1 %v6879_v8, %s5780_s12  ;;  %v1482_v51 = vsel %vm1465_vm4, %v10383_v11, %v760_v5 }
 0x28c   : > { %v1676_v0 = vsel %vm1659_vm10, %v1643_v58, %v6998_v46 }
 0x28d   : > { %v762_v45 = vpop.permute.xlu1 %761  ;;  %v1709_v39 = vsel %vm1692_vm11, %v1676_v0, %v7037_v61  ;;  %v7325_v61 = vpop.permute.xlu0 %1417 }
 0x28e   : > { %5419 = vmatprep.mubr.msk.f32.mxu0 %vm1730_vm12, %v1709_v39  ;;  %v1513_v39 = vsel %vm1496_vm5, %v1482_v51, %v10384_v56 }
 0x28f   : > { %1331 = vrot.lane.b32.xlu1 %v6950_v38, %s5785_s26 }
 0x291   : > { %v1134_v30 = vpop.permute.xlu1 %1133  ;;  %v7338_v7 = vpop.permute.xlu0 %861 }
 0x293   : > { %775 = vrot.lane.b32.xlu1 %v6910_v63, %s5782_s14 }
 0x295   : > { %v852_v47 = vpop.permute.xlu1 %851 }
 0x296   : > { %v7319_v6 = vpop.f32.mrb[2].mxu0 }
 0x297   : > { %1147 = vrot.lane.b32.xlu1 %v6934_v14, %s5783_s16  ;;  %v7323_v46 = vpop.f32.mrb[3].mxu0  ;;  %v2061_v63 = vsel %vm1496_vm5, %v7319_v6, 0.0 }
 0x298   : > { %v2059_v33 = vsel %vm1496_vm5, %v7323_v46, 0.0 }
 0x299   : > { %v2060_v36 = vadd.f32 %v2059_v33, %v7223_v2  ;;  %v1230_v10 = vpop.permute.xlu1 %1229  ;;  %v1578_v2 = vsel %vm1560_vm7, %v1545_v9, %v6904_v22  ;;  %v7355_v33 = vpop.permute.xlu0 %1239 }
 0x29a   : > { %v1611_v31 = vsel %vm1593_vm8, %v1578_v2, %v1134_v30  ;;  %v10385_v30 = vld [vmem:[#allocation17_spill] sm:$0xff] }
 0x29b   : > { %777 = vrot.lane.b32.xlu1 %v6950_v38, %s5782_s14  ;;  %v2062_v14 = vadd.f32 %v2061_v63, %v2060_v36  ;;  %v1644_v58 = vsel %vm1626_vm9, %v1611_v31, %v1230_v10  ;;  %v1546_v36 = vsel %vm1527_vm6, %v1513_v39, %v10385_v30 }
 0x29c   : > { %v1579_v42 = vsel %vm1560_vm7, %v1546_v36, %v7019_v21 }
 0x29d   : > { %v946_v3 = vpop.permute.xlu1 %945  ;;  %v7364_v13 = vpop.permute.xlu0 %955 }
 0x29f   : > { %1149 = vrot.lane.b32.xlu1 %v10382_v60, %s5783_s16 }
 0x2a1   : > { %v1320_v38 = vpop.permute.xlu1 %1319  ;;  %v7378_v21 = vpop.permute.xlu0 %1329 }
 0x2a2   : > { %v1677_v0 = vsel %vm1659_vm10, %v1644_v58, %v1320_v38  ;;  %v10387_v38 = vld [vmem:[#allocation59_spill] sm:$0xff] }
 0x2a3   : > { %867 = vrot.lane.b32.xlu1 %v10382_v60, %s5784_s25  ;;  %v1710_v22 = vsel %vm1692_vm11, %v1677_v0, %v7073_v35  ;;  %v1483_v0 = vsel %vm1465_vm4, %v10387_v38, %v762_v45  ;;  %v10389_v45 = vld [vmem:[#allocation16_spill] sm:$0xff] }
 0x2a4   : > { %5420 = vmatmul.mubr.msk.f32.gmra.mrb[16].mxu0 %vm1730_vm12, %v1710_v22  ;;  %v1514_v39 = vsel %vm1496_vm5, %v1483_v0, %v852_v47 }
 0x2a5   : > { %v764_v5 = vpop.permute.xlu1 %763  ;;  %v7382_v51 = vpop.permute.xlu0 %1051  ;;  %v1547_v30 = vsel %vm1527_vm6, %v1514_v39, %v946_v3 }
 0x2a7   : > { %1245 = vrot.lane.b32.xlu1 %v6987_v57, %s5786_s28 }
 0x2a9   : > { %v1136_v10 = vpop.permute.xlu1 %1135 }
 0x2aa   : > { %v1612_v63 = vsel %vm1593_vm8, %v1579_v42, %v1136_v10  ;;  %v10388_v42 = vld [vmem:[#allocation60_spill] sm:$0xff] }
 0x2ab   : > { %v1645_v35 = vsel %vm1626_vm9, %v1612_v63, %v7115_v27  ;;  %961 = vrot.lane.b32.xlu1 %v6987_v57, %s5780_s12  ;;  %v10386_v27 = vld [vmem:[#allocation57_spill] sm:$0xff]  ;;  %v1580_v63 = vsel %vm1560_vm7, %v1547_v30, %v10388_v42 }
 0x2ac   : > { %v1678_v28 = vsel %vm1659_vm10, %v1645_v35, %v7156_v49 }
 0x2ad   : > { %v766_v9 = vpop.permute.xlu1 %765  ;;  %v1711_v2 = vsel %vm1692_vm11, %v1678_v28, %v7187_v43 }
 0x2ae   : > { %5422 = vmatprep.mubr.msk.f32.mxu0 %vm1730_vm12, %v1711_v2 }
 0x2af   : > { %1335 = vrot.lane.b32.xlu1 %v7054_v52, %s5785_s26 }
 0x2b1   : > { %v1138_v60 = vpop.permute.xlu1 %1137 }
 0x2b2   : > { %v1613_v35 = vsel %vm1593_vm8, %v1580_v63, %v1138_v60 }
 0x2b3   : > { %779 = vrot.lane.b32.xlu1 %v10386_v27, %s5782_s14 }
 0x2b5   : > { %v856_v11 = vpop.permute.xlu1 %855 }
 0x2b7   : > { %1151 = vrot.lane.b32.xlu1 %v7040_v44, %s5783_s16  ;;  %v7386_v49 = vpop.f32.mrb[4].mxu0  ;;  %v7399_v44 = vpop.permute.xlu0 %1419 }
 0x2b8   : > { %v7388_v43 = vpop.f32.mrb[5].mxu0  ;;  %v2065_v22 = vsel %vm1496_vm5, %v7386_v49, 0.0 }
 0x2b9   : > { %v2063_v31 = vsel %vm1496_vm5, %v7388_v43, 0.0  ;;  %v1234_v58 = vpop.permute.xlu1 %1233 }
 0x2ba   : > { %v2064_v56 = vadd.f32 %v2063_v31, %v2062_v14  ;;  %v10390_v14 = vld [vmem:[#allocation65_spill] sm:$0xff]  ;;  %v1646_v28 = vsel %vm1626_vm9, %v1613_v35, %v1234_v58 }
 0x2bb   : > { %781 = vrot.lane.b32.xlu1 %v7054_v52, %s5782_s14  ;;  %v1484_v47 = vsel %vm1465_vm4, %v10390_v14, %v764_v5  ;;  %v7410_v2 = vpop.permute.xlu0 %1053  ;;  %v10391_v14 = vld [vmem:[#allocation67_spill] sm:$0xff] }
 0x2bc   : > { %v2066_v36 = vadd.f32 %v2065_v22, %v2064_v56  ;;  %v1515_v27 = vsel %vm1496_vm5, %v1484_v47, %v7094_v37  ;;  %v1485_v47 = vsel %vm1465_vm4, %v10391_v14, %v766_v9 }
 0x2bd   : > { %v950_v10 = vpop.permute.xlu1 %949  ;;  %v1548_v60 = vsel %vm1527_vm6, %v1515_v27, %v7135_v4  ;;  %v1516_v35 = vsel %vm1496_vm5, %v1485_v47, %v856_v11 }
 0x2be   : > { %v1581_v37 = vsel %vm1560_vm7, %v1548_v60, %v7172_v15 }
 0x2bf   : > { %1153 = vrot.lane.b32.xlu1 %v10389_v45, %s5783_s16  ;;  %v7424_v58 = vpop.permute.xlu0 %1421 }
 0x2c1   : > { %v1324_v52 = vpop.permute.xlu1 %1323 }
 0x2c2   : > { %v1679_v3 = vsel %vm1659_vm10, %v1646_v28, %v1324_v52 }
 0x2c3   : > { %871 = vrot.lane.b32.xlu1 %v10389_v45, %s5784_s25  ;;  %v1712_v31 = vsel %vm1692_vm11, %v1679_v3, %v7230_v19  ;;  %v7439_v22 = vpop.permute.xlu0 %865 }
 0x2c4   : > { %5423 = vmatmul.mubr.msk.f32.gmra.mrb[18].mxu0 %vm1730_vm12, %v1712_v31 }
 0x2c5   : > { %v768_v5 = vpop.permute.xlu1 %767 }
 0x2c7   : > { %1249 = vrot.lane.b32.xlu1 %v7090_v53, %s5786_s28 }
 0x2c9   : > { %v1140_v38 = vpop.permute.xlu1 %1139 }
 0x2ca   : > { %v1614_v0 = vsel %vm1593_vm8, %v1581_v37, %v1140_v38 }
 0x2cb   : > { %v1647_v19 = vsel %vm1626_vm9, %v1614_v0, %v7256_v18  ;;  %965 = vrot.lane.b32.xlu1 %v7090_v53, %s5780_s12  ;;  %v7446_v18 = vpop.permute.xlu0 %1243 }
 0x2cc   : > { %v1680_v4 = vsel %vm1659_vm10, %v1647_v19, %v7279_v29 }
 0x2cd   : > { %v7435_v56 = vpop.permute.xlu1 %769  ;;  %v1713_v39 = vsel %vm1692_vm11, %v1680_v4, %v7306_v16 }
 0x2ce   : > { %5425 = vmatprep.mubr.msk.f32.mxu0 %vm1730_vm12, %v1713_v39 }
 0x2cf   : > { %1339 = vrot.lane.b32.xlu1 %v7159_v32, %s5785_s26  ;;  %v7456_v45 = vpop.permute.xlu0 %959 }
 0x2d1   : > { %v1142_v15 = vpop.permute.xlu1 %1141 }
 0x2d3   : > { %783 = vrot.lane.b32.xlu1 %v7119_v41, %s5782_s14  ;;  %v7470_v9 = vpop.permute.xlu0 %1333 }
 0x2d5   : > { %v860_v30 = vpop.permute.xlu1 %859 }
 0x2d7   : > { %1155 = vrot.lane.b32.xlu1 %v7143_v40, %s5783_s16  ;;  %v7450_v29 = vpop.f32.mrb[6].mxu0  ;;  %v1549_v40 = vsel %vm1527_vm6, %v1516_v35, %v950_v10  ;;  %v1487_v35 = vsel %vm1465_vm4, %v6662_v17, %v7435_v56 }
 0x2d8   : > { %v7452_v16 = vpop.f32.mrb[7].mxu0  ;;  %v2069_v28 = vsel %vm1496_vm5, %v7450_v29, 0.0  ;;  %v1582_v27 = vsel %vm1560_vm7, %v1549_v40, %v7202_v25  ;;  %v1518_v40 = vsel %vm1496_vm5, %v1487_v35, %v860_v30 }
 0x2d9   : > { %v2067_v42 = vsel %vm1496_vm5, %v7452_v16, 0.0  ;;  %v1238_v63 = vpop.permute.xlu1 %1237  ;;  %v1615_v31 = vsel %vm1593_vm8, %v1582_v27, %v1142_v15 }
 0x2da   : > { %v2068_v41 = vadd.f32 %v2067_v42, %v2066_v36  ;;  %v10392_v36 = vld [vmem:[#allocation71_spill] sm:$0xff]  ;;  %v1648_v60 = vsel %vm1626_vm9, %v1615_v31, %v1238_v63 }
 0x2db   : > { %785 = vrot.lane.b32.xlu1 %v7159_v32, %s5782_s14  ;;  %v1486_v11 = vsel %vm1465_vm4, %v10392_v36, %v768_v5  ;;  %v7484_v5 = vpop.permute.xlu0 %1055 }
 0x2dc   : > { %v2070_v52 = vadd.f32 %v2069_v28, %v2068_v41  ;;  %v1517_v38 = vsel %vm1496_vm5, %v1486_v11, %v7247_v59 }
 0x2dd   : > { %v954_v3 = vpop.permute.xlu1 %953  ;;  %v1550_v0 = vsel %vm1527_vm6, %v1517_v38, %v7268_v48 }
 0x2de   : > { %v1583_v59 = vsel %vm1560_vm7, %v1550_v0, %v7293_v24  ;;  %v10393_v24 = vld [vmem:[#allocation49_spill] sm:$0xff] }
 0x2df   : > { %1157 = vrot.lane.b32.xlu1 %v7166_v34, %s5783_s16  ;;  %v1424_v4 = vpop.permute.xlu0 %1423 }
 0x2e1   : > { %v1328_v32 = vpop.permute.xlu1 %1327 }
 0x2e2   : > { %v1681_v10 = vsel %vm1659_vm10, %v1648_v60, %v1328_v32  ;;  %v10394_v32 = vld [vmem:[#allocation72_spill] sm:$0xff] }
 0x2e3   : > { %875 = vrot.lane.b32.xlu1 %v7166_v34, %s5784_s25  ;;  %v1714_v25 = vsel %vm1692_vm11, %v1681_v10, %v7325_v61 }
 0x2e4   : > { %5426 = vmatmul.mubr.msk.f32.gmra.mrb[20].mxu0 %vm1730_vm12, %v1714_v25 }
 0x2e5   : > { %v772_v37 = vpop.permute.xlu1 %771 }
 0x2e6   : > { %v1488_v10 = vsel %vm1465_vm4, %v10394_v32, %v772_v37  ;;  %v10395_v32 = vld [vmem:[#allocation73_spill] sm:$0xff] }
 0x2e7   : > { %1253 = vrot.lane.b32.xlu1 %v10374_v1, %s5786_s28 }
 0x2e9   : > { %v1144_v19 = vpop.permute.xlu1 %1143 }
 0x2ea   : > { %v1616_v34 = vsel %vm1593_vm8, %v1583_v59, %v1144_v19 }
 0x2eb   : > { %v1649_v61 = vsel %vm1626_vm9, %v1616_v34, %v7355_v33  ;;  %969 = vrot.lane.b32.xlu1 %v10374_v1, %s5780_s12  ;;  %v4305_v33 = vld [vmem:[%s10146_s3] sm:$0xf]  ;;  %v7508_v1 = vpop.permute.xlu0 %1057  ;;  %s5788_s12 = smov 48  }
 0x2ec   : > { %v1682_v39 = vsel %vm1659_vm10, %v1649_v61, %v7378_v21  ;;  %5509 = vmatprep.subr.msk.mxu0 %vm1827_vm3, %v4305_v33 }
 0x2ed   : > { %v774_v48 = vpop.permute.xlu1 %773  ;;  %v1715_v15 = vsel %vm1692_vm11, %v1682_v39, %v7399_v44  ;;  %5510 = vmatpush3.msk.msra.mxu0 %vm1827_vm3, %v4305_v33  ;;  %vm3703_vm3 = vcmask 523264  }
 0x2ee   : > { %5428 = vmatprep.mubr.msk.f32.mxu0 %vm1730_vm12, %v1715_v15 }
 0x2ef   : > { %1343 = vrot.lane.b32.xlu1 %v10393_v24, %s5785_s26  ;;  %v1426_v63 = vpop.permute.xlu0 %1425  ;;  %s5789_s26 = smov 40  }
 0x2f1   : > { %v1146_v42 = vpop.permute.xlu1 %1145 }
 0x2f3   : > { %1065 = vrot.lane.b32.xlu1 %v10393_v24, %s5781_s29  ;;  %v7528_v31 = vpop.permute.xlu0 %869 }
 0x2f5   : > { %v864_v21 = vpop.permute.xlu1 %863 }
 0x2f7   : > { %1433 = vrot.lane.b32.xlu1 %v7259_v62, %s5787_s8  ;;  %v7515_v44 = vpop.f32.mrb[8].mxu0  ;;  %v1551_v62 = vsel %vm1527_vm6, %v1518_v40, %v954_v3  ;;  %v1519_v3 = vsel %vm1496_vm5, %v1488_v10, %v7338_v7  ;;  %v7541_v25 = vpop.permute.xlu0 %1247 }
 0x2f8   : > { %v7517_v14 = vpop.f32.mrb[9].mxu0  ;;  %v2073_v27 = vsel %vm1496_vm5, %v7515_v44, 0.0  ;;  %v1584_v60 = vsel %vm1560_vm7, %v1551_v62, %v7315_v26  ;;  %v1552_v37 = vsel %vm1527_vm6, %v1519_v3, %v7364_v13 }
 0x2f9   : > { %v2071_v47 = vsel %vm1496_vm5, %v7517_v14, 0.0  ;;  %v1242_v41 = vpop.permute.xlu1 %1241  ;;  %v1617_v17 = vsel %vm1593_vm8, %v1584_v60, %v1146_v42  ;;  %v1585_v19 = vsel %vm1560_vm7, %v1552_v37, %v7382_v51 }
 0x2fa   : > { %v2072_v28 = vadd.f32 %v2071_v47, %v2070_v52  ;;  %v1650_v56 = vsel %vm1626_vm9, %v1617_v17, %v1242_v41 }
 0x2fb   : > { %v7548_v59 = vpop.permute.xlu0 %963 }
 0x2fc   : > { %v2074_v36 = vadd.f32 %v2073_v27, %v2072_v28 }
 0x2fd   : > { %v958_v11 = vpop.permute.xlu1 %957 }
 0x2ff   : > { %v7557_v13 = vpop.permute.xlu0 %1337 }
 0x301   : > { %v1332_v30 = vpop.permute.xlu1 %1331 }
 0x302   : > { %v1683_v52 = vsel %vm1659_vm10, %v1650_v56, %v1332_v30 }
 0x303   : > { %v1716_v38 = vsel %vm1692_vm11, %v1683_v52, %v7424_v58  ;;  %v7559_v51 = vpop.permute.xlu0 %1059 }
 0x304   : > { %5429 = vmatmul.mubr.msk.f32.gmra.mrb[22].mxu0 %vm1730_vm12, %v1716_v38 }
 0x305   : > { %v776_v26 = vpop.permute.xlu1 %775 }
 0x306   : > { %v1490_v10 = vsel %vm1465_vm4, %v10395_v32, %v776_v26 }
 0x307   : > { %v7572_v28 = vpop.permute.xlu0 %1427 }
 0x309   : > { %v1148_v0 = vpop.permute.xlu1 %1147 }
 0x30a   : > { %v1618_v34 = vsel %vm1593_vm8, %v1585_v19, %v1148_v0 }
 0x30b   : > { %v1651_v7 = vsel %vm1626_vm9, %v1618_v34, %v7446_v18 }
 0x30c   : > { %v1684_v58 = vsel %vm1659_vm10, %v1651_v7, %v7470_v9  ;;  %v1489_v9 = vsel %vm1465_vm4, %v6764_v54, %v774_v48 }
 0x30d   : > { %v778_v61 = vpop.permute.xlu1 %777  ;;  %v1717_v39 = vsel %vm1692_vm11, %v1684_v58, %v1424_v4  ;;  %v1520_v41 = vsel %vm1496_vm5, %v1489_v9, %v864_v21 }
 0x30e   : > { %5431 = vmatprep.mubr.msk.f32.mxu0 %vm1730_vm12, %v1717_v39  ;;  %v1553_v40 = vsel %vm1527_vm6, %v1520_v41, %v958_v11  ;;  %v1521_v11 = vsel %vm1496_vm5, %v1490_v10, %v7439_v22 }
 0x30f   : > { %v1586_v60 = vsel %vm1560_vm7, %v1553_v40, %v7410_v2  ;;  %v1554_v30 = vsel %vm1527_vm6, %v1521_v11, %v7456_v45 }
 0x310   : > { %v1587_v38 = vsel %vm1560_vm7, %v1554_v30, %v7484_v5 }
 0x311   : > { %v1150_v15 = vpop.permute.xlu1 %1149 }
 0x312   : > { %v1619_v54 = vsel %vm1593_vm8, %v1586_v60, %v1150_v15 }
 0x315   : > { %v868_v24 = vpop.permute.xlu1 %867 }
 0x317   : > { %v7561_v33 = vpop.f32.mrb[10].mxu0 }
 0x318   : > { %v7563_v42 = vpop.f32.mrb[11].mxu0  ;;  %v2077_v35 = vsel %vm1496_vm5, %v7561_v33, 0.0 }
 0x319   : > { %v2075_v18 = vsel %vm1496_vm5, %v7563_v42, 0.0  ;;  %v1246_v47 = vpop.permute.xlu1 %1245 }
 0x31a   : > { %v2076_v4 = vadd.f32 %v2075_v18, %v2074_v36  ;;  %v1652_v48 = vsel %vm1626_vm9, %v1619_v54, %v1246_v47  ;;  %v7581_v36 = vpop.permute.xlu0 %1061  ;;  %v1491_v47 = vsel %vm1465_vm4, %v6879_v8, %v778_v61  ;;  %v10396_v54 = vld [vmem:[#allocation55_spill] sm:$0xff] }
 0x31c   : > { %v2078_v27 = vadd.f32 %v2077_v35, %v2076_v4  ;;  %v1522_v4 = vsel %vm1496_vm5, %v1491_v47, %v868_v24 }
 0x31d   : > { %v962_v62 = vpop.permute.xlu1 %961 }
 0x31e   : > { %v7590_v52 = vpop.permute.xlu0 %1429  ;;  %v1555_v35 = vsel %vm1527_vm6, %v1522_v4, %v962_v62 }
 0x31f   : > { %v1588_v32 = vsel %vm1560_vm7, %v1555_v35, %v7508_v1 }
 0x321   : > { %v1336_v21 = vpop.permute.xlu1 %1335 }
 0x322   : > { %v1685_v17 = vsel %vm1659_vm10, %v1652_v48, %v1336_v21  ;;  %v874_v19 = vpop.permute.xlu0 %873 }
 0x323   : > { %v1718_v56 = vsel %vm1692_vm11, %v1685_v17, %v1426_v63 }
 0x324   : > { %5432 = vmatmul.mubr.msk.f32.gmra.mrb[24].mxu0 %vm1730_vm12, %v1718_v56 }
 0x325   : > { %v780_v2 = vpop.permute.xlu1 %779 }
 0x326   : > { %v1252_v34 = vpop.permute.xlu0 %1251  ;;  %v1492_v48 = vsel %vm1465_vm4, %v10396_v54, %v780_v2 }
 0x329   : > { %v1152_v3 = vpop.permute.xlu1 %1151 }
 0x32a   : > { %v1620_v26 = vsel %vm1593_vm8, %v1587_v38, %v1152_v3  ;;  %v968_v18 = vpop.permute.xlu0 %967 }
 0x32b   : > { %v1653_v37 = vsel %vm1626_vm9, %v1620_v26, %v7541_v25 }
 0x32c   : > { %v1686_v22 = vsel %vm1659_vm10, %v1653_v37, %v7557_v13 }
 0x32d   : > { %v782_v63 = vpop.permute.xlu1 %781  ;;  %v1719_v0 = vsel %vm1692_vm11, %v1686_v22, %v7572_v28 }
 0x32e   : > { %5434 = vmatprep.mubr.msk.f32.mxu0 %vm1730_vm12, %v1719_v0  ;;  %v1342_v10 = vpop.permute.xlu0 %1341  ;;  %v1493_v54 = vsel %vm1465_vm4, %v6987_v57, %v782_v63 }
 0x331   : > { %v1154_v45 = vpop.permute.xlu1 %1153 }
 0x332   : > { %v1621_v21 = vsel %vm1593_vm8, %v1588_v32, %v1154_v45  ;;  %v1064_v17 = vpop.permute.xlu0 %1063 }
 0x335   : > { %v872_v7 = vpop.permute.xlu1 %871 }
 0x336   : > { %v1432_v38 = vpop.permute.xlu0 %1431 }
 0x337   : > { %v7602_v58 = vpop.f32.mrb[12].mxu0 }
 0x338   : > { %v7604_v5 = vpop.f32.mrb[13].mxu0  ;;  %v2081_v41 = vsel %vm1496_vm5, %v7602_v58, 0.0 }
 0x339   : > { %v2079_v39 = vsel %vm1496_vm5, %v7604_v5, 0.0  ;;  %v7608_v15 = vpop.permute.xlu1 %1249 }
 0x33a   : > { %v2080_v9 = vadd.f32 %v2079_v39, %v2078_v27  ;;  %v1654_v8 = vsel %vm1626_vm9, %v1621_v21, %v7608_v15  ;;  %v1523_v27 = vsel %vm1496_vm5, %v1492_v48, %v7528_v31 }
 0x33b   : > { %v1556_v11 = vsel %vm1527_vm6, %v1523_v27, %v7548_v59 }
 0x33c   : > { %v2082_v40 = vadd.f32 %v2081_v41, %v2080_v9  ;;  %v1589_v2 = vsel %vm1560_vm7, %v1556_v11, %v7559_v51 }
 0x33d   : > { %v966_v60 = vpop.permute.xlu1 %965 }
 0x341   : > { %v1340_v61 = vpop.permute.xlu1 %1339 }
 0x342   : > { %v1687_v24 = vsel %vm1659_vm10, %v1654_v8, %v1340_v61 }
 0x343   : > { %v1720_v62 = vsel %vm1692_vm11, %v1687_v24, %v7590_v52 }
 0x344   : > { %5435 = vmatmul.mubr.msk.f32.gmra.mrb[26].mxu0 %vm1730_vm12, %v1720_v62 }
 0x345   : > { %v784_v1 = vpop.permute.xlu1 %783 }
 0x346   : > { %v1494_v59 = vsel %vm1465_vm4, %v7087_v50, %v784_v1 }
 0x347   : > { %v1525_v39 = vsel %vm1496_vm5, %v1494_v59, %v874_v19  ;;  %v1524_v19 = vsel %vm1496_vm5, %v1493_v54, %v872_v7  ;;  %v10403_v59 = vld [vmem:[#allocation14_spill] sm:$0xff]  ;;  %v10413_v54 = vld [vmem:[#allocation28_spill] sm:$0xff] }
 0x348   : > { %v1558_v41 = vsel %vm1527_vm6, %v1525_v39, %v968_v18 }
 0x349   : > { %v1156_v56 = vpop.permute.xlu1 %1155  ;;  %v1591_v50 = vsel %vm1560_vm7, %v1558_v41, %v1064_v17  ;;  %v10408_v41 = vld [vmem:[#allocation21_spill] sm:$0xff] }
 0x34a   : > { %v1622_v30 = vsel %vm1593_vm8, %v1589_v2, %v1156_v56 }
 0x34b   : > { %v1655_v3 = vsel %vm1626_vm9, %v1622_v30, %v1252_v34 }
 0x34c   : > { %v1688_v31 = vsel %vm1659_vm10, %v1655_v3, %v1342_v10  ;;  %v1160_v10 = vpop.permute.xlu0 %1159  ;;  %v10398_v3 = vld [vmem:[#allocation9_spill] sm:$0xff] }
 0x34d   : > { %v786_v26 = vpop.permute.xlu1 %785  ;;  %v1721_v37 = vsel %vm1692_vm11, %v1688_v31, %v1432_v38  ;;  %v1624_v21 = vsel %vm1593_vm8, %v1591_v50, %v1160_v10  ;;  %v10399_v38 = vld [vmem:[#allocation10_spill] sm:$0xff]  ;;  %v10411_v50 = vld [vmem:[#allocation24_spill] sm:$0xff]  ;;  %v10412_v10 = vld [vmem:[#allocation25_spill] sm:$0xff] }
 0x34e   : > { %5437 = vmatprep.mubr.msk.f32.mxu0 %vm1730_vm12, %v1721_v37  ;;  %v1495_v8 = vsel %vm1465_vm4, %v7090_v53, %v786_v26  ;;  %v1657_v62 = vsel %vm1626_vm9, %v1624_v21, %v7541_v25  ;;  %v10401_v26 = vld [vmem:[#allocation12_spill] sm:$0xff] }
 0x34f   : > { %v1690_v11 = vsel %vm1659_vm10, %v1657_v62, %v7557_v13  ;;  %v10397_v13 = vld [vmem:[#allocation8_spill] sm:$0xff] }
 0x350   : > { %v1162_v1 = vpop.permute.xlu0 %1161 }
 0x351   : > { %v1158_v22 = vpop.permute.xlu1 %1157 }
 0x355   : > { %v876_v0 = vpop.permute.xlu1 %875 }
 0x356   : > { %v1526_v18 = vsel %vm1496_vm5, %v1495_v8, %v876_v0  ;;  %v10402_v0 = vld [vmem:[#allocation13_spill] sm:$0xff] }
 0x357   : > { %v7640_v45 = vpop.f32.mrb[14].mxu0 }
 0x358   : > { %v7642_v51 = vpop.f32.mrb[15].mxu0  ;;  %v2085_v4 = vsel %vm1496_vm5, %v7640_v45, 0.0 }
 0x359   : > { %v2083_v34 = vsel %vm1496_vm5, %v7642_v51, 0.0  ;;  %v1254_v47 = vpop.permute.xlu1 %1253 }
 0x35a   : > { %v2084_v9 = vadd.f32 %v2083_v34, %v2082_v40  ;;  %v1557_v40 = vsel %vm1527_vm6, %v1524_v19, %v966_v60  ;;  %v10404_v34 = vld [vmem:[#allocation15_spill] sm:$0xff]  ;;  %v10415_v19 = vld [vmem:[#allocation30_spill] sm:$0xff] }
 0x35b   : > { %v1590_v57 = vsel %vm1560_vm7, %v1557_v40, %v7581_v36  ;;  %v1723_v36 = vsel %vm1692_vm11, %v1690_v11, %v7572_v28  ;;  %v10400_v28 = vld [vmem:[#allocation11_spill] sm:$0xff]  ;;  %v10424_v11 = vld [vmem:[#allocation41_spill] sm:$0xff] }
 0x35c   : > { %v2086_v35 = vadd.f32 %v2085_v4, %v2084_v9  ;;  %v1623_v7 = vsel %vm1593_vm8, %v1590_v57, %v1158_v22  ;;  %v10406_v9 = vld [vmem:[#allocation19_spill] sm:$0xff]  ;;  %v10407_v4 = vld [vmem:[#allocation20_spill] sm:$0xff]  ;;  %v10419_v57 = vld [vmem:[#allocation34_spill] sm:$0xff] }
 0x35d   : > { %v970_v32 = vpop.permute.xlu1 %969  ;;  %v1656_v53 = vsel %vm1626_vm9, %v1623_v7, %v1254_v47  ;;  %v10405_v47 = vld [vmem:[#allocation18_spill] sm:$0xff]  ;;  %v10416_v40 = vld [vmem:[#allocation31_spill] sm:$0xff] }
 0x35e   : > { %v1559_v24 = vsel %vm1527_vm6, %v1526_v18, %v970_v32  ;;  %v10410_v32 = vld [vmem:[#allocation23_spill] sm:$0xff]  ;;  %v10417_v18 = vld [vmem:[#allocation32_spill] sm:$0xff] }
 0x35f   : > { %v10420_v7 = vld [vmem:[#allocation35_spill] sm:$0xff] }
 0x361   : > { %v1344_v48 = vpop.permute.xlu1 %1343 }
 0x362   : > { %v1689_v25 = vsel %vm1659_vm10, %v1656_v53, %v1344_v48  ;;  %v10414_v48 = vld [vmem:[#allocation29_spill] sm:$0xff]  ;;  %v10422_v53 = vld [vmem:[#allocation38_spill] sm:$0xff] }
 0x365   : > { %v1066_v27 = vpop.permute.xlu1 %1065 }
 0x366   : > { %v1592_v63 = vsel %vm1560_vm7, %v1559_v24, %v1066_v27 }
 0x367   : > { %v1625_v60 = vsel %vm1593_vm8, %v1592_v63, %v1162_v1  ;;  %v10418_v1 = vld [vmem:[#allocation33_spill] sm:$0xff] }
 0x368   : > { %v1658_v17 = vsel %vm1626_vm9, %v1625_v60, %v7608_v15  ;;  %v10421_v60 = vld [vmem:[#allocation37_spill] sm:$0xff] }
 0x369   : > { %v1434_v56 = vpop.permute.xlu1 %1433  ;;  %v1691_v30 = vsel %vm1659_vm10, %v1658_v17, %v1340_v61  ;;  %v10423_v17 = vld [vmem:[#allocation40_spill] sm:$0xff] }
 0x36a   : > { %v1722_v2 = vsel %vm1692_vm11, %v1689_v25, %v1434_v56  ;;  %v1724_v15 = vsel %vm1692_vm11, %v1691_v30, %v7590_v52  ;;  %v10425_v25 = vld [vmem:[#allocation42_spill] sm:$0xff] }
 0x36b   : > { %5438 = vmatmul.mubr.msk.f32.gmra.mrb[28].mxu0 %vm1730_vm12, %v1722_v2  ;;  %v10426_v56 = vld [vmem:[#allocation46_spill] sm:$0xff] }
 0x36c   : > { %5440 = vmatprep.mubr.msk.f32.mxu0 %vm1730_vm12, %v1723_v36 }
 0x36f   : > { %5441 = vmatmul.mubr.msk.f32.gmra.mrb[30].mxu0 %vm1730_vm12, %v1724_v15 }
 0x370   : > { %5511 = vmatprep.mubr.msk.f32.mxu0 %vm1465_vm4, %v10397_v13 }
 0x373   : > { %5512 = vmatmul.mubr.msk.f32.vlgmr.msra.gmra.mrb[32].mxu0 %vm1465_vm4, %v10398_v3 }
 0x374   : > { %5514 = vmatprep.mubr.msk.f32.mxu0 %vm1465_vm4, %v10399_v38 }
 0x377   : > { %v7688_v31 = vpop.f32.mrb[16].mxu0  ;;  %5515 = vmatmul.mubr.msk.f32.gmra.mrb[34].mxu0 %vm1465_vm4, %v10400_v28 }
 0x378   : > { %v7692_v61 = vpop.f32.mrb[17].mxu0  ;;  %5517 = vmatprep.mubr.msk.f32.mxu0 %vm1465_vm4, %v10401_v26  ;;  %v2089_v22 = vsel %vm1496_vm5, %v7688_v31, 0.0 }
 0x379   : > { %v2087_v52 = vsel %vm1496_vm5, %v7692_v61, 0.0 }
 0x37a   : > { %v2088_v37 = vadd.f32 %v2087_v52, %v2086_v35  ;;  %v10409_v35 = vld [vmem:[#allocation22_spill] sm:$0xff] }
 0x37b   : > { %5518 = vmatmul.mubr.msk.f32.gmra.mrb[36].mxu0 %vm1465_vm4, %v10402_v0 }
 0x37c   : > { %5520 = vmatprep.mubr.msk.f32.mxu0 %vm1465_vm4, %v10403_v59  ;;  %v2090_v39 = vadd.f32 %v2089_v22, %v2088_v37 }
 0x37f   : > { %5521 = vmatmul.mubr.msk.f32.gmra.mrb[38].mxu0 %vm1465_vm4, %v10404_v34 }
 0x380   : > { %5523 = vmatprep.mubr.msk.f32.mxu0 %vm1465_vm4, %v10405_v47 }
 0x383   : > { %5524 = vmatmul.mubr.msk.f32.gmra.mrb[40].mxu0 %vm1465_vm4, %v10406_v9 }
 0x384   : > { %5526 = vmatprep.mubr.msk.f32.mxu0 %vm1465_vm4, %v10407_v4 }
 0x387   : > { %5527 = vmatmul.mubr.msk.f32.gmra.mrb[42].mxu0 %vm1465_vm4, %v10408_v41 }
 0x388   : > { %5529 = vmatprep.mubr.msk.f32.mxu0 %vm1465_vm4, %v10409_v35 }
 0x38b   : > { %5530 = vmatmul.mubr.msk.f32.gmra.mrb[44].mxu0 %vm1465_vm4, %v10410_v32 }
 0x38c   : > { %5532 = vmatprep.mubr.msk.f32.mxu0 %vm1465_vm4, %v10411_v50 }
 0x38f   : > { %5533 = vmatmul.mubr.msk.f32.gmra.mrb[46].mxu0 %vm1465_vm4, %v10412_v10 }
 0x390   : > { %5535 = vmatprep.mubr.msk.f32.mxu0 %vm1465_vm4, %v10413_v54 }
 0x393   : > { %5536 = vmatmul.mubr.msk.f32.gmra.mrb[48].mxu0 %vm1465_vm4, %v10414_v48 }
 0x394   : > { %5538 = vmatprep.mubr.msk.f32.mxu0 %vm1465_vm4, %v10415_v19 }
 0x397   : > { %v7728_v21 = vpop.f32.mrb[18].mxu0  ;;  %5539 = vmatmul.mubr.msk.f32.gmra.mrb[50].mxu0 %vm1465_vm4, %v10416_v40 }
 0x398   : > { %v7732_v8 = vpop.f32.mrb[19].mxu0  ;;  %5541 = vmatprep.mubr.msk.f32.mxu0 %vm1465_vm4, %v10417_v18  ;;  %v2093_v62 = vsel %vm1496_vm5, %v7728_v21, 0.0 }
 0x399   : > { %v2091_v24 = vsel %vm1496_vm5, %v7732_v8, 0.0 }
 0x39a   : > { %v2092_v27 = vadd.f32 %v2091_v24, %v2090_v39 }
 0x39b   : > { %5542 = vmatmul.mubr.msk.f32.gmra.mrb[52].mxu0 %vm1465_vm4, %v10418_v1 }
 0x39c   : > { %5544 = vmatprep.mubr.msk.f32.mxu0 %vm1465_vm4, %v10419_v57  ;;  %v2094_v63 = vadd.f32 %v2093_v62, %v2092_v27 }
 0x39f   : > { %5545 = vmatmul.mubr.msk.f32.gmra.mrb[54].mxu0 %vm1465_vm4, %v10420_v7 }
 0x3a0   : > { %5547 = vmatprep.mubr.msk.f32.mxu0 %vm1465_vm4, %v10421_v60 }
 0x3a3   : > { %5548 = vmatmul.mubr.msk.f32.gmra.mrb[56].mxu0 %vm1465_vm4, %v10422_v53 }
 0x3a4   : > { %5550 = vmatprep.mubr.msk.f32.mxu0 %vm1465_vm4, %v10423_v17 }
 0x3a7   : > { %5551 = vmatmul.mubr.msk.f32.gmra.mrb[58].mxu0 %vm1465_vm4, %v10424_v11 }
 0x3a8   : > { %5553 = vmatprep.mubr.msk.f32.mxu0 %vm1465_vm4, %v10425_v25 }
 0x3ab   : > { %5554 = vmatmul.mubr.msk.f32.gmra.mrb[60].mxu0 %vm1465_vm4, %v10367_v12 }
 0x3ac   : > { %5556 = vmatprep.mubr.msk.f32.mxu0 %vm1465_vm4, %v10371_v23 }
 0x3af   : > { %5557 = vmatmul.mubr.msk.f32.gmra.mrb[62].mxu0 %vm1465_vm4, %v10426_v56  ;;  %vm3745_vm4 = vcmask 588800  }
 0x3b7   : > { %v7762_v2 = vpop.f32.mrb[20].mxu0 }
 0x3b8   : > { %v7764_v36 = vpop.f32.mrb[21].mxu0  ;;  %v2097_v13 = vsel %vm1496_vm5, %v7762_v2, 0.0 }
 0x3b9   : > { %v2095_v30 = vsel %vm1496_vm5, %v7764_v36, 0.0 }
 0x3ba   : > { %v2096_v15 = vadd.f32 %v2095_v30, %v2094_v63 }
 0x3bc   : > { %v2098_v3 = vadd.f32 %v2097_v13, %v2096_v15 }
 0x3d7   : > { %v7770_v38 = vpop.f32.mrb[22].mxu0 }
 0x3d8   : > { %v7772_v12 = vpop.f32.mrb[23].mxu0  ;;  %v2101_v26 = vsel %vm1496_vm5, %v7770_v38, 0.0 }
 0x3d9   : > { %v2099_v23 = vsel %vm1496_vm5, %v7772_v12, 0.0 }
 0x3da   : > { %v2100_v28 = vadd.f32 %v2099_v23, %v2098_v3 }
 0x3dc   : > { %v2102_v52 = vadd.f32 %v2101_v26, %v2100_v28 }
 0x3f7   : > { %v7778_v37 = vpop.f32.mrb[24].mxu0 }
 0x3f8   : > { %v7780_v22 = vpop.f32.mrb[25].mxu0  ;;  %v2105_v39 = vsel %vm1496_vm5, %v7778_v37, 0.0 }
 0x3f9   : > { %v2103_v0 = vsel %vm1496_vm5, %v7780_v22, 0.0 }
 0x3fa   : > { %v2104_v59 = vadd.f32 %v2103_v0, %v2102_v52 }
 0x3fc   : > { %v2106_v34 = vadd.f32 %v2105_v39, %v2104_v59 }
 0x417   : > { %v7786_v47 = vpop.f32.mrb[26].mxu0 }
 0x418   : > { %v7788_v9 = vpop.f32.mrb[27].mxu0  ;;  %v2109_v35 = vsel %vm1496_vm5, %v7786_v47, 0.0 }
 0x419   : > { %v2107_v4 = vsel %vm1496_vm5, %v7788_v9, 0.0 }
 0x41a   : > { %v2108_v41 = vadd.f32 %v2107_v4, %v2106_v34 }
 0x41c   : > { %v2110_v32 = vadd.f32 %v2109_v35, %v2108_v41 }
 0x43e   : > { %v7794_v50 = vpop.f32.mrb[28].mxu0 }
 0x43f   : > { %v7796_v10 = vpop.f32.mrb[29].mxu0  ;;  %v2113_v19 = vsel %vm1496_vm5, %v7794_v50, 0.0 }
 0x440   : > { %v2111_v54 = vsel %vm1496_vm5, %v7796_v10, 0.0 }
 0x441   : > { %v2112_v48 = vadd.f32 %v2111_v54, %v2110_v32 }
 0x442   : > { %v7802_v40 = vpop.f32.mrb[30].mxu0 }
 0x443   : > { %v7804_v18 = vpop.f32.mrb[31].mxu0  ;;  %v2114_v24 = vadd.f32 %v2113_v19, %v2112_v48  ;;  %v2117_v1 = vsel %vm1496_vm5, %v7802_v40, 0.0 }
 0x444   : > { %v2115_v27 = vsel %vm1496_vm5, %v7804_v18, 0.0 }
 0x445   : > { %v2116_v62 = vadd.f32 %v2115_v27, %v2114_v24 }
 0x446   : > { %v7810_v57 = vpop.f32.mrb[32].mxu0 }
 0x447   : > { %v2118_v63 = vadd.f32 %v2117_v1, %v2116_v62  ;;  %v4599_v7 = vsel %vm1496_vm5, %v7810_v57, 0.0  ;;  %v7814_v60 = vpop.f32.mrb[33].mxu0 }
 0x448   : > { %v4598_v53 = vsel %vm1496_vm5, %v7814_v60, 0.0 }
 0x449   : > { %v2119_v17 = vrot.slane %v2118_v63, 4  ;;  %v4600_v11 = vadd.f32 %v4599_v7, %v4598_v53 }
 0x44a   : > { %v7818_v25 = vpop.f32.mrb[34].mxu0 }
 0x44b   : > { %v2120_v56 = vadd.f32 %v2119_v17, %v2118_v63  ;;  %v7820_v30 = vpop.f32.mrb[35].mxu0  ;;  %v4603_v23 = vsel %vm1496_vm5, %v7818_v25, 0.0 }
 0x44c   : > { %v4601_v15 = vsel %vm1496_vm5, %v7820_v30, 0.0 }
 0x44d   : > { %v2121_v13 = vrot.slane %v2120_v56, 2  ;;  %v4602_v3 = vadd.f32 %v4601_v15, %v4600_v11 }
 0x44e   : > { %v7826_v28 = vpop.f32.mrb[36].mxu0 }
 0x44f   : > { %v2122_v26 = vadd.f32 %v2121_v13, %v2120_v56  ;;  %v7828_v52 = vpop.f32.mrb[37].mxu0  ;;  %v4604_v0 = vadd.f32 %v4603_v23, %v4602_v3  ;;  %v4607_v4 = vsel %vm1496_vm5, %v7826_v28, 0.0 }
 0x450   : > { %v4605_v59 = vsel %vm1496_vm5, %v7828_v52, 0.0 }
 0x451   : > { %v2123_v39 = vrot.slane %v2122_v26, 1  ;;  %v4606_v34 = vadd.f32 %v4605_v59, %v4604_v0 }
 0x452   : > { %v7834_v41 = vpop.f32.mrb[38].mxu0 }
 0x453   : > { %v2124_v35 = vadd.f32 %v2123_v39, %v2122_v26  ;;  %v7836_v32 = vpop.f32.mrb[39].mxu0  ;;  %v4608_v54 = vadd.f32 %v4607_v4, %v4606_v34 }
 0x454   : > { %v4609_v48 = vsel %vm1496_vm5, %v7836_v32, 0.0 }
 0x455   : > { %v2126_v19 = vmul.f32 0.00390625, %v2124_v35  ;;  %v7840_v24 = vadd.f32 %v4609_v48, %v4608_v54 }
 0x456   : > { %v7842_v27 = vpop.f32.mrb[40].mxu0 }
 0x457   : > { %v7845_v62 = vsub.f32 %v7213_v55, %v2126_v19  ;;  %v7848_v1 = vsub.f32 %v7205_v20, %v2126_v19  ;;  %v7851_v63 = vsub.f32 %v7323_v46, %v2126_v19  ;;  %v7854_v7 = vsub.f32 %v7319_v6, %v2126_v19  ;;  %v7856_v53 = vpop.f32.mrb[41].mxu0 }
 0x458   : > { %v7859_v17 = vsub.f32 %v7388_v43, %v2126_v19  ;;  %v7862_v11 = vsub.f32 %v7386_v49, %v2126_v19  ;;  %v7865_v55 = vsub.f32 %v7452_v16, %v2126_v19  ;;  %v7868_v20 = vsub.f32 %v7450_v29, %v2126_v19 }
 0x459   : > { %10427 = vst [vmem:[#allocation61_spill] sm:$0xff] %v7848_v1  ;;  %10428 = vst [vmem:[#allocation63_spill] sm:$0xff] %v7851_v63  ;;  %v7871_v46 = vsub.f32 %v7517_v14, %v2126_v19  ;;  %v7874_v6 = vsub.f32 %v7515_v44, %v2126_v19  ;;  %v7877_v56 = vsub.f32 %v7563_v42, %v2126_v19 }
 0x45a   : > { %10429 = vst [vmem:[#allocation26_spill] sm:$0xff] %v7854_v7  ;;  %10430 = vst [vmem:[#allocation62_spill] sm:$0xff] %v7859_v17  ;;  %v7880_v43 = vsub.f32 %v7561_v33, %v2126_v19  ;;  %v7883_v49 = vsub.f32 %v7604_v5, %v2126_v19  ;;  %v7886_v16 = vsub.f32 %v7602_v58, %v2126_v19  ;;  %v7894_v44 = vpop.f32.mrb[42].mxu0 }
 0x45b   : > { %10431 = vst [vmem:[#allocation70_spill] sm:$0xff] %v7862_v11  ;;  %10432 = vst [vmem:[#allocation64_spill] sm:$0xff] %v7865_v55  ;;  %v7889_v29 = vsub.f32 %v7642_v51, %v2126_v19  ;;  %v7892_v14 = vsub.f32 %v7640_v45, %v2126_v19  ;;  %v7897_v42 = vsub.f32 %v7692_v61, %v2126_v19  ;;  %v7908_v15 = vpop.f32.mrb[43].mxu0 }
 0x45c   : > { %10433 = vst [vmem:[#allocation66_spill] sm:$0xff] %v7868_v20  ;;  %10434 = vst [vmem:[#allocation69_spill] sm:$0xff] %v7871_v46  ;;  %v7900_v33 = vsub.f32 %v7688_v31, %v2126_v19  ;;  %v7903_v5 = vsub.f32 %v7732_v8, %v2126_v19  ;;  %v7906_v58 = vsub.f32 %v7728_v21, %v2126_v19 }
 0x45d   : > { %10435 = vst [vmem:[#allocation44_spill] sm:$0xff] %v7874_v6  ;;  %10436 = vst [vmem:[#allocation27_spill] sm:$0xff] %v7877_v56  ;;  %v7911_v51 = vsub.f32 %v7764_v36, %v2126_v19  ;;  %v7914_v45 = vsub.f32 %v7762_v2, %v2126_v19  ;;  %v7917_v61 = vsub.f32 %v7772_v12, %v2126_v19 }
 0x45e   : > { %10437 = vst [vmem:[#allocation68_spill] sm:$0xff] %v7880_v43  ;;  %10438 = vst [vmem:[#allocation36_spill] sm:$0xff] %v7883_v49  ;;  %v7920_v31 = vsub.f32 %v7770_v38, %v2126_v19  ;;  %v7923_v8 = vsub.f32 %v7780_v22, %v2126_v19  ;;  %v7926_v21 = vsub.f32 %v7778_v37, %v2126_v19  ;;  %v7946_v37 = vpop.f32.mrb[44].mxu0 }
 0x45f   : > { %10439 = vst [vmem:[#allocation45_spill] sm:$0xff] %v7886_v16  ;;  %10440 = vst [vmem:[#allocation43_spill] sm:$0xff] %v7889_v29  ;;  %v7929_v13 = vsub.f32 %v7788_v9, %v2126_v19  ;;  %v7932_v36 = vsub.f32 %v7786_v47, %v2126_v19  ;;  %v7935_v2 = vsub.f32 %v7796_v10, %v2126_v19  ;;  %v7948_v3 = vpop.f32.mrb[45].mxu0 }
 0x460   : > { %10441 = vst [vmem:[#allocation47_spill] sm:$0xff] %v7892_v14  ;;  %10442 = vst [vmem:[#allocation48_spill] sm:$0xff] %v7897_v42  ;;  %v7938_v12 = vsub.f32 %v7794_v50, %v2126_v19  ;;  %v7941_v38 = vsub.f32 %v7804_v18, %v2126_v19  ;;  %v7944_v22 = vsub.f32 %v7802_v40, %v2126_v19 }
 0x461   : > { %10443 = vst [vmem:[#allocation51_spill] sm:$0xff] %v7900_v33  ;;  %10444 = vst [vmem:[#allocation50_spill] sm:$0xff] %v7926_v21  ;;  %v2159_v47 = vmul.f32 %v7845_v62, %v7845_v62  ;;  %v2160_v10 = vmul.f32 %v7848_v1, %v7848_v1  ;;  %v2161_v18 = vmul.f32 %v7851_v63, %v7851_v63  ;;  %v4619_v1 = vsel %vm1496_vm5, %v7894_v44, 0.0 }
 0x462   : > { %v7950_v9 = vpop.f32.mrb[46].mxu0  ;;  %v2162_v40 = vmul.f32 %v7854_v7, %v7854_v7  ;;  %v2163_v34 = vmul.f32 %v7859_v17, %v7859_v17  ;;  %v2164_v48 = vmul.f32 %v7862_v11, %v7862_v11 }
 0x463   : > { %v7956_v50 = vpop.f32.mrb[47].mxu0  ;;  %v2191_v26 = vsel %vm1496_vm5, %v2159_v47, 0.0  ;;  %v2192_v0 = vsel %vm1496_vm5, %v2160_v10, 0.0  ;;  %v2194_v4 = vsel %vm1496_vm5, %v2161_v18, 0.0  ;;  %v2165_v10 = vmul.f32 %v7865_v55, %v7865_v55 }
 0x464   : > { %v2193_v39 = vadd.f32 %v2192_v0, %v2191_v26  ;;  %v2196_v19 = vsel %vm1496_vm5, %v2162_v40, 0.0  ;;  %v2198_v26 = vsel %vm1496_vm5, %v2163_v34, 0.0  ;;  %v2166_v18 = vmul.f32 %v7868_v20, %v7868_v20 }
 0x465   : > { %v2167_v34 = vmul.f32 %v7871_v46, %v7871_v46 }
 0x466   : > { %v7960_v23 = vpop.f32.mrb[48].mxu0  ;;  %v2195_v35 = vadd.f32 %v2194_v4, %v2193_v39  ;;  %v2200_v39 = vsel %vm1496_vm5, %v2164_v48, 0.0  ;;  %v4611_v4 = vsel %vm1496_vm5, %v7834_v41, 0.0  ;;  %v2168_v48 = vmul.f32 %v7874_v6, %v7874_v6 }
 0x467   : > { %v7966_v59 = vpop.f32.mrb[49].mxu0  ;;  %v2204_v63 = vsel %vm1496_vm5, %v2166_v18, 0.0  ;;  %v2170_v18 = vmul.f32 %v7880_v43, %v7880_v43 }
 0x468   : > { %v2197_v47 = vadd.f32 %v2196_v19, %v2195_v35  ;;  %v4612_v35 = vadd.f32 %v4611_v4, %v7840_v24  ;;  %v4613_v19 = vsel %vm1496_vm5, %v7856_v53, 0.0  ;;  %v4615_v24 = vsel %vm1496_vm5, %v7842_v27, 0.0 }
 0x469   : > { %v2208_v6 = vsel %vm1496_vm5, %v2168_v48, 0.0  ;;  %v2172_v48 = vmul.f32 %v7886_v16, %v7886_v16  ;;  %v2212_v43 = vsel %vm1496_vm5, %v2170_v18, 0.0  ;;  %v2174_v18 = vmul.f32 %v7892_v14, %v7892_v14 }
 0x46a   : > { %v7971_v54 = vpop.f32.mrb[50].mxu0  ;;  %v2199_v0 = vadd.f32 %v2198_v26, %v2197_v47  ;;  %v2202_v47 = vsel %vm1496_vm5, %v2165_v10, 0.0  ;;  %v4614_v20 = vadd.f32 %v4613_v19, %v4612_v35  ;;  %v2206_v10 = vsel %vm1496_vm5, %v2167_v34, 0.0 }
 0x46b   : > { %v7976_v7 = vpop.f32.mrb[51].mxu0  ;;  %v2216_v16 = vsel %vm1496_vm5, %v2172_v48, 0.0  ;;  %v2176_v48 = vmul.f32 %v7900_v33, %v7900_v33  ;;  %v2220_v14 = vsel %vm1496_vm5, %v2174_v18, 0.0  ;;  %v2178_v18 = vmul.f32 %v7906_v58, %v7906_v58 }
 0x46c   : > { %v2201_v11 = vadd.f32 %v2200_v39, %v2199_v0  ;;  %v4617_v0 = vsel %vm1496_vm5, %v7908_v15, 0.0  ;;  %v4616_v46 = vadd.f32 %v4615_v24, %v4614_v20  ;;  %v4635_v33 = vsel %vm1496_vm5, %v7971_v54, 0.0 }
 0x46e   : > { %v7981_v17 = vpop.f32.mrb[52].mxu0  ;;  %v2203_v26 = vadd.f32 %v2202_v47, %v2201_v11  ;;  %v2169_v11 = vmul.f32 %v7877_v56, %v7877_v56  ;;  %v4618_v19 = vadd.f32 %v4617_v0, %v4616_v46  ;;  %v2171_v46 = vmul.f32 %v7883_v49, %v7883_v49 }
 0x46f   : > { %v7988_v40 = vpop.f32.mrb[53].mxu0  ;;  %v4623_v56 = vsel %vm1496_vm5, %v7946_v37, 0.0  ;;  %v4627_v49 = vsel %vm1496_vm5, %v7950_v9, 0.0 }
 0x470   : > { %v2205_v4 = vadd.f32 %v2204_v63, %v2203_v26  ;;  %v4621_v63 = vsel %vm1496_vm5, %v7948_v3, 0.0  ;;  %v4620_v24 = vadd.f32 %v4619_v1, %v4618_v19  ;;  %v2210_v34 = vsel %vm1496_vm5, %v2169_v11, 0.0 }
 0x471   : > { %v4625_v1 = vsel %vm1496_vm5, %v7956_v50, 0.0  ;;  %v2173_v11 = vmul.f32 %v7889_v29, %v7889_v29  ;;  %v4631_v29 = vsel %vm1496_vm5, %v7960_v23, 0.0 }
 0x472   : > { %v7996_v55 = vpop.f32.mrb[54].mxu0  ;;  %v2207_v35 = vadd.f32 %v2206_v10, %v2205_v4  ;;  %v4622_v4 = vadd.f32 %v4621_v63, %v4620_v24  ;;  %v2214_v63 = vsel %vm1496_vm5, %v2171_v46, 0.0  ;;  %v2175_v46 = vmul.f32 %v7897_v42, %v7897_v42 }
 0x473   : > { %v8005_v39 = vpop.f32.mrb[55].mxu0  ;;  %v4637_v42 = vsel %vm1496_vm5, %v7988_v40, 0.0 }
 0x474   : > { %v2209_v26 = vadd.f32 %v2208_v6, %v2207_v35  ;;  %v4624_v19 = vadd.f32 %v4623_v56, %v4622_v4  ;;  %v4629_v56 = vsel %vm1496_vm5, %v7966_v59, 0.0 }
 0x476   : > { %v8010_v47 = vpop.f32.mrb[56].mxu0  ;;  %v2211_v0 = vadd.f32 %v2210_v34, %v2209_v26  ;;  %v4626_v24 = vadd.f32 %v4625_v1, %v4624_v19  ;;  %v2218_v1 = vsel %vm1496_vm5, %v2173_v11, 0.0  ;;  %v2177_v11 = vmul.f32 %v7903_v5, %v7903_v5 }
 0x477   : > { %v8019_v20 = vpop.f32.mrb[57].mxu0 }
 0x478   : > { %v2213_v35 = vadd.f32 %v2212_v43, %v2211_v0  ;;  %v4628_v4 = vadd.f32 %v4627_v49, %v4626_v24  ;;  %v4633_v49 = vsel %vm1496_vm5, %v7976_v7, 0.0 }
 0x47a   : > { %v8024_v10 = vpop.f32.mrb[58].mxu0  ;;  %v2215_v26 = vadd.f32 %v2214_v63, %v2213_v35  ;;  %v4630_v19 = vadd.f32 %v4629_v56, %v4628_v4  ;;  %v2222_v56 = vsel %vm1496_vm5, %v2175_v46, 0.0  ;;  %v2226_v46 = vsel %vm1496_vm5, %v2177_v11, 0.0 }
 0x47b   : > { %v8033_v6 = vpop.f32.mrb[59].mxu0 }
 0x47c   : > { %v2217_v0 = vadd.f32 %v2216_v16, %v2215_v26  ;;  %v4632_v24 = vadd.f32 %v4631_v29, %v4630_v19 }
 0x47e   : > { %v8038_v34 = vpop.f32.mrb[60].mxu0  ;;  %v2219_v35 = vadd.f32 %v2218_v1, %v2217_v0  ;;  %v4634_v4 = vadd.f32 %v4633_v49, %v4632_v24  ;;  %v2224_v1 = vsel %vm1496_vm5, %v2176_v48, 0.0  ;;  %v2228_v48 = vsel %vm1496_vm5, %v2178_v18, 0.0 }
 0x47f   : > { %v8047_v43 = vpop.f32.mrb[61].mxu0  ;;  %v4639_v24 = vsel %vm1496_vm5, %v7981_v17, 0.0 }
 0x480   : > { %v2221_v26 = vadd.f32 %v2220_v14, %v2219_v35  ;;  %v4636_v29 = vadd.f32 %v4635_v33, %v4634_v4  ;;  %v2179_v35 = vmul.f32 %v7911_v51, %v7911_v51  ;;  %v2181_v4 = vmul.f32 %v7917_v61, %v7917_v61 }
 0x482   : > { %v8052_v63 = vpop.f32.mrb[62].mxu0  ;;  %v2223_v0 = vadd.f32 %v2222_v56, %v2221_v26  ;;  %v4638_v49 = vadd.f32 %v4637_v42, %v4636_v29  ;;  %v2180_v26 = vmul.f32 %v7914_v45, %v7914_v45  ;;  %v4641_v56 = vsel %vm1496_vm5, %v8005_v39, 0.0 }
 0x483   : > { %v8061_v16 = vpop.f32.mrb[63].mxu0  ;;  %v2230_v11 = vsel %vm1496_vm5, %v2179_v35, 0.0  ;;  %v4643_v29 = vsel %vm1496_vm5, %v7996_v55, 0.0  ;;  %v2234_v35 = vsel %vm1496_vm5, %v2181_v4, 0.0 }
 0x484   : > { %v2225_v14 = vadd.f32 %v2224_v1, %v2223_v0  ;;  %v4640_v33 = vadd.f32 %v4639_v24, %v4638_v49  ;;  %v2232_v18 = vsel %vm1496_vm5, %v2180_v26, 0.0 }
 0x486   : > { %v2227_v19 = vadd.f32 %v2226_v46, %v2225_v14  ;;  %v4642_v42 = vadd.f32 %v4641_v56, %v4640_v33  ;;  %v2182_v14 = vmul.f32 %v7920_v31, %v7920_v31  ;;  %v4645_v46 = vsel %vm1496_vm5, %v8019_v20, 0.0 }
 0x487   : > { %v4647_v33 = vsel %vm1496_vm5, %v8010_v47, 0.0 }
 0x488   : > { %v2229_v0 = vadd.f32 %v2228_v48, %v2227_v19  ;;  %v4644_v49 = vadd.f32 %v4643_v29, %v4642_v42  ;;  %v2183_v48 = vmul.f32 %v7923_v8, %v7923_v8  ;;  %v2236_v26 = vsel %vm1496_vm5, %v2182_v14, 0.0 }
 0x489   : > { %v4651_v14 = vsel %vm1496_vm5, %v8024_v10, 0.0 }
 0x48a   : > { %v2231_v1 = vadd.f32 %v2230_v11, %v2229_v0  ;;  %v4646_v56 = vadd.f32 %v4645_v46, %v4644_v49  ;;  %v2184_v0 = vmul.f32 %v7926_v21, %v7926_v21  ;;  %v4649_v11 = vsel %vm1496_vm5, %v8033_v6, 0.0 }
 0x48b   : > { %v2238_v4 = vsel %vm1496_vm5, %v2183_v48, 0.0  ;;  %v4653_v49 = vsel %vm1496_vm5, %v8047_v43, 0.0  ;;  %v4655_v48 = vsel %vm1496_vm5, %v8038_v34, 0.0 }
 0x48c   : > { %v2233_v19 = vadd.f32 %v2232_v18, %v2231_v1  ;;  %v4648_v42 = vadd.f32 %v4647_v33, %v4646_v56  ;;  %v2185_v18 = vmul.f32 %v7929_v13, %v7929_v13 }
 0x48e   : > { %v2235_v24 = vadd.f32 %v2234_v35, %v2233_v19  ;;  %v4650_v46 = vadd.f32 %v4649_v11, %v4648_v42  ;;  %v2240_v19 = vsel %vm1496_vm5, %v2184_v0, 0.0  ;;  %v2242_v56 = vsel %vm1496_vm5, %v2185_v18, 0.0 }
 0x48f   : > { %v4657_v0 = vsel %vm1496_vm5, %v8061_v16, 0.0 }
 0x490   : > { %v2237_v1 = vadd.f32 %v2236_v26, %v2235_v24  ;;  %v4652_v21 = vadd.f32 %v4651_v14, %v4650_v46  ;;  %v2186_v24 = vmul.f32 %v7932_v36, %v7932_v36  ;;  %v4659_v46 = vsel %vm1496_vm5, %v8052_v63, 0.0 }
 0x492   : > { %v2239_v29 = vadd.f32 %v2238_v4, %v2237_v1  ;;  %v4654_v33 = vadd.f32 %v4653_v49, %v4652_v21  ;;  %v2187_v1 = vmul.f32 %v7935_v2, %v7935_v2  ;;  %v2244_v42 = vsel %vm1496_vm5, %v2186_v24, 0.0 }
 0x493   : > { %v2188_v21 = vmul.f32 %v7938_v12, %v7938_v12 }
 0x494   : > { %v2241_v35 = vadd.f32 %v2240_v19, %v2239_v29  ;;  %v4656_v11 = vadd.f32 %v4655_v48, %v4654_v33  ;;  %v2246_v19 = vsel %vm1496_vm5, %v2187_v1, 0.0 }
 0x495   : > { %v2248_v33 = vsel %vm1496_vm5, %v2188_v21, 0.0 }
 0x496   : > { %v2243_v26 = vadd.f32 %v2242_v56, %v2241_v35  ;;  %v4658_v29 = vadd.f32 %v4657_v0, %v4656_v11  ;;  %v2189_v56 = vmul.f32 %v7941_v38, %v7941_v38  ;;  %v2190_v0 = vmul.f32 %v7944_v22, %v7944_v22 }
 0x498   : > { %v2245_v4 = vadd.f32 %v2244_v42, %v2243_v26  ;;  %v4660_v18 = vadd.f32 %v4659_v46, %v4658_v29  ;;  %v2250_v11 = vsel %vm1496_vm5, %v2189_v56, 0.0  ;;  %v2252_v1 = vsel %vm1496_vm5, %v2190_v0, 0.0 }
 0x49a   : > { %v2247_v14 = vadd.f32 %v2246_v19, %v2245_v4  ;;  %v4661_v49 = vrot.slane %v4660_v18, 4 }
 0x49c   : > { %v4662_v35 = vadd.f32 %v4661_v49, %v4660_v18  ;;  %v2249_v24 = vadd.f32 %v2248_v33, %v2247_v14 }
 0x49e   : > { %v4663_v26 = vrot.slane %v4662_v35, 2  ;;  %v2251_v42 = vadd.f32 %v2250_v11, %v2249_v24 }
 0x4a0   : > { %v4664_v48 = vadd.f32 %v4663_v26, %v4662_v35  ;;  %v2253_v4 = vadd.f32 %v2252_v1, %v2251_v42 }
 0x4a2   : > { %v4665_v29 = vrot.slane %v4664_v48, 1 }
 0x4a4   : > { %v4666_v46 = vadd.f32 %v4665_v29, %v4664_v48 }
 0x4a6   : > { %v4667_v18 = vmul.f32 0.00390625, %v4666_v46 }
 0x4a8   : > { %v8134_v19 = vsub.f32 %v7814_v60, %v4667_v18  ;;  %v8137_v21 = vsub.f32 %v7810_v57, %v4667_v18  ;;  %v8140_v14 = vsub.f32 %v7820_v30, %v4667_v18  ;;  %v8143_v49 = vsub.f32 %v7818_v25, %v4667_v18 }
 0x4a9   : > { %v8146_v35 = vsub.f32 %v7828_v52, %v4667_v18  ;;  %v8149_v56 = vsub.f32 %v7826_v28, %v4667_v18  ;;  %v8152_v33 = vsub.f32 %v7836_v32, %v4667_v18  ;;  %v2254_v60 = vrot.slane %v2253_v4, 4 }
 0x4aa   : > { %10445 = vst [vmem:[#allocation53_spill] sm:$0xff] %v8137_v21  ;;  %10446 = vst [vmem:[#allocation39_spill] sm:$0xff] %v8140_v14  ;;  %v8155_v24 = vsub.f32 %v7834_v41, %v4667_v18  ;;  %v8158_v57 = vsub.f32 %v7856_v53, %v4667_v18  ;;  %v8161_v30 = vsub.f32 %v7842_v27, %v4667_v18 }
 0x4ab   : > { %10447 = vst [vmem:[#allocation52_spill] sm:$0xff] %v8143_v49  ;;  %10448 = vst [vmem:[#allocation56_spill] sm:$0xff] %v8149_v56  ;;  %v8164_v25 = vsub.f32 %v7908_v15, %v4667_v18  ;;  %v8167_v52 = vsub.f32 %v7894_v44, %v4667_v18  ;;  %v8170_v28 = vsub.f32 %v7948_v3, %v4667_v18 }
 0x4ac   : > { %10449 = vst [vmem:[#allocation58_spill] sm:$0xff] %v8152_v33  ;;  %10450 = vst [vmem:[#allocation54_spill] sm:$0xff] %v8155_v24  ;;  %v8173_v32 = vsub.f32 %v7946_v37, %v4667_v18  ;;  %v8176_v41 = vsub.f32 %v7956_v50, %v4667_v18  ;;  %v8179_v53 = vsub.f32 %v7950_v9, %v4667_v18 }
 0x4ad   : > { %10451 = vst [vmem:[#allocation17_spill] sm:$0xff] %v8158_v57  ;;  %10452 = vst [vmem:[#allocation57_spill] sm:$0xff] %v8161_v30  ;;  %v8182_v27 = vsub.f32 %v7966_v59, %v4667_v18  ;;  %v8185_v15 = vsub.f32 %v7960_v23, %v4667_v18  ;;  %v8188_v44 = vsub.f32 %v7976_v7, %v4667_v18 }
 0x4ae   : > { %10453 = vst [vmem:[#allocation59_spill] sm:$0xff] %v8164_v25  ;;  %10454 = vst [vmem:[#allocation60_spill] sm:$0xff] %v8167_v52  ;;  %v8191_v3 = vsub.f32 %v7971_v54, %v4667_v18  ;;  %v8194_v37 = vsub.f32 %v7988_v40, %v4667_v18  ;;  %v2255_v50 = vadd.f32 %v2254_v60, %v2253_v4  ;;  %v10460_v4 = vld [vmem:[#allocation63_spill] sm:$0xff]  ;;  %v10461_v60 = vld [vmem:[#allocation26_spill] sm:$0xff] }
 0x4af   : > { %10455 = vst [vmem:[#allocation16_spill] sm:$0xff] %v8170_v28  ;;  %10456 = vst [vmem:[#allocation65_spill] sm:$0xff] %v8173_v32  ;;  %v8197_v26 = vsub.f32 %v7981_v17, %v4667_v18  ;;  %v8200_v9 = vsub.f32 %v8005_v39, %v4667_v18  ;;  %v8203_v59 = vsub.f32 %v7996_v55, %v4667_v18 }
 0x4b0   : > { %10457 = vst [vmem:[#allocation67_spill] sm:$0xff] %v8176_v41  ;;  %10458 = vst [vmem:[#allocation71_spill] sm:$0xff] %v8179_v53  ;;  %v8206_v23 = vsub.f32 %v8019_v20, %v4667_v18  ;;  %v8209_v7 = vsub.f32 %v8010_v47, %v4667_v18  ;;  %v8212_v54 = vsub.f32 %v8033_v6, %v4667_v18  ;;  %v2256_v47 = vrot.slane %v2255_v50, 2 }
 0x4b1   : > { %v8215_v40 = vsub.f32 %v8024_v10, %v4667_v18  ;;  %v8218_v17 = vsub.f32 %v8047_v43, %v4667_v18  ;;  %v8221_v39 = vsub.f32 %v8038_v34, %v4667_v18  ;;  %v8224_v55 = vsub.f32 %v8061_v16, %v4667_v18 }
 0x4b2   : > { %v8227_v20 = vsub.f32 %v8052_v63, %v4667_v18  ;;  %v2257_v48 = vadd.f32 %v2256_v47, %v2255_v50  ;;  %v4700_v43 = vmul.f32 %v8134_v19, %v8134_v19  ;;  %v4701_v34 = vmul.f32 %v8137_v21, %v8137_v21  ;;  %v10459_v63 = vld [vmem:[#allocation61_spill] sm:$0xff] }
 0x4b3   : > { %v4702_v46 = vmul.f32 %v8140_v14, %v8140_v14  ;;  %v4703_v1 = vmul.f32 %v8143_v49, %v8143_v49 }
 0x4b4   : > { %v2258_v0 = vrot.slane %v2257_v48, 1  ;;  %v4732_v47 = vsel %vm1496_vm5, %v4700_v43, 0.0 }
 0x4b6   : > { %v2259_v6 = vadd.f32 %v2258_v0, %v2257_v48 }
 0x4b8   : > { %v2260_v11 = vmul.f32 0.00390625, %v2259_v6 }
 0x4ba   : > { %v2261_v42 = vadd.f32 1e-05, %v2260_v11  ;;  %v4704_v11 = vmul.f32 %v8146_v35, %v8146_v35 }
 0x4bc   : > { %5675 = vrsqrt.f32 %v2261_v42  ;;  %v4735_v42 = vsel %vm1496_vm5, %v4702_v46, 0.0  ;;  %v4739_v46 = vsel %vm1496_vm5, %v4704_v11, 0.0  ;;  %v4708_v11 = vmul.f32 %v8158_v57, %v8158_v57 }
 0x4c6   : > { %v8229_v10 = vpop.eup %5675 }
 0x4c7   : > { %v2263_v16 = vmul.f32 %v8229_v10, %v7845_v62  ;;  %v8239_v29 = vmul.f32 %v8229_v10, %v10459_v63  ;;  %v2265_v18 = vmul.f32 %v8229_v10, %v10460_v4  ;;  %v2266_v50 = vmul.f32 %v8229_v10, %v10461_v60 }
 0x4c8   : > { %v4733_v62 = vsel %vm1496_vm5, %v4701_v34, 0.0  ;;  %v4705_v4 = vmul.f32 %v8149_v56, %v8149_v56  ;;  %v4737_v60 = vsel %vm1496_vm5, %v4703_v1, 0.0 }
 0x4c9   : > { %v2295_v48 = vmax.f32 %v2263_v16, 0.0  ;;  %v10247_v0 = vmax.f32 %v8239_v29, 0.0  ;;  %v4734_v6 = vadd.f32 %v4733_v62, %v4732_v47  ;;  %v2297_v49 = vmax.f32 %v2265_v18, 0.0  ;;  %v10462_v62 = vld [vmem:[#allocation62_spill] sm:$0xff] }
 0x4ca   : > { %v2298_v14 = vmax.f32 %v2266_v50, 0.0  ;;  %v4706_v47 = vmul.f32 %v8152_v33, %v8152_v33  ;;  %v4707_v18 = vmul.f32 %v8155_v24, %v8155_v24  ;;  %v10464_v24 = vmax.f32 %v8239_v29, 0.0 }
 0x4cb   : > { %v4736_v63 = vadd.f32 %v4735_v42, %v4734_v6  ;;  %v2344_v43 = vrot.slane %v2295_v48, 1  ;;  %v2394_v21 = vrot.slane %v2295_v48, 7  ;;  %v8260_v34 = vrot.slane %v10247_v0, 7 }
 0x4cc   : > { %v2267_v6 = vmul.f32 %v8229_v10, %v10462_v62  ;;  %v2343_v1 = vrot.slane %v2297_v49, 1  ;;  %v2391_v42 = vrot.slane %v2297_v49, 7  ;;  %v4741_v48 = vsel %vm1496_vm5, %v4705_v4, 0.0  ;;  %v10463_v4 = vld [vmem:[#allocation70_spill] sm:$0xff] }
 0x4cd   : > { %v4738_v16 = vadd.f32 %v4737_v60, %v4736_v63  ;;  %v2392_v56 = vrot.slane %v2298_v14, 7  ;;  %v8272_v63 = vsel %vm373_vm0, %v2394_v21, %v8260_v34  ;;  %v8275_v60 = vsel %vm373_vm0, %v2344_v43, %v2394_v21 }
 0x4ce   : > { %2924 = vrot.lane.b32.xlu0 %v8272_v63, %s5786_s28  ;;  %2922 = vrot.lane.b32.xlu1 %v8275_v60, %s5786_s28  ;;  %v4709_v21 = vmul.f32 %v8161_v30, %v8161_v30  ;;  %v4745_v43 = vsel %vm1496_vm5, %v4707_v18, 0.0  ;;  %v2486_v57 = vrot.slane %v2298_v14, 5  ;;  %v2487_v33 = vrot.slane %v10464_v24, 5 }
 0x4cf   : > { %v4740_v50 = vadd.f32 %v4739_v46, %v4738_v16  ;;  %v4743_v16 = vsel %vm1496_vm5, %v4706_v47, 0.0  ;;  %v8286_v46 = vmul.f32 %v8229_v10, %v10463_v4  ;;  %v8292_v47 = vsel %vm373_vm0, %v2343_v1, %v2391_v42 }
 0x4d0   : > { %v4711_v1 = vmul.f32 %v8167_v52, %v8167_v52  ;;  %v4749_v14 = vsel %vm1496_vm5, %v4709_v21, 0.0  ;;  %v2655_v30 = vrot.slane %v8292_v47, 2 }
 0x4d1   : > { %v4742_v0 = vadd.f32 %v4741_v48, %v4740_v50  ;;  %v2299_v50 = vmax.f32 %v2267_v6, 0.0  ;;  %v8295_v48 = vsel %vm373_vm0, %v2391_v42, %v2392_v56  ;;  %v10251_v6 = vmax.f32 %v8286_v46, 0.0 }
 0x4d2   : > { %3210 = vrot.lane.b32.xlu0 %v8292_v47, %s5788_s12  ;;  %3212 = vrot.lane.b32.xlu1 %v8295_v48, %s5788_s12 }
 0x4d3   : > { %v4744_v49 = vadd.f32 %v4743_v16, %v4742_v0  ;;  %v4710_v0 = vmul.f32 %v8164_v25, %v8164_v25  ;;  %v4747_v16 = vsel %vm1496_vm5, %v4708_v11, 0.0  ;;  %v2345_v42 = vrot.slane %v2299_v50, 1 }
 0x4d4   : > { %v4712_v11 = vmul.f32 %v8170_v28, %v8170_v28  ;;  %v8318_v21 = vrot.slane %v10251_v6, 7  ;;  %v2581_v28 = vrot.slane %v8295_v48, 1 }
 0x4d5   : > { %v4746_v62 = vadd.f32 %v4745_v43, %v4744_v49  ;;  %v2397_v49 = vrot.slane %v2299_v50, 7  ;;  %v4751_v43 = vsel %vm1496_vm5, %v4710_v0, 0.0  ;;  %v4713_v50 = vmul.f32 %v8173_v32, %v8173_v32 }
 0x4d6   : > { %2926 = vrot.lane.b32.xlu0 %v8292_v47, %s5786_s28  ;;  %2928 = vrot.lane.b32.xlu1 %v8295_v48, %s5786_s28 }
 0x4d7   : > { %v4748_v18 = vadd.f32 %v4747_v16, %v4746_v62  ;;  %v2534_v62 = vsel %vm373_vm0, %v2392_v56, %v2486_v57  ;;  %v8324_v0 = vsel %vm373_vm0, %v2345_v42, %v2397_v49  ;;  %v4714_v56 = vmul.f32 %v8176_v41, %v8176_v41 }
 0x4d8   : > { %v2583_v52 = vrot.slane %v2534_v62, 1  ;;  %v4755_v57 = vsel %vm1496_vm5, %v4712_v11, 0.0  ;;  %v4757_v42 = vsel %vm1496_vm5, %v4713_v50, 0.0  ;;  %v2656_v11 = vrot.slane %v8295_v48, 2 }
 0x4d9   : > { %v4750_v4 = vadd.f32 %v4749_v14, %v4748_v18  ;;  %v4753_v18 = vsel %vm1496_vm5, %v4711_v1, 0.0  ;;  %v4715_v1 = vmul.f32 %v8179_v53, %v8179_v53  ;;  %v2658_v6 = vrot.slane %v2534_v62, 2 }
 0x4da   : > { %2930 = vrot.lane.b32.xlu0 %v8324_v0, %s5786_s28  ;;  %3214 = vrot.lane.b32.xlu1 %v8324_v0, %s5788_s12  ;;  %v4716_v41 = vmul.f32 %v8182_v27, %v8182_v27  ;;  %v4717_v50 = vmul.f32 %v8185_v15, %v8185_v15  ;;  %v4718_v53 = vmul.f32 %v8188_v44, %v8188_v44 }
 0x4db   : > { %v4752_v16 = vadd.f32 %v4751_v43, %v4750_v4  ;;  %v8339_v43 = vsel %vm373_vm0, %v2397_v49, %v8318_v21 }
 0x4dd   : > { %v4754_v14 = vadd.f32 %v4753_v18, %v4752_v16  ;;  %v8342_v18 = vsel %vm563_vm1, %v2581_v28, %v2583_v52  ;;  %v4761_v52 = vsel %vm1496_vm5, %v4715_v1, 0.0 }
 0x4de   : > { %2744 = vrot.lane.b32.xlu0 %v8342_v18, %s5784_s25  ;;  %3216 = vrot.lane.b32.xlu1 %v8339_v43, %s5788_s12 }
 0x4df   : > { %v4756_v4 = vadd.f32 %v4755_v57, %v4754_v14  ;;  %v4759_v14 = vsel %vm1496_vm5, %v4714_v56, 0.0  ;;  %v2586_v57 = vrot.slane %v8272_v63, 1  ;;  %v2580_v56 = vrot.slane %v8292_v47, 1 }
 0x4e1   : > { %v4758_v16 = vadd.f32 %v4757_v42, %v4756_v4  ;;  %v2585_v4 = vrot.slane %v8275_v60, 1  ;;  %v8358_v42 = vsel %vm639_vm2, %v2656_v11, %v2658_v6  ;;  %v4765_v6 = vsel %vm1496_vm5, %v4717_v50, 0.0 }
 0x4e2   : > { %2834 = vrot.lane.b32.xlu0 %v8358_v42, %s5781_s29  ;;  %2932 = vrot.lane.b32.xlu1 %v8339_v43, %s5786_s28  ;;  %v2582_v25 = vsel %vm563_vm1, %v2580_v56, %v2581_v28  ;;  %v4721_v28 = vmul.f32 %v8197_v26, %v8197_v26 }
 0x4e3   : > { %v4760_v49 = vadd.f32 %v4759_v14, %v4758_v16  ;;  %v4763_v16 = vsel %vm1496_vm5, %v4716_v41, 0.0  ;;  %v4719_v14 = vmul.f32 %v8191_v3, %v8191_v3  ;;  %v2587_v41 = vsel %vm563_vm1, %v2585_v4, %v2586_v57 }
 0x4e5   : > { %v4762_v62 = vadd.f32 %v4761_v52, %v4760_v49  ;;  %v2661_v49 = vrot.slane %v8272_v63, 2  ;;  %v2660_v52 = vrot.slane %v8275_v60, 2  ;;  %v4769_v4 = vsel %vm1496_vm5, %v4719_v14, 0.0  ;;  %v3737_v14 = vld [vmem:[%s10145_s2 + $0x8] sm:$0xff] }
 0x4e6   : > { %2742 = vrot.lane.b32.xlu1 %v2582_v25, %s5784_s25  ;;  %2746 = vrot.lane.b32.xlu0 %v2587_v41, %s5784_s25 }
 0x4e7   : > { %v4764_v1 = vadd.f32 %v4763_v16, %v4762_v62  ;;  %v4720_v62 = vmul.f32 %v8194_v37, %v8194_v37  ;;  %v4767_v16 = vsel %vm1496_vm5, %v4718_v53, 0.0  ;;  %v2662_v24 = vsel %vm639_vm2, %v2660_v52, %v2661_v49 }
 0x4e8   : > { %v4722_v53 = vmul.f32 %v8200_v9, %v8200_v9  ;;  %v4773_v52 = vsel %vm1496_vm5, %v4721_v28, 0.0  ;;  %v3739_v28 = vld [vmem:[%s10145_s2 + $0x18] sm:$0xff] }
 0x4e9   : > { %v4766_v32 = vadd.f32 %v4765_v6, %v4764_v1  ;;  %v8387_v1 = vsel %vm639_vm2, %v2655_v30, %v2656_v11  ;;  %v4771_v29 = vsel %vm1496_vm5, %v4720_v62, 0.0  ;;  %v3736_v11 = vld [vmem:[%s10145_s2] sm:$0xff]  ;;  %v4723_v6 = vmul.f32 %v8203_v59, %v8203_v59 }
 0x4ea   : > { %2832 = vrot.lane.b32.xlu1 %v8387_v1, %s5781_s29  ;;  %3114 = vrot.lane.b32.xlu0 %v2662_v24, %s5789_s26  ;;  %v5567_v62 = vpack.c.bf16 %v3737_v14, %v3736_v11  ;;  %v4726_v11 = vmul.f32 %v8212_v54, %v8212_v54 }
 0x4eb   : > { %v4768_v50 = vadd.f32 %v4767_v16, %v4766_v32  ;;  %v2535_v32 = vsel %vm373_vm0, %v8260_v34, %v2487_v33  ;;  %v4724_v33 = vmul.f32 %v8206_v23, %v8206_v23  ;;  %v4775_v34 = vsel %vm1496_vm5, %v4722_v53, 0.0 }
 0x4ec   : > { %5568 = vmatprep.subr.bf16.mxu1 %v5567_v62 }
 0x4ed   : > { %v4770_v56 = vadd.f32 %v4769_v4, %v4768_v50  ;;  %v2588_v50 = vrot.slane %v2535_v32, 1  ;;  %5570 = vmatpush3.bf16.msra.mxu1 %v5567_v62  ;;  %v4779_v14 = vsel %vm1496_vm5, %v4724_v33, 0.0  ;;  %v4727_v62 = vmul.f32 %v8215_v40, %v8215_v40 }
 0x4ee   : > { %2836 = vrot.lane.b32.xlu0 %v2662_v24, %s5781_s29  ;;  %3018 = vrot.lane.b32.xlu1 %v2587_v41, %s5787_s8 }
 0x4ef   : > { %v4772_v30 = vadd.f32 %v4771_v29, %v4770_v56  ;;  %v3738_v56 = vld [vmem:[%s10145_s2 + $0x10] sm:$0xff]  ;;  %v4725_v29 = vmul.f32 %v8209_v7, %v8209_v7  ;;  %v2589_v41 = vsel %vm563_vm1, %v2586_v57, %v2588_v50  ;;  %v3741_v57 = vld [vmem:[%s10145_s2 + $0x28] sm:$0xff] }
 0x4f0   : > { %v5571_v53 = vpack.c.bf16 %v3739_v28, %v3738_v56  ;;  %v4783_v56 = vsel %vm1496_vm5, %v4726_v11, 0.0  ;;  %v4730_v11 = vmul.f32 %v8224_v55, %v8224_v55 }
 0x4f1   : > { %v4774_v16 = vadd.f32 %v4773_v52, %v4772_v30  ;;  %v4777_v30 = vsel %vm1496_vm5, %v4723_v6, 0.0  ;;  %v3740_v6 = vld [vmem:[%s10145_s2 + $0x20] sm:$0xff] }
 0x4f2   : > { %3300 = vrot.lane.b32.xlu0 %v2582_v25, %s5790_s23  ;;  %3020 = vrot.lane.b32.xlu1 %v2589_v41, %s5787_s8  ;;  %v5575_v50 = vpack.c.bf16 %v3741_v57, %v3740_v6  ;;  %v3744_v6 = vld [vmem:[%s10145_s2 + $0x40] sm:$0xff] }
 0x4f3   : > { %v4776_v4 = vadd.f32 %v4775_v34, %v4774_v16  ;;  %5572 = vmatprep.subr.bf16.mxu1 %v5571_v53  ;;  %v4781_v16 = vsel %vm1496_vm5, %v4725_v29, 0.0  ;;  %v2663_v34 = vrot.slane %v2535_v32, 2  ;;  %v3743_v29 = vld [vmem:[%s10145_s2 + $0x38] sm:$0xff]  ;;  %v4729_v32 = vmul.f32 %v8221_v39, %v8221_v39 }
 0x4f4   : > { %5574 = vmatpush3.bf16.msra.mxu1 %v5571_v53  ;;  %v4785_v53 = vsel %vm1496_vm5, %v4727_v62, 0.0 }
 0x4f5   : > { %v4778_v24 = vadd.f32 %v4777_v30, %v4776_v4  ;;  %v4728_v4 = vmul.f32 %v8218_v17, %v8218_v17  ;;  %5576 = vmatprep.subr.bf16.mxu1 %v5575_v50  ;;  %v3742_v30 = vld [vmem:[%s10145_s2 + $0x30] sm:$0xff]  ;;  %v4789_v57 = vsel %vm1496_vm5, %v4729_v32, 0.0 }
 0x4f6   : > { %3022 = vrot.lane.b32.xlu0 %v2582_v25, %s5787_s8  ;;  %2748 = vrot.lane.b32.xlu1 %v2589_v41, %s5784_s25  ;;  %v2664_v41 = vsel %vm639_vm2, %v2661_v49, %v2663_v34  ;;  %v4731_v49 = vmul.f32 %v8227_v20, %v8227_v20 }
 0x4f7   : > { %v4780_v52 = vadd.f32 %v4779_v14, %v4778_v24  ;;  %v5579_v24 = vpack.c.bf16 %v3743_v29, %v3742_v30  ;;  %v4787_v14 = vsel %vm1496_vm5, %v4728_v4, 0.0  ;;  %v2590_v4 = vrot.slane %v8324_v0, 1 }
 0x4f8   : > { %5578 = vmatpush3.bf16.msra.mxu1 %v5575_v50 }
 0x4f9   : > { %v4782_v33 = vadd.f32 %v4781_v16, %v4780_v52  ;;  %5580 = vmatprep.subr.bf16.mxu1 %v5579_v24  ;;  %v4791_v16 = vsel %vm1496_vm5, %v4730_v11, 0.0 }
 0x4fa   : > { %3390 = vrot.lane.b32.xlu0 %v8387_v1, %s5791_s7  ;;  %3116 = vrot.lane.b32.xlu1 %v2664_v41, %s5789_s26 }
 0x4fb   : > { %v4784_v28 = vadd.f32 %v4783_v56, %v4782_v33  ;;  %v4793_v33 = vsel %vm1496_vm5, %v4731_v49, 0.0  ;;  %v2591_v56 = vrot.slane %v8339_v43, 1 }
 0x4fc   : > { %5582 = vmatpush3.bf16.msra.mxu1 %v5579_v24 }
 0x4fd   : > { %v4786_v25 = vadd.f32 %v4785_v53, %v4784_v28  ;;  %5459 = vmatprep.subr.mxu1 %v3744_v6  ;;  %v10465_v28 = vmax.f32 %v8286_v46, 0.0  ;;  %v2592_v32 = vsel %vm563_vm1, %v2590_v4, %v2591_v56 }
 0x4fe   : > { %3118 = vrot.lane.b32.xlu0 %v8387_v1, %s5789_s26  ;;  %2838 = vrot.lane.b32.xlu1 %v2664_v41, %s5781_s29  ;;  %v2666_v41 = vrot.slane %v8339_v43, 2 }
 0x4ff   : > { %v4788_v52 = vadd.f32 %v4787_v14, %v4786_v25  ;;  %v2488_v30 = vrot.slane %v10465_v28, 5  ;;  %v2665_v25 = vrot.slane %v8324_v0, 2 }
 0x500   : > { %5460 = vmatpush3.msra.mxu1 %v3744_v6 }
 0x501   : > { %v4790_v62 = vadd.f32 %v4789_v57, %v4788_v52  ;;  %v2536_v53 = vsel %vm373_vm0, %v8318_v21, %v2488_v30  ;;  %v2667_v6 = vsel %vm639_vm2, %v2665_v25, %v2666_v41  ;;  %v10466_v21 = vld [vmem:[#allocation64_spill] sm:$0xff]  ;;  %v10467_v57 = vld [vmem:[#allocation66_spill] sm:$0xff] }
 0x502   : > { %3120 = vrot.lane.b32.xlu0 %v8358_v42, %s5789_s26  ;;  %3302 = vrot.lane.b32.xlu1 %v8342_v18, %s5790_s23  ;;  %v2593_v11 = vrot.slane %v2536_v53, 1  ;;  %v2269_v49 = vmul.f32 %v8229_v10, %v10466_v21  ;;  %v10483_v21 = vld [vmem:[#allocation69_spill] sm:$0xff] }
 0x503   : > { %v4792_v50 = vadd.f32 %v4791_v16, %v4790_v62  ;;  %v2270_v62 = vmul.f32 %v8229_v10, %v10467_v57 }
 0x505   : > { %v4794_v34 = vadd.f32 %v4793_v33, %v4792_v50  ;;  %v2668_v33 = vrot.slane %v2536_v53, 2 }
 0x506   : > { %3304 = vrot.lane.b32.xlu0 %v2592_v32, %s5790_s23  ;;  %3024 = vrot.lane.b32.xlu1 %v8342_v18, %s5787_s8  ;;  %v2594_v18 = vsel %vm563_vm1, %v2591_v56, %v2593_v11 }
 0x507   : > { %v4795_v1 = vrot.slane %v4794_v34, 4  ;;  %v2669_v4 = vsel %vm639_vm2, %v2666_v41, %v2668_v33 }
 0x509   : > { %v4796_v29 = vadd.f32 %v4795_v1, %v4794_v34  ;;  %v2302_v34 = vmax.f32 %v2270_v62, 0.0  ;;  %v10484_v62 = vld [vmem:[#allocation44_spill] sm:$0xff] }
 0x50a   : > { %3026 = vrot.lane.b32.xlu0 %v2592_v32, %s5787_s8  ;;  %3392 = vrot.lane.b32.xlu1 %v8358_v42, %s5791_s7  ;;  %v2301_v42 = vmax.f32 %v2269_v49, 0.0  ;;  %v2271_v49 = vmul.f32 %v8229_v10, %v10483_v21 }
 0x50b   : > { %v4797_v46 = vrot.slane %v4796_v29, 2  ;;  %v2401_v30 = vrot.slane %v2302_v34, 7  ;;  %v2489_v25 = vrot.slane %v2302_v34, 5 }
 0x50c   : > { %v2346_v56 = vrot.slane %v2301_v42, 1  ;;  %v2400_v28 = vrot.slane %v2301_v42, 7 }
 0x50d   : > { %v4798_v24 = vadd.f32 %v4797_v46, %v4796_v29 }
 0x50e   : > { %3394 = vrot.lane.b32.xlu0 %v2667_v6, %s5791_s7  ;;  %3306 = vrot.lane.b32.xlu1 %v2594_v18, %s5790_s23  ;;  %v8507_v1 = vsel %vm373_vm0, %v2400_v28, %v2401_v30  ;;  %v8510_v29 = vsel %vm373_vm0, %v2346_v56, %v2400_v28 }
 0x50f   : > { %v4799_v14 = vrot.slane %v4798_v24, 1  ;;  %v2595_v46 = vrot.slane %v8510_v29, 1 }
 0x511   : > { %v4800_v52 = vadd.f32 %v4799_v14, %v4798_v24  ;;  %v2596_v24 = vrot.slane %v8507_v1, 1 }
 0x512   : > { %3028 = vrot.lane.b32.xlu0 %v2594_v18, %s5787_s8  ;;  %2750 = vrot.lane.b32.xlu1 %v2592_v32, %s5784_s25 }
 0x513   : > { %v4801_v16 = vmul.f32 0.00390625, %v4800_v52  ;;  %v2597_v14 = vsel %vm563_vm1, %v2595_v46, %v2596_v24 }
 0x515   : > { %v4802_v50 = vadd.f32 1e-05, %v4801_v16  ;;  %v2272_v16 = vmul.f32 %v8229_v10, %v10484_v62 }
 0x516   : > { %3396 = vrot.lane.b32.xlu0 %v2669_v4, %s5791_s7  ;;  %3122 = vrot.lane.b32.xlu1 %v2667_v6, %s5789_s26 }
 0x517   : > { %5677 = vrsqrt.f32 %v4802_v50  ;;  %v2303_v50 = vmax.f32 %v2271_v49, 0.0  ;;  %v2304_v42 = vmax.f32 %v2272_v16, 0.0 }
 0x519   : > { %v2347_v34 = vrot.slane %v2303_v50, 1  ;;  %v2404_v56 = vrot.slane %v2304_v42, 7 }
 0x51a   : > { %2840 = vrot.lane.b32.xlu0 %v2667_v6, %s5781_s29  ;;  %2752 = vrot.lane.b32.xlu1 %v2594_v18, %s5784_s25 }
 0x51e   : > { %3218 = vrot.lane.b32.xlu0 %v8510_v29, %s5788_s12  ;;  %3124 = vrot.lane.b32.xlu1 %v2669_v4, %s5789_s26 }
 0x521   : > { %v8512_v32 = vpop.eup %5677 }
 0x522   : > { %v8516_v53 = vmul.f32 %v8512_v32, %v8224_v55  ;;  %v8525_v41 = vmul.f32 %v8512_v32, %v8182_v27  ;;  %v8529_v11 = vmul.f32 %v8512_v32, %v8185_v15  ;;  %v8533_v55 = vmul.f32 %v8512_v32, %v8188_v44  ;;  %2934 = vrot.lane.b32.xlu0 %v8510_v29, %s5786_s28 }
 0x523   : > { %v8540_v52 = vmul.f32 %v8512_v32, %v8191_v3  ;;  %v8544_v27 = vmul.f32 %v8512_v32, %v8194_v37  ;;  %v8548_v15 = vmul.f32 %v8512_v32, %v8197_v26  ;;  %v8552_v44 = vmul.f32 %v8512_v32, %v8200_v9  ;;  %2842 = vrot.lane.b32.xlu1 %v2669_v4, %s5781_s29 }
 0x524   : > { %10468 = vst [vmem:[#allocation49_spill] sm:$0xff] %v8525_v41  ;;  %10469 = vst [vmem:[#allocation72_spill] sm:$0xff] %v8529_v11  ;;  %v8557_v6 = vmul.f32 %v8512_v32, %v8203_v59  ;;  %v8561_v3 = vmul.f32 %v8512_v32, %v8206_v23  ;;  %v8565_v37 = vmul.f32 %v8512_v32, %v8209_v7  ;;  %v2403_v4 = vrot.slane %v2303_v50, 7 }
 0x525   : > { %10470 = vst [vmem:[#allocation73_spill] sm:$0xff] %v8533_v55  ;;  %10471 = vst [vmem:[#allocation55_spill] sm:$0xff] %v8540_v52  ;;  %v8569_v26 = vmul.f32 %v8512_v32, %v8212_v54  ;;  %v8573_v9 = vmul.f32 %v8512_v32, %v8215_v40  ;;  %v8577_v59 = vmul.f32 %v8512_v32, %v8218_v17  ;;  %v2670_v40 = vrot.slane %v8510_v29, 2  ;;  %v10487_v55 = vld [vmem:[#allocation36_spill] sm:$0xff] }
 0x526   : > { %10472 = vst [vmem:[#allocation8_spill] sm:$0xff] %v8544_v27  ;;  %10473 = vst [vmem:[#allocation9_spill] sm:$0xff] %v8548_v15  ;;  %v8581_v23 = vmul.f32 %v8512_v32, %v8221_v39  ;;  %v8585_v7 = vmul.f32 %v8512_v32, %v8227_v20  ;;  %3308 = vrot.lane.b32.xlu0 %v2597_v14, %s5790_s23  ;;  %v2537_v54 = vsel %vm373_vm0, %v2401_v30, %v2489_v25 }
 0x527   : > { %10474 = vst [vmem:[#allocation10_spill] sm:$0xff] %v8552_v44  ;;  %10475 = vst [vmem:[#allocation11_spill] sm:$0xff] %v8557_v6  ;;  %3220 = vrot.lane.b32.xlu1 %v8507_v1, %s5788_s12  ;;  %v2671_v17 = vrot.slane %v8507_v1, 2  ;;  %v2598_v18 = vrot.slane %v2537_v54, 1  ;;  %v2673_v57 = vrot.slane %v2537_v54, 2  ;;  %v8612_v28 = vsel %vm373_vm0, %v2347_v34, %v2403_v4 }
 0x528   : > { %10476 = vst [vmem:[#allocation12_spill] sm:$0xff] %v8561_v3  ;;  %10477 = vst [vmem:[#allocation13_spill] sm:$0xff] %v8565_v37  ;;  %v8615_v30 = vsel %vm373_vm0, %v2403_v4, %v2404_v56  ;;  %v2600_v25 = vrot.slane %v8612_v28, 1  ;;  %v2490_v54 = vrot.slane %v2304_v42, 5  ;;  %v2675_v49 = vrot.slane %v8612_v28, 2 }
 0x529   : > { %10478 = vst [vmem:[#allocation14_spill] sm:$0xff] %v8569_v26  ;;  %10479 = vst [vmem:[#allocation15_spill] sm:$0xff] %v8573_v9  ;;  %v2672_v39 = vsel %vm639_vm2, %v2670_v40, %v2671_v17  ;;  %v2599_v20 = vsel %vm563_vm1, %v2596_v24, %v2598_v18  ;;  %v2674_v33 = vsel %vm639_vm2, %v2671_v17, %v2673_v57  ;;  %v2676_v57 = vrot.slane %v8615_v30, 2 }
 0x52a   : > { %10480 = vst [vmem:[#allocation18_spill] sm:$0xff] %v8577_v59  ;;  %10481 = vst [vmem:[#allocation19_spill] sm:$0xff] %v8581_v23  ;;  %3030 = vrot.lane.b32.xlu0 %v2597_v14, %s5787_s8  ;;  %v2275_v11 = vmul.f32 %v8229_v10, %v10487_v55 }
 0x52b   : > { %10482 = vst [vmem:[#allocation20_spill] sm:$0xff] %v8585_v7  ;;  %2936 = vrot.lane.b32.xlu1 %v8507_v1, %s5786_s28  ;;  %v10486_v7 = vld [vmem:[#allocation68_spill] sm:$0xff] }
 0x52c   : > { %v2274_v23 = vmul.f32 %v8229_v10, %v10486_v7 }
 0x52e   : > { %3398 = vrot.lane.b32.xlu0 %v2672_v39, %s5791_s7  ;;  %v2306_v9 = vmax.f32 %v2274_v23, 0.0 }
 0x52f   : > { %3310 = vrot.lane.b32.xlu1 %v2599_v20, %s5790_s23 }
 0x530   : > { %v2407_v37 = vrot.slane %v2306_v9, 7 }
 0x532   : > { %3032 = vrot.lane.b32.xlu0 %v2599_v20, %s5787_s8 }
 0x533   : > { %2754 = vrot.lane.b32.xlu1 %v2597_v14, %s5784_s25  ;;  %v2601_v14 = vrot.slane %v8615_v30, 1 }
 0x535   : > { %v2602_v18 = vsel %vm563_vm1, %v2600_v25, %v2601_v14 }
 0x536   : > { %3400 = vrot.lane.b32.xlu0 %v2674_v33, %s5791_s7 }
 0x537   : > { %3126 = vrot.lane.b32.xlu1 %v2672_v39, %s5789_s26 }
 0x53a   : > { %2844 = vrot.lane.b32.xlu0 %v2672_v39, %s5781_s29  ;;  %v2538_v39 = vsel %vm373_vm0, %v2404_v56, %v2490_v54  ;;  %v10485_v56 = vld [vmem:[#allocation27_spill] sm:$0xff] }
 0x53b   : > { %2756 = vrot.lane.b32.xlu1 %v2599_v20, %s5784_s25  ;;  %v2603_v62 = vrot.slane %v2538_v39, 1  ;;  %v2273_v25 = vmul.f32 %v8229_v10, %v10485_v56  ;;  %v2678_v54 = vrot.slane %v2538_v39, 2 }
 0x53d   : > { %v2604_v42 = vsel %vm563_vm1, %v2601_v14, %v2603_v62  ;;  %v2305_v62 = vmax.f32 %v2273_v25, 0.0  ;;  %v2679_v59 = vsel %vm639_vm2, %v2676_v57, %v2678_v54 }
 0x53e   : > { %3222 = vrot.lane.b32.xlu0 %v8612_v28, %s5788_s12 }
 0x53f   : > { %3128 = vrot.lane.b32.xlu1 %v2674_v33, %s5789_s26  ;;  %v2348_v7 = vrot.slane %v2305_v62, 1  ;;  %v2406_v26 = vrot.slane %v2305_v62, 7 }
 0x540   : > { %v8620_v46 = vpop.permute.xlu0 %2924  ;;  %v2923_v24 = vpop.permute.xlu1 %2922 }
 0x541   : > { %v8675_v25 = vsel %vm373_vm0, %v2348_v7, %v2406_v26  ;;  %v8678_v23 = vsel %vm373_vm0, %v2406_v26, %v2407_v37 }
 0x542   : > { %2938 = vrot.lane.b32.xlu0 %v8612_v28, %s5786_s28  ;;  %v2605_v62 = vrot.slane %v8675_v25, 1  ;;  %v2606_v7 = vrot.slane %v8678_v23, 1 }
 0x543   : > { %2846 = vrot.lane.b32.xlu1 %v2674_v33, %s5781_s29  ;;  %v2677_v33 = vsel %vm639_vm2, %v2675_v49, %v2676_v57 }
 0x544   : > { %v8627_v40 = vpop.permute.xlu0 %3210  ;;  %v8629_v17 = vpop.permute.xlu1 %3212  ;;  %v2607_v6 = vsel %vm563_vm1, %v2605_v62, %v2606_v7  ;;  %v2681_v62 = vrot.slane %v8678_v23, 2 }
 0x546   : > { %3312 = vrot.lane.b32.xlu0 %v2602_v18, %s5790_s23 }
 0x547   : > { %3224 = vrot.lane.b32.xlu1 %v8615_v30, %s5788_s12 }
 0x548   : > { %v8636_v20 = vpop.permute.xlu0 %2926  ;;  %v8638_v21 = vpop.permute.xlu1 %2928 }
 0x54a   : > { %3034 = vrot.lane.b32.xlu0 %v2602_v18, %s5787_s8 }
 0x54b   : > { %2940 = vrot.lane.b32.xlu1 %v8615_v30, %s5786_s28 }
 0x54c   : > { %v8645_v16 = vpop.permute.xlu0 %2930  ;;  %v8647_v50 = vpop.permute.xlu1 %3214 }
 0x54e   : > { %3402 = vrot.lane.b32.xlu0 %v2677_v33, %s5791_s7 }
 0x54f   : > { %3314 = vrot.lane.b32.xlu1 %v2604_v42, %s5790_s23 }
 0x550   : > { %v8653_v34 = vpop.permute.xlu0 %2744  ;;  %v8655_v4 = vpop.permute.xlu1 %3216 }
 0x552   : > { %3036 = vrot.lane.b32.xlu0 %v2604_v42, %s5787_s8 }
 0x553   : > { %2758 = vrot.lane.b32.xlu1 %v2602_v18, %s5784_s25 }
 0x554   : > { %v8663_v49 = vpop.permute.xlu0 %2834  ;;  %v8665_v14 = vpop.permute.xlu1 %2932 }
 0x556   : > { %3404 = vrot.lane.b32.xlu0 %v2679_v59, %s5791_s7 }
 0x557   : > { %3130 = vrot.lane.b32.xlu1 %v2677_v33, %s5789_s26 }
 0x558   : > { %v2743_v39 = vpop.permute.xlu1 %2742  ;;  %v8670_v56 = vpop.permute.xlu0 %2746 }
 0x559   : > { %v3480_v57 = vsel %vm1496_vm5, %v8292_v47, %v2743_v39  ;;  %v2491_v47 = vrot.slane %v2306_v9, 5 }
 0x55a   : > { %2848 = vrot.lane.b32.xlu0 %v2677_v33, %s5781_s29 }
 0x55b   : > { %2760 = vrot.lane.b32.xlu1 %v2604_v42, %s5784_s25 }
 0x55c   : > { %v2833_v18 = vpop.permute.xlu1 %2832  ;;  %v3115_v3 = vpop.permute.xlu0 %3114 }
 0x55d   : > { %v8685_v54 = vsel %vm1560_vm7, %v3480_v57, %v2833_v18 }
 0x55e   : > { %3226 = vrot.lane.b32.xlu0 %v8675_v25, %s5788_s12  ;;  %v3540_v26 = vsel %vm1626_vm9, %v8685_v54, %v2923_v24  ;;  %v2539_v24 = vsel %vm373_vm0, %v2407_v37, %v2491_v47 }
 0x55f   : > { %3132 = vrot.lane.b32.xlu1 %v2679_v59, %s5789_s26 }
 0x560   : > { %v2837_v33 = vpop.permute.xlu0 %2836  ;;  %v3019_v42 = vpop.permute.xlu1 %3018 }
 0x561   : > { %v3572_v39 = vsel %vm1692_vm11, %v3540_v26, %v3019_v42  ;;  %v2680_v42 = vrot.slane %v8675_v25, 2 }
 0x562   : > { %2942 = vrot.lane.b32.xlu0 %v8675_v25, %s5786_s28  ;;  %v3605_v44 = vsel %vm3604_vm13, %v3572_v39, %v3115_v3  ;;  %v2608_v3 = vrot.slane %v2539_v24, 1 }
 0x563   : > { %2850 = vrot.lane.b32.xlu1 %v2679_v59, %s5781_s29  ;;  %v3638_v59 = vsel %vm3637_vm14, %v3605_v44, %v8627_v40  ;;  %v2682_v39 = vsel %vm639_vm2, %v2680_v42, %v2681_v62  ;;  %v3481_v42 = vsel %vm1496_vm5, %v8295_v48, %v8653_v34 }
 0x564   : > { %v3301_v18 = vpop.permute.xlu0 %3300  ;;  %v3021_v57 = vpop.permute.xlu1 %3020  ;;  %v2609_v40 = vsel %vm563_vm1, %v2606_v7, %v2608_v3  ;;  %v8726_v7 = vsel %vm1560_vm7, %v3481_v42, %v8663_v49 }
 0x565   : > { %v3671_v37 = vsel %vm3670_vm15, %v3638_v59, %v3301_v18  ;;  %v2683_v18 = vrot.slane %v2539_v24, 2  ;;  %v10488_v59 = vld [vmem:[#allocation45_spill] sm:$0xff]  ;;  %v3541_v48 = vsel %vm1626_vm9, %v8726_v7, %v8620_v46 }
 0x566   : > { %3316 = vrot.lane.b32.xlu0 %v2607_v6, %s5790_s23  ;;  %v2276_v41 = vmul.f32 %v8229_v10, %v10488_v59 }
 0x567   : > { %3228 = vrot.lane.b32.xlu1 %v8678_v23, %s5788_s12  ;;  %v2684_v55 = vsel %vm639_vm2, %v2681_v62, %v2683_v18 }
 0x568   : > { %v3023_v9 = vpop.permute.xlu0 %3022  ;;  %v2749_v15 = vpop.permute.xlu1 %2748  ;;  %v2308_v24 = vmax.f32 %v2276_v41, 0.0 }
 0x56a   : > { %3038 = vrot.lane.b32.xlu0 %v2607_v6, %s5787_s8  ;;  %v2410_v59 = vrot.slane %v2308_v24, 7 }
 0x56b   : > { %2944 = vrot.lane.b32.xlu1 %v8678_v23, %s5786_s28 }
 0x56c   : > { %v3391_v26 = vpop.permute.xlu0 %3390  ;;  %v3117_v47 = vpop.permute.xlu1 %3116 }
 0x56d   : > { %v3704_v44 = vsel %vm3703_vm3, %v3671_v37, %v3391_v26  ;;  %v2307_v26 = vmax.f32 %v2275_v11, 0.0 }
 0x56e   : > { %3406 = vrot.lane.b32.xlu0 %v2682_v39, %s5791_s7  ;;  %5461 = vmatprep.mubr.msk.f32.mxu1 %vm3745_vm4, %v3704_v44  ;;  %v3482_v44 = vsel %vm1496_vm5, %v8275_v60, %v8670_v56 }
 0x56f   : > { %3318 = vrot.lane.b32.xlu1 %v2609_v40, %s5790_s23  ;;  %v3512_v34 = vsel %vm1560_vm7, %v3482_v44, %v2837_v33  ;;  %v2349_v62 = vrot.slane %v2307_v26, 1  ;;  %v2409_v18 = vrot.slane %v2307_v26, 7  ;;  %v3483_v33 = vsel %vm1496_vm5, %v8272_v63, %v2749_v15 }
 0x570   : > { %v3119_v27 = vpop.permute.xlu0 %3118  ;;  %v2839_v52 = vpop.permute.xlu1 %2838  ;;  %v3542_v60 = vsel %vm1626_vm9, %v3512_v34, %v8636_v20 }
 0x571   : > { %v3574_v46 = vsel %vm1692_vm11, %v3542_v60, %v3023_v9  ;;  %v3513_v20 = vsel %vm1560_vm7, %v3483_v33, %v2839_v52  ;;  %v8757_v9 = vsel %vm373_vm0, %v2349_v62, %v2409_v18 }
 0x572   : > { %3040 = vrot.lane.b32.xlu0 %v2609_v40, %s5787_s8  ;;  %v2685_v60 = vrot.slane %v8757_v9, 2 }
 0x573   : > { %2762 = vrot.lane.b32.xlu1 %v2607_v6, %s5784_s25  ;;  %v3573_v6 = vsel %vm1692_vm11, %v3541_v48, %v3021_v57  ;;  %v3607_v57 = vsel %vm3604_vm13, %v3574_v46, %v3119_v27  ;;  %v3543_v27 = vsel %vm1626_vm9, %v3513_v20, %v8638_v21  ;;  %v2610_v48 = vrot.slane %v8757_v9, 1 }
 0x574   : > { %v3121_v3 = vpop.permute.xlu0 %3120  ;;  %v3303_v37 = vpop.permute.xlu1 %3302  ;;  %v3606_v11 = vsel %vm3604_vm13, %v3573_v6, %v3117_v47  ;;  %v3640_v63 = vsel %vm3637_vm14, %v3607_v57, %v8647_v50  ;;  %v2492_v50 = vrot.slane %v2308_v24, 5 }
 0x575   : > { %v3639_v56 = vsel %vm3637_vm14, %v3606_v11, %v8629_v17  ;;  %v8760_v17 = vsel %vm373_vm0, %v2409_v18, %v2410_v59 }
 0x576   : > { %3408 = vrot.lane.b32.xlu0 %v2684_v55, %s5791_s7  ;;  %v3672_v47 = vsel %vm3670_vm15, %v3639_v56, %v3303_v37  ;;  %v2611_v34 = vrot.slane %v8760_v17, 1  ;;  %v2540_v24 = vsel %vm373_vm0, %v2410_v59, %v2492_v50  ;;  %v2686_v46 = vrot.slane %v8760_v17, 2 }
 0x577   : > { %3134 = vrot.lane.b32.xlu1 %v2682_v39, %s5789_s26 }
 0x578   : > { %v3305_v49 = vpop.permute.xlu0 %3304  ;;  %v3025_v41 = vpop.permute.xlu1 %3024  ;;  %v2687_v33 = vsel %vm639_vm2, %v2685_v60, %v2686_v46 }
 0x579   : > { %v3673_v52 = vsel %vm3670_vm15, %v3640_v63, %v3305_v49  ;;  %v3575_v37 = vsel %vm1692_vm11, %v3543_v27, %v3025_v41  ;;  %v2612_v49 = vsel %vm563_vm1, %v2610_v48, %v2611_v34  ;;  %v2688_v63 = vrot.slane %v2540_v24, 2 }
 0x57a   : > { %2852 = vrot.lane.b32.xlu0 %v2682_v39, %s5781_s29  ;;  %v3608_v21 = vsel %vm3604_vm13, %v3575_v37, %v3121_v3 }
 0x57b   : > { %2764 = vrot.lane.b32.xlu1 %v2609_v40, %s5784_s25  ;;  %v3641_v41 = vsel %vm3637_vm14, %v3608_v21, %v8655_v4  ;;  %v2613_v4 = vrot.slane %v2540_v24, 1 }
 0x57c   : > { %v8752_v42 = vpop.permute.xlu0 %3026  ;;  %v3393_v26 = vpop.permute.xlu1 %3392 }
 0x57d   : > { %v3705_v39 = vsel %vm3703_vm3, %v3672_v47, %v3393_v26  ;;  %v2614_v57 = vsel %vm563_vm1, %v2611_v34, %v2613_v4  ;;  %v10489_v26 = vld [vmem:[#allocation43_spill] sm:$0xff] }
 0x57e   : > { %3230 = vrot.lane.b32.xlu0 %v8757_v9, %s5788_s12  ;;  %5462 = vmatmul.mubr.msk.f32.vlgmr.msra.gmra.mrb[0].mxu1 %vm3745_vm4, %v3705_v39  ;;  %v2277_v20 = vmul.f32 %v8229_v10, %v10489_v26 }
 0x57f   : > { %3136 = vrot.lane.b32.xlu1 %v2684_v55, %s5789_s26 }
 0x580   : > { %v3395_v15 = vpop.permute.xlu0 %3394  ;;  %v3307_v40 = vpop.permute.xlu1 %3306 }
 0x581   : > { %v3706_v44 = vsel %vm3703_vm3, %v3673_v52, %v3395_v15  ;;  %v10490_v52 = vld [vmem:[#allocation47_spill] sm:$0xff] }
 0x582   : > { %2946 = vrot.lane.b32.xlu0 %v8757_v9, %s5786_s28  ;;  %5464 = vmatprep.mubr.msk.f32.mxu1 %vm3745_vm4, %v3706_v44  ;;  %v2278_v27 = vmul.f32 %v8229_v10, %v10490_v52  ;;  %v2689_v44 = vsel %vm639_vm2, %v2686_v46, %v2688_v63 }
 0x583   : > { %2854 = vrot.lane.b32.xlu1 %v2684_v55, %s5781_s29  ;;  %v3674_v55 = vsel %vm3670_vm15, %v3641_v41, %v3307_v40  ;;  %v2309_v40 = vmax.f32 %v2277_v20, 0.0 }
 0x584   : > { %v8780_v6 = vpop.permute.xlu0 %3028  ;;  %v8782_v11 = vpop.permute.xlu1 %2750  ;;  %v2310_v48 = vmax.f32 %v2278_v27, 0.0 }
 0x585   : > { %v2350_v50 = vrot.slane %v2309_v40, 1  ;;  %v2412_v21 = vrot.slane %v2309_v40, 7 }
 0x586   : > { %3320 = vrot.lane.b32.xlu0 %v2612_v49, %s5790_s23  ;;  %v2413_v24 = vrot.slane %v2310_v48, 7 }
 0x587   : > { %3232 = vrot.lane.b32.xlu1 %v8760_v17, %s5788_s12  ;;  %v8832_v60 = vsel %vm373_vm0, %v2350_v50, %v2412_v21 }
 0x588   : > { %v3397_v62 = vpop.permute.xlu0 %3396  ;;  %v3123_v3 = vpop.permute.xlu1 %3122  ;;  %v8835_v46 = vsel %vm373_vm0, %v2412_v21, %v2413_v24  ;;  %v2615_v26 = vrot.slane %v8832_v60, 1  ;;  %v2690_v21 = vrot.slane %v8832_v60, 2 }
 0x589   : > { %v3707_v18 = vsel %vm3703_vm3, %v3674_v55, %v3397_v62  ;;  %v2616_v20 = vrot.slane %v8835_v46, 1 }
 0x58a   : > { %3042 = vrot.lane.b32.xlu0 %v2612_v49, %s5787_s8  ;;  %5465 = vmatmul.mubr.msk.f32.gmra.mrb[2].mxu1 %vm3745_vm4, %v3707_v18 }
 0x58b   : > { %2948 = vrot.lane.b32.xlu1 %v8760_v17, %s5786_s28  ;;  %v2617_v40 = vsel %vm563_vm1, %v2615_v26, %v2616_v20  ;;  %v10492_v26 = vld [vmem:[#allocation51_spill] sm:$0xff] }
 0x58c   : > { %v8799_v56 = vpop.permute.xlu0 %2840  ;;  %v8801_v59 = vpop.permute.xlu1 %2752 }
 0x58e   : > { %3410 = vrot.lane.b32.xlu0 %v2687_v33, %s5791_s7 }
 0x58f   : > { %3322 = vrot.lane.b32.xlu1 %v2614_v57, %s5790_s23 }
 0x590   : > { %v3219_v47 = vpop.permute.xlu0 %3218  ;;  %v3125_v39 = vpop.permute.xlu1 %3124 }
 0x592   : > { %3044 = vrot.lane.b32.xlu0 %v2614_v57, %s5787_s8 }
 0x593   : > { %2766 = vrot.lane.b32.xlu1 %v2612_v49, %s5784_s25  ;;  %v3544_v49 = vsel %vm1626_vm9, %v8685_v54, %v8645_v16 }
 0x594   : > { %v8813_v15 = vpop.permute.xlu0 %2934  ;;  %v3576_v62 = vsel %vm1692_vm11, %v3544_v49, %v8752_v42  ;;  %v2691_v49 = vrot.slane %v8835_v46, 2 }
 0x595   : > { %v8815_v37 = vpop.permute.xlu1 %2842  ;;  %v3609_v4 = vsel %vm3604_vm13, %v3576_v62, %v3123_v3  ;;  %v2493_v3 = vrot.slane %v2310_v48, 5 }
 0x596   : > { %3412 = vrot.lane.b32.xlu0 %v2689_v44, %s5791_s7  ;;  %v3642_v16 = vsel %vm3637_vm14, %v3609_v4, %v3219_v47  ;;  %v3545_v47 = vsel %vm1626_vm9, %v8726_v7, %v8665_v14  ;;  %v2692_v62 = vsel %vm639_vm2, %v2690_v21, %v2691_v49 }
 0x597   : > { %3138 = vrot.lane.b32.xlu1 %v2687_v33, %s5789_s26  ;;  %v3577_v52 = vsel %vm1692_vm11, %v3545_v47, %v8780_v6  ;;  %v2541_v14 = vsel %vm373_vm0, %v2413_v24, %v2493_v3  ;;  %v2280_v3 = vmul.f32 %v8229_v10, %v10492_v26 }
 0x598   : > { %v3309_v34 = vpop.permute.xlu0 %3308 }
 0x599   : > { %v3221_v41 = vpop.permute.xlu1 %3220  ;;  %v3675_v54 = vsel %vm3670_vm15, %v3642_v16, %v3309_v34  ;;  %v3610_v34 = vsel %vm3604_vm13, %v3577_v52, %v3125_v39  ;;  %v2618_v39 = vrot.slane %v2541_v14, 1 }
 0x59a   : > { %2856 = vrot.lane.b32.xlu0 %v2687_v33, %s5781_s29  ;;  %v3643_v48 = vsel %vm3637_vm14, %v3610_v34, %v3221_v41 }
 0x59b   : > { %2768 = vrot.lane.b32.xlu1 %v2614_v57, %s5784_s25  ;;  %v2619_v4 = vsel %vm563_vm1, %v2616_v20, %v2618_v39 }
 0x59c   : > { %v8825_v55 = vpop.permute.xlu0 %3030 }
 0x59d   : > { %v8829_v18 = vpop.permute.xlu1 %2936 }
 0x59e   : > { %3234 = vrot.lane.b32.xlu0 %v8832_v60, %s5788_s12 }
 0x59f   : > { %3140 = vrot.lane.b32.xlu1 %v2689_v44, %s5789_s26 }
 0x5a0   : > { %v3399_v42 = vpop.permute.xlu0 %3398 }
 0x5a1   : > { %v3708_v33 = vsel %vm3703_vm3, %v3675_v54, %v3399_v42  ;;  %v3311_v57 = vpop.permute.xlu1 %3310  ;;  %v10491_v54 = vld [vmem:[#allocation48_spill] sm:$0xff] }
 0x5a2   : > { %2950 = vrot.lane.b32.xlu0 %v8832_v60, %s5786_s28  ;;  %5467 = vmatprep.mubr.msk.f32.mxu1 %vm3745_vm4, %v3708_v33  ;;  %v3676_v7 = vsel %vm3670_vm15, %v3643_v48, %v3311_v57  ;;  %v2279_v42 = vmul.f32 %v8229_v10, %v10491_v54  ;;  %v2693_v57 = vrot.slane %v2541_v14, 2  ;;  %v2312_v48 = vmax.f32 %v2280_v3, 0.0 }
 0x5a3   : > { %2858 = vrot.lane.b32.xlu1 %v2689_v44, %s5781_s29 }
 0x5a4   : > { %v8853_v63 = vpop.permute.xlu0 %3032  ;;  %v2311_v52 = vmax.f32 %v2279_v42, 0.0  ;;  %v2694_v20 = vsel %vm639_vm2, %v2691_v49, %v2693_v57  ;;  %v2416_v21 = vrot.slane %v2312_v48, 7 }
 0x5a5   : > { %v8857_v27 = vpop.permute.xlu1 %2754 }
 0x5a6   : > { %3324 = vrot.lane.b32.xlu0 %v2617_v40, %s5790_s23 }
 0x5a7   : > { %3236 = vrot.lane.b32.xlu1 %v8835_v46, %s5788_s12 }
 0x5a8   : > { %v3401_v44 = vpop.permute.xlu0 %3400 }
 0x5a9   : > { %v3709_v6 = vsel %vm3703_vm3, %v3676_v7, %v3401_v44  ;;  %v3127_v50 = vpop.permute.xlu1 %3126  ;;  %v2351_v7 = vrot.slane %v2311_v52, 1  ;;  %v2415_v44 = vrot.slane %v2311_v52, 7 }
 0x5aa   : > { %3046 = vrot.lane.b32.xlu0 %v2617_v40, %s5787_s8  ;;  %5468 = vmatmul.mubr.msk.f32.gmra.mrb[4].mxu1 %vm3745_vm4, %v3709_v6 }
 0x5ab   : > { %2952 = vrot.lane.b32.xlu1 %v8835_v46, %s5786_s28  ;;  %v8911_v26 = vsel %vm373_vm0, %v2351_v7, %v2415_v44 }
 0x5ac   : > { %v8874_v41 = vpop.permute.xlu0 %2844  ;;  %v2620_v3 = vrot.slane %v8911_v26, 1 }
 0x5ad   : > { %v8876_v24 = vpop.permute.xlu1 %2756 }
 0x5ae   : > { %3414 = vrot.lane.b32.xlu0 %v2692_v62, %s5791_s7 }
 0x5af   : > { %3326 = vrot.lane.b32.xlu1 %v2619_v4, %s5790_s23 }
 0x5b0   : > { %v3223_v16 = vpop.permute.xlu0 %3222 }
 0x5b1   : > { %v3129_v33 = vpop.permute.xlu1 %3128 }
 0x5b2   : > { %3048 = vrot.lane.b32.xlu0 %v2619_v4, %s5787_s8 }
 0x5b3   : > { %2770 = vrot.lane.b32.xlu1 %v2617_v40, %s5784_s25  ;;  %v3484_v40 = vsel %vm1496_vm5, %v8324_v0, %v8782_v11  ;;  %v8914_v0 = vsel %vm373_vm0, %v2415_v44, %v2416_v21 }
 0x5b4   : > { %v8888_v47 = vpop.permute.xlu0 %2938  ;;  %v3514_v39 = vsel %vm1560_vm7, %v3484_v40, %v8799_v56  ;;  %v2621_v52 = vrot.slane %v8914_v0, 1 }
 0x5b5   : > { %v8890_v34 = vpop.permute.xlu1 %2846  ;;  %v3546_v49 = vsel %vm1626_vm9, %v3514_v39, %v8813_v15 }
 0x5b6   : > { %3416 = vrot.lane.b32.xlu0 %v2694_v20, %s5791_s7  ;;  %v3578_v42 = vsel %vm1692_vm11, %v3546_v49, %v8825_v55 }
 0x5b7   : > { %3142 = vrot.lane.b32.xlu1 %v2692_v62, %s5789_s26  ;;  %v3611_v11 = vsel %vm3604_vm13, %v3578_v42, %v3127_v50  ;;  %v3485_v50 = vsel %vm1496_vm5, %v8339_v43, %v8801_v59  ;;  %v2622_v59 = vsel %vm563_vm1, %v2620_v3, %v2621_v52  ;;  %v2695_v42 = vrot.slane %v8911_v26, 2 }
 0x5b8   : > { %v3313_v14 = vpop.permute.xlu0 %3312  ;;  %v3644_v56 = vsel %vm3637_vm14, %v3611_v11, %v3223_v16  ;;  %v2494_v16 = vrot.slane %v2312_v48, 5  ;;  %v2696_v11 = vrot.slane %v8914_v0, 2 }
 0x5b9   : > { %v3225_v6 = vpop.permute.xlu1 %3224  ;;  %v3677_v15 = vsel %vm3670_vm15, %v3644_v56, %v3313_v14  ;;  %v3515_v14 = vsel %vm1560_vm7, %v3485_v50, %v8815_v37  ;;  %v2282_v50 = vmul.f32 %v8229_v10, %v7906_v58 }
 0x5ba   : > { %2860 = vrot.lane.b32.xlu0 %v2692_v62, %s5781_s29  ;;  %v3547_v7 = vsel %vm1626_vm9, %v3515_v14, %v8829_v18  ;;  %v2542_v18 = vsel %vm373_vm0, %v2416_v21, %v2494_v16  ;;  %v2697_v56 = vsel %vm639_vm2, %v2695_v42, %v2696_v11 }
 0x5bb   : > { %2772 = vrot.lane.b32.xlu1 %v2619_v4, %s5784_s25  ;;  %v3579_v40 = vsel %vm1692_vm11, %v3547_v7, %v8853_v63  ;;  %v2698_v3 = vrot.slane %v2542_v18, 2 }
 0x5bc   : > { %v8904_v54 = vpop.permute.xlu0 %3034  ;;  %v3612_v39 = vsel %vm3604_vm13, %v3579_v40, %v3129_v33  ;;  %v2623_v33 = vrot.slane %v2542_v18, 1  ;;  %v2314_v40 = vmax.f32 %v2282_v50, 0.0 }
 0x5bd   : > { %v8908_v57 = vpop.permute.xlu1 %2940  ;;  %v3645_v37 = vsel %vm3637_vm14, %v3612_v39, %v3225_v6 }
 0x5be   : > { %3238 = vrot.lane.b32.xlu0 %v8911_v26, %s5788_s12  ;;  %v2419_v18 = vrot.slane %v2314_v40, 7 }
 0x5bf   : > { %3144 = vrot.lane.b32.xlu1 %v2694_v20, %s5789_s26 }
 0x5c0   : > { %v3403_v55 = vpop.permute.xlu0 %3402 }
 0x5c1   : > { %v3710_v62 = vsel %vm3703_vm3, %v3677_v15, %v3403_v55  ;;  %v3315_v4 = vpop.permute.xlu1 %3314  ;;  %v2624_v15 = vsel %vm563_vm1, %v2621_v52, %v2623_v33  ;;  %v2699_v52 = vsel %vm639_vm2, %v2696_v11, %v2698_v3 }
 0x5c2   : > { %2954 = vrot.lane.b32.xlu0 %v8911_v26, %s5786_s28  ;;  %5470 = vmatprep.mubr.msk.f32.mxu1 %vm3745_vm4, %v3710_v62  ;;  %v2281_v62 = vmul.f32 %v8229_v10, %v7903_v5 }
 0x5c3   : > { %2862 = vrot.lane.b32.xlu1 %v2694_v20, %s5781_s29  ;;  %v3678_v20 = vsel %vm3670_vm15, %v3645_v37, %v3315_v4 }
 0x5c4   : > { %v8936_v44 = vpop.permute.xlu0 %3036  ;;  %v2313_v14 = vmax.f32 %v2281_v62, 0.0 }
 0x5c5   : > { %v8940_v43 = vpop.permute.xlu1 %2758 }
 0x5c6   : > { %3328 = vrot.lane.b32.xlu0 %v2622_v59, %s5790_s23  ;;  %v2352_v39 = vrot.slane %v2313_v14, 1  ;;  %v2418_v37 = vrot.slane %v2313_v14, 7 }
 0x5c7   : > { %3240 = vrot.lane.b32.xlu1 %v8914_v0, %s5788_s12 }
 0x5c8   : > { %v3405_v48 = vpop.permute.xlu0 %3404  ;;  %v8994_v33 = vsel %vm373_vm0, %v2352_v39, %v2418_v37 }
 0x5c9   : > { %v3711_v63 = vsel %vm3703_vm3, %v3678_v20, %v3405_v48  ;;  %v3131_v49 = vpop.permute.xlu1 %3130  ;;  %v2625_v62 = vrot.slane %v8994_v33, 1 }
 0x5ca   : > { %3050 = vrot.lane.b32.xlu0 %v2622_v59, %s5787_s8  ;;  %5471 = vmatmul.mubr.msk.f32.gmra.mrb[6].mxu1 %vm3745_vm4, %v3711_v63 }
 0x5cb   : > { %2956 = vrot.lane.b32.xlu1 %v8914_v0, %s5786_s28 }
 0x5cc   : > { %v8957_v6 = vpop.permute.xlu0 %2848 }
 0x5cd   : > { %v8959_v21 = vpop.permute.xlu1 %2760 }
 0x5ce   : > { %3418 = vrot.lane.b32.xlu0 %v2697_v56, %s5791_s7 }
 0x5cf   : > { %3330 = vrot.lane.b32.xlu1 %v2624_v15, %s5790_s23 }
 0x5d0   : > { %v3227_v55 = vpop.permute.xlu0 %3226 }
 0x5d1   : > { %v3133_v4 = vpop.permute.xlu1 %3132 }
 0x5d2   : > { %3052 = vrot.lane.b32.xlu0 %v2624_v15, %s5787_s8 }
 0x5d3   : > { %2774 = vrot.lane.b32.xlu1 %v2622_v59, %s5784_s25  ;;  %v3486_v59 = vsel %vm1496_vm5, %v8510_v29, %v8857_v27  ;;  %v8997_v29 = vsel %vm373_vm0, %v2418_v37, %v2419_v18 }
 0x5d4   : > { %v8971_v16 = vpop.permute.xlu0 %2942  ;;  %v3516_v20 = vsel %vm1560_vm7, %v3486_v59, %v8874_v41  ;;  %v2626_v3 = vrot.slane %v8997_v29, 1 }
 0x5d5   : > { %v8973_v7 = vpop.permute.xlu1 %2850  ;;  %v3548_v48 = vsel %vm1626_vm9, %v3516_v20, %v8888_v47  ;;  %v2700_v20 = vrot.slane %v8994_v33, 2 }
 0x5d6   : > { %3420 = vrot.lane.b32.xlu0 %v2699_v52, %s5791_s7  ;;  %v3580_v42 = vsel %vm1692_vm11, %v3548_v48, %v8904_v54  ;;  %v2701_v48 = vrot.slane %v8997_v29, 2 }
 0x5d7   : > { %3146 = vrot.lane.b32.xlu1 %v2697_v56, %s5789_s26  ;;  %v3613_v27 = vsel %vm3604_vm13, %v3580_v42, %v3131_v49  ;;  %v3487_v49 = vsel %vm1496_vm5, %v8507_v1, %v8876_v24  ;;  %v2627_v24 = vsel %vm563_vm1, %v2625_v62, %v2626_v3 }
 0x5d8   : > { %v3317_v5 = vpop.permute.xlu0 %3316  ;;  %v3646_v41 = vsel %vm3637_vm14, %v3613_v27, %v3227_v55  ;;  %v2495_v55 = vrot.slane %v2314_v40, 5  ;;  %v3517_v50 = vsel %vm1560_vm7, %v3487_v49, %v8890_v34  ;;  %v2702_v42 = vsel %vm639_vm2, %v2700_v20, %v2701_v48 }
 0x5d9   : > { %v3229_v58 = vpop.permute.xlu1 %3228  ;;  %v3679_v47 = vsel %vm3670_vm15, %v3646_v41, %v3317_v5  ;;  %v3549_v14 = vsel %vm1626_vm9, %v3517_v50, %v8908_v57 }
 0x5da   : > { %2864 = vrot.lane.b32.xlu0 %v2697_v56, %s5781_s29  ;;  %v3581_v39 = vsel %vm1692_vm11, %v3549_v14, %v8936_v44  ;;  %v2543_v57 = vsel %vm373_vm0, %v2419_v18, %v2495_v55 }
 0x5db   : > { %2776 = vrot.lane.b32.xlu1 %v2624_v15, %s5784_s25  ;;  %v3614_v37 = vsel %vm3604_vm13, %v3581_v39, %v3133_v4  ;;  %v2628_v4 = vrot.slane %v2543_v57, 1 }
 0x5dc   : > { %v8987_v63 = vpop.permute.xlu0 %3038  ;;  %v3647_v34 = vsel %vm3637_vm14, %v3614_v37, %v3229_v58 }
 0x5dd   : > { %v8991_v11 = vpop.permute.xlu1 %2944  ;;  %v2629_v27 = vsel %vm563_vm1, %v2626_v3, %v2628_v4 }
 0x5de   : > { %3242 = vrot.lane.b32.xlu0 %v8994_v33, %s5788_s12 }
 0x5df   : > { %3148 = vrot.lane.b32.xlu1 %v2699_v52, %s5789_s26 }
 0x5e0   : > { %v3407_v54 = vpop.permute.xlu0 %3406 }
 0x5e1   : > { %v3712_v56 = vsel %vm3703_vm3, %v3679_v47, %v3407_v54  ;;  %v3319_v15 = vpop.permute.xlu1 %3318  ;;  %v2283_v47 = vmul.f32 %v8229_v10, %v7911_v51 }
 0x5e2   : > { %2958 = vrot.lane.b32.xlu0 %v8994_v33, %s5786_s28  ;;  %5473 = vmatprep.mubr.msk.f32.mxu1 %vm3745_vm4, %v3712_v56  ;;  %v2703_v56 = vrot.slane %v2543_v57, 2 }
 0x5e3   : > { %2866 = vrot.lane.b32.xlu1 %v2699_v52, %s5781_s29  ;;  %v3680_v52 = vsel %vm3670_vm15, %v3647_v34, %v3319_v15  ;;  %v2284_v15 = vmul.f32 %v8229_v10, %v7914_v45  ;;  %v2315_v49 = vmax.f32 %v2283_v47, 0.0 }
 0x5e4   : > { %v9019_v5 = vpop.permute.xlu0 %3040  ;;  %v2704_v3 = vsel %vm639_vm2, %v2701_v48, %v2703_v56 }
 0x5e5   : > { %v9023_v1 = vpop.permute.xlu1 %2762  ;;  %v2316_v50 = vmax.f32 %v2284_v15, 0.0  ;;  %v2353_v14 = vrot.slane %v2315_v49, 1  ;;  %v2421_v39 = vrot.slane %v2315_v49, 7 }
 0x5e6   : > { %3332 = vrot.lane.b32.xlu0 %v2627_v24, %s5790_s23 }
 0x5e7   : > { %3244 = vrot.lane.b32.xlu1 %v8997_v29, %s5788_s12  ;;  %v2422_v37 = vrot.slane %v2316_v50, 7  ;;  %v9077_v20 = vsel %vm373_vm0, %v2353_v14, %v2421_v39 }
 0x5e8   : > { %v3409_v40 = vpop.permute.xlu0 %3408 }
 0x5e9   : > { %v3713_v44 = vsel %vm3703_vm3, %v3680_v52, %v3409_v40  ;;  %v3135_v59 = vpop.permute.xlu1 %3134 }
 0x5ea   : > { %3054 = vrot.lane.b32.xlu0 %v2627_v24, %s5787_s8  ;;  %5474 = vmatmul.mubr.msk.f32.gmra.mrb[8].mxu1 %vm3745_vm4, %v3713_v44 }
 0x5eb   : > { %2960 = vrot.lane.b32.xlu1 %v8997_v29, %s5786_s28 }
 0x5ec   : > { %v9040_v58 = vpop.permute.xlu0 %2852 }
 0x5ed   : > { %v9042_v18 = vpop.permute.xlu1 %2764 }
 0x5ee   : > { %3422 = vrot.lane.b32.xlu0 %v2702_v42, %s5791_s7 }
 0x5ef   : > { %3334 = vrot.lane.b32.xlu1 %v2629_v27, %s5790_s23 }
 0x5f0   : > { %v3231_v41 = vpop.permute.xlu0 %3230 }
 0x5f1   : > { %v3137_v54 = vpop.permute.xlu1 %3136 }
 0x5f2   : > { %3056 = vrot.lane.b32.xlu0 %v2629_v27, %s5787_s8 }
 0x5f3   : > { %2778 = vrot.lane.b32.xlu1 %v2627_v24, %s5784_s25  ;;  %v3488_v24 = vsel %vm1496_vm5, %v8612_v28, %v8940_v43  ;;  %v9080_v28 = vsel %vm373_vm0, %v2421_v39, %v2422_v37  ;;  %v2705_v39 = vrot.slane %v9077_v20, 2 }
 0x5f4   : > { %v9054_v62 = vpop.permute.xlu0 %2946  ;;  %v3518_v34 = vsel %vm1560_vm7, %v3488_v24, %v8957_v6  ;;  %v2706_v24 = vrot.slane %v9080_v28, 2 }
 0x5f5   : > { %v9056_v55 = vpop.permute.xlu1 %2854  ;;  %v3550_v57 = vsel %vm1626_vm9, %v3518_v34, %v8971_v16 }
 0x5f6   : > { %3424 = vrot.lane.b32.xlu0 %v2704_v3, %s5791_s7  ;;  %v3582_v40 = vsel %vm1692_vm11, %v3550_v57, %v8987_v63  ;;  %v2707_v34 = vsel %vm639_vm2, %v2705_v39, %v2706_v24 }
 0x5f7   : > { %3150 = vrot.lane.b32.xlu1 %v2702_v42, %s5789_s26  ;;  %v3615_v43 = vsel %vm3604_vm13, %v3582_v40, %v3135_v59  ;;  %v3489_v59 = vsel %vm1496_vm5, %v8615_v30, %v8959_v21 }
 0x5f8   : > { %v3321_v51 = vpop.permute.xlu0 %3320  ;;  %v3648_v6 = vsel %vm3637_vm14, %v3615_v43, %v3231_v41  ;;  %v2496_v41 = vrot.slane %v2316_v50, 5  ;;  %v3519_v47 = vsel %vm1560_vm7, %v3489_v59, %v8973_v7  ;;  %v2285_v43 = vmul.f32 %v8229_v10, %v7917_v61 }
 0x5f9   : > { %v3233_v45 = vpop.permute.xlu1 %3232  ;;  %v3681_v16 = vsel %vm3670_vm15, %v3648_v6, %v3321_v51  ;;  %v3551_v56 = vsel %vm1626_vm9, %v3519_v47, %v8991_v11 }
 0x5fa   : > { %2868 = vrot.lane.b32.xlu0 %v2702_v42, %s5781_s29  ;;  %v2630_v42 = vrot.slane %v9077_v20, 1  ;;  %v3583_v49 = vsel %vm1692_vm11, %v3551_v56, %v9019_v5  ;;  %v2544_v11 = vsel %vm373_vm0, %v2422_v37, %v2496_v41 }
 0x5fb   : > { %2780 = vrot.lane.b32.xlu1 %v2629_v27, %s5784_s25  ;;  %v2631_v27 = vrot.slane %v9080_v28, 1  ;;  %v3616_v51 = vsel %vm3604_vm13, %v3583_v49, %v3137_v54  ;;  %v2633_v54 = vrot.slane %v2544_v11, 1  ;;  %v3490_v49 = vsel %vm1496_vm5, %v8675_v25, %v9023_v1 }
 0x5fc   : > { %v9070_v52 = vpop.permute.xlu0 %3042  ;;  %v3649_v7 = vsel %vm3637_vm14, %v3616_v51, %v3233_v45 }
 0x5fd   : > { %v9074_v44 = vpop.permute.xlu1 %2948  ;;  %v2632_v21 = vsel %vm563_vm1, %v2630_v42, %v2631_v27  ;;  %v2634_v57 = vsel %vm563_vm1, %v2631_v27, %v2633_v54 }
 0x5fe   : > { %3246 = vrot.lane.b32.xlu0 %v9077_v20, %s5788_s12 }
 0x5ff   : > { %3152 = vrot.lane.b32.xlu1 %v2704_v3, %s5789_s26 }
 0x600   : > { %v3411_v63 = vpop.permute.xlu0 %3410 }
 0x601   : > { %v3714_v48 = vsel %vm3703_vm3, %v3681_v16, %v3411_v63  ;;  %v3323_v4 = vpop.permute.xlu1 %3322  ;;  %v2708_v16 = vrot.slane %v2544_v11, 2  ;;  %v2286_v63 = vmul.f32 %v8229_v10, %v7920_v31 }
 0x602   : > { %2962 = vrot.lane.b32.xlu0 %v9077_v20, %s5786_s28  ;;  %5476 = vmatprep.mubr.msk.f32.mxu1 %vm3745_vm4, %v3714_v48 }
 0x603   : > { %2870 = vrot.lane.b32.xlu1 %v2704_v3, %s5781_s29  ;;  %v3682_v3 = vsel %vm3670_vm15, %v3649_v7, %v3323_v4  ;;  %v2317_v4 = vmax.f32 %v2285_v43, 0.0  ;;  %v2709_v27 = vsel %vm639_vm2, %v2706_v24, %v2708_v16  ;;  %v2318_v59 = vmax.f32 %v2286_v63, 0.0 }
 0x604   : > { %v9102_v15 = vpop.permute.xlu0 %3044 }
 0x605   : > { %v9106_v30 = vpop.permute.xlu1 %2766  ;;  %v2354_v41 = vrot.slane %v2317_v4, 1  ;;  %v2424_v47 = vrot.slane %v2317_v4, 7  ;;  %v2425_v56 = vrot.slane %v2318_v59, 7 }
 0x606   : > { %3336 = vrot.lane.b32.xlu0 %v2632_v21, %s5790_s23 }
 0x607   : > { %3248 = vrot.lane.b32.xlu1 %v9080_v28, %s5788_s12  ;;  %v9163_v25 = vsel %vm373_vm0, %v2424_v47, %v2425_v56 }
 0x608   : > { %v3413_v50 = vpop.permute.xlu0 %3412  ;;  %v2636_v54 = vrot.slane %v9163_v25, 1 }
 0x609   : > { %v3715_v5 = vsel %vm3703_vm3, %v3682_v3, %v3413_v50  ;;  %v3139_v14 = vpop.permute.xlu1 %3138  ;;  %v9160_v50 = vsel %vm373_vm0, %v2354_v41, %v2424_v47  ;;  %v2711_v41 = vrot.slane %v9163_v25, 2 }
 0x60a   : > { %3058 = vrot.lane.b32.xlu0 %v2632_v21, %s5787_s8  ;;  %5477 = vmatmul.mubr.msk.f32.gmra.mrb[10].mxu1 %vm3745_vm4, %v3715_v5  ;;  %v2635_v24 = vrot.slane %v9160_v50, 1 }
 0x60b   : > { %2964 = vrot.lane.b32.xlu1 %v9080_v28, %s5786_s28 }
 0x60c   : > { %v9123_v45 = vpop.permute.xlu0 %2856 }
 0x60d   : > { %v9125_v37 = vpop.permute.xlu1 %2768 }
 0x60e   : > { %3426 = vrot.lane.b32.xlu0 %v2707_v34, %s5791_s7 }
 0x60f   : > { %3338 = vrot.lane.b32.xlu1 %v2634_v57, %s5790_s23 }
 0x610   : > { %v3235_v40 = vpop.permute.xlu0 %3234 }
 0x611   : > { %v3141_v6 = vpop.permute.xlu1 %3140 }
 0x612   : > { %3060 = vrot.lane.b32.xlu0 %v2634_v57, %s5787_s8 }
 0x613   : > { %2782 = vrot.lane.b32.xlu1 %v2632_v21, %s5784_s25  ;;  %v3520_v21 = vsel %vm1560_vm7, %v3490_v49, %v9040_v58 }
 0x614   : > { %v9137_v48 = vpop.permute.xlu0 %2950  ;;  %v3552_v51 = vsel %vm1626_vm9, %v3520_v21, %v9054_v62 }
 0x615   : > { %v9139_v42 = vpop.permute.xlu1 %2858  ;;  %v3584_v11 = vsel %vm1692_vm11, %v3552_v51, %v9070_v52  ;;  %v2287_v51 = vmul.f32 %v8229_v10, %v7923_v8 }
 0x616   : > { %3428 = vrot.lane.b32.xlu0 %v2709_v27, %s5791_s7  ;;  %v3617_v1 = vsel %vm3604_vm13, %v3584_v11, %v3139_v14  ;;  %v3491_v14 = vsel %vm1496_vm5, %v8678_v23, %v9042_v18  ;;  %v2637_v18 = vsel %vm563_vm1, %v2635_v24, %v2636_v54 }
 0x617   : > { %3154 = vrot.lane.b32.xlu1 %v2707_v34, %s5789_s26  ;;  %v3650_v58 = vsel %vm3637_vm14, %v3617_v1, %v3235_v40 }
 0x618   : > { %v3325_v61 = vpop.permute.xlu0 %3324 }
 0x619   : > { %v3237_v31 = vpop.permute.xlu1 %3236  ;;  %v3683_v62 = vsel %vm3670_vm15, %v3650_v58, %v3325_v61  ;;  %v2710_v61 = vrot.slane %v9160_v50, 2  ;;  %v10493_v58 = vld [vmem:[#allocation50_spill] sm:$0xff] }
 0x61a   : > { %2872 = vrot.lane.b32.xlu0 %v2707_v34, %s5781_s29  ;;  %v2497_v34 = vrot.slane %v2318_v59, 5 }
 0x61b   : > { %2784 = vrot.lane.b32.xlu1 %v2634_v57, %s5784_s25  ;;  %v3521_v57 = vsel %vm1560_vm7, %v3491_v14, %v9056_v55 }
 0x61c   : > { %v9153_v7 = vpop.permute.xlu0 %3046  ;;  %v3553_v40 = vsel %vm1626_vm9, %v3521_v57, %v9074_v44  ;;  %v2545_v44 = vsel %vm373_vm0, %v2425_v56, %v2497_v34  ;;  %v2712_v56 = vsel %vm639_vm2, %v2710_v61, %v2711_v41 }
 0x61d   : > { %v9157_v3 = vpop.permute.xlu1 %2952  ;;  %v3585_v16 = vsel %vm1692_vm11, %v3553_v40, %v9102_v15  ;;  %v2713_v1 = vrot.slane %v2545_v44, 2 }
 0x61e   : > { %3250 = vrot.lane.b32.xlu0 %v9160_v50, %s5788_s12  ;;  %v3618_v63 = vsel %vm3604_vm13, %v3585_v16, %v3141_v6  ;;  %v2638_v6 = vrot.slane %v2545_v44, 1  ;;  %v3492_v16 = vsel %vm1496_vm5, %v8757_v9, %v9106_v30 }
 0x61f   : > { %3156 = vrot.lane.b32.xlu1 %v2709_v27, %s5789_s26  ;;  %v3651_v55 = vsel %vm3637_vm14, %v3618_v63, %v3237_v31  ;;  %v2714_v24 = vsel %vm639_vm2, %v2711_v41, %v2713_v1 }
 0x620   : > { %v3415_v52 = vpop.permute.xlu0 %3414  ;;  %v2639_v49 = vsel %vm563_vm1, %v2636_v54, %v2638_v6 }
 0x621   : > { %v3716_v5 = vsel %vm3703_vm3, %v3683_v62, %v3415_v52  ;;  %v3327_v39 = vpop.permute.xlu1 %3326  ;;  %v2288_v62 = vmul.f32 %v8229_v10, %v10493_v58 }
 0x622   : > { %2966 = vrot.lane.b32.xlu0 %v9160_v50, %s5786_s28  ;;  %5479 = vmatprep.mubr.msk.f32.mxu1 %vm3745_vm4, %v3716_v5  ;;  %v3684_v4 = vsel %vm3670_vm15, %v3651_v55, %v3327_v39  ;;  %v2319_v5 = vmax.f32 %v2287_v51, 0.0 }
 0x623   : > { %2874 = vrot.lane.b32.xlu1 %v2709_v27, %s5781_s29  ;;  %v2320_v54 = vmax.f32 %v2288_v62, 0.0 }
 0x624   : > { %v9185_v43 = vpop.permute.xlu0 %3048  ;;  %v2355_v14 = vrot.slane %v2319_v5, 1  ;;  %v2427_v34 = vrot.slane %v2319_v5, 7 }
 0x625   : > { %v9189_v23 = vpop.permute.xlu1 %2770  ;;  %v2428_v40 = vrot.slane %v2320_v54, 7 }
 0x626   : > { %3340 = vrot.lane.b32.xlu0 %v2637_v18, %s5790_s23 }
 0x627   : > { %3252 = vrot.lane.b32.xlu1 %v9163_v25, %s5788_s12  ;;  %v9246_v9 = vsel %vm373_vm0, %v2427_v34, %v2428_v40 }
 0x628   : > { %v3417_v27 = vpop.permute.xlu0 %3416  ;;  %v2641_v6 = vrot.slane %v9246_v9, 1 }
 0x629   : > { %v3717_v15 = vsel %vm3703_vm3, %v3684_v4, %v3417_v27  ;;  %v3143_v59 = vpop.permute.xlu1 %3142  ;;  %v9243_v27 = vsel %vm373_vm0, %v2355_v14, %v2427_v34 }
 0x62a   : > { %3062 = vrot.lane.b32.xlu0 %v2637_v18, %s5787_s8  ;;  %5480 = vmatmul.mubr.msk.f32.gmra.mrb[12].mxu1 %vm3745_vm4, %v3717_v15  ;;  %v2640_v41 = vrot.slane %v9243_v27, 1 }
 0x62b   : > { %2968 = vrot.lane.b32.xlu1 %v9163_v25, %s5786_s28 }
 0x62c   : > { %v9206_v47 = vpop.permute.xlu0 %2860 }
 0x62d   : > { %v9208_v31 = vpop.permute.xlu1 %2772 }
 0x62e   : > { %3430 = vrot.lane.b32.xlu0 %v2712_v56, %s5791_s7 }
 0x62f   : > { %3342 = vrot.lane.b32.xlu1 %v2639_v49, %s5790_s23 }
 0x630   : > { %v3239_v21 = vpop.permute.xlu0 %3238 }
 0x631   : > { %v3145_v11 = vpop.permute.xlu1 %3144 }
 0x632   : > { %3064 = vrot.lane.b32.xlu0 %v2639_v49, %s5787_s8 }
 0x633   : > { %2786 = vrot.lane.b32.xlu1 %v2637_v18, %s5784_s25  ;;  %v3522_v18 = vsel %vm1560_vm7, %v3492_v16, %v9123_v45 }
 0x634   : > { %v9220_v52 = vpop.permute.xlu0 %2954  ;;  %v3554_v63 = vsel %vm1626_vm9, %v3522_v18, %v9137_v48  ;;  %v2289_v18 = vmul.f32 %v8229_v10, %v7929_v13 }
 0x635   : > { %v9222_v39 = vpop.permute.xlu1 %2862  ;;  %v3586_v44 = vsel %vm1692_vm11, %v3554_v63, %v9153_v7 }
 0x636   : > { %3432 = vrot.lane.b32.xlu0 %v2714_v24, %s5791_s7  ;;  %v3619_v30 = vsel %vm3604_vm13, %v3586_v44, %v3143_v59  ;;  %v3493_v59 = vsel %vm1496_vm5, %v8760_v17, %v9125_v37  ;;  %v2642_v37 = vsel %vm563_vm1, %v2640_v41, %v2641_v6  ;;  %v2321_v41 = vmax.f32 %v2289_v18, 0.0 }
 0x637   : > { %3158 = vrot.lane.b32.xlu1 %v2712_v56, %s5789_s26  ;;  %v3652_v45 = vsel %vm3637_vm14, %v3619_v30, %v3239_v21 }
 0x638   : > { %v3329_v8 = vpop.permute.xlu0 %3328 }
 0x639   : > { %v3241_v57 = vpop.permute.xlu1 %3240  ;;  %v3685_v48 = vsel %vm3670_vm15, %v3652_v45, %v3329_v8  ;;  %v2716_v8 = vrot.slane %v9246_v9, 2  ;;  %v2290_v45 = vmul.f32 %v8229_v10, %v7932_v36 }
 0x63a   : > { %2876 = vrot.lane.b32.xlu0 %v2712_v56, %s5781_s29  ;;  %v2498_v56 = vrot.slane %v2320_v54, 5  ;;  %v2715_v54 = vrot.slane %v9243_v27, 2 }
 0x63b   : > { %2788 = vrot.lane.b32.xlu1 %v2639_v49, %s5784_s25  ;;  %v3523_v49 = vsel %vm1560_vm7, %v3493_v59, %v9139_v42  ;;  %v2322_v59 = vmax.f32 %v2290_v45, 0.0 }
 0x63c   : > { %v9236_v55 = vpop.permute.xlu0 %3050  ;;  %v3555_v21 = vsel %vm1626_vm9, %v3523_v49, %v9157_v3  ;;  %v2546_v3 = vsel %vm373_vm0, %v2428_v40, %v2498_v56  ;;  %v2356_v49 = vrot.slane %v2321_v41, 1 }
 0x63d   : > { %v9240_v4 = vpop.permute.xlu1 %2956  ;;  %v3587_v1 = vsel %vm1692_vm11, %v3555_v21, %v9185_v43  ;;  %v2718_v30 = vrot.slane %v2546_v3, 2  ;;  %v2430_v21 = vrot.slane %v2321_v41, 7 }
 0x63e   : > { %3254 = vrot.lane.b32.xlu0 %v9243_v27, %s5788_s12  ;;  %v3620_v58 = vsel %vm3604_vm13, %v3587_v1, %v3145_v11  ;;  %v2643_v11 = vrot.slane %v2546_v3, 1 }
 0x63f   : > { %3160 = vrot.lane.b32.xlu1 %v2714_v24, %s5789_s26  ;;  %v3653_v42 = vsel %vm3637_vm14, %v3620_v58, %v3241_v57  ;;  %v2717_v57 = vsel %vm639_vm2, %v2715_v54, %v2716_v8  ;;  %v2719_v36 = vsel %vm639_vm2, %v2716_v8, %v2718_v30  ;;  %v2431_v58 = vrot.slane %v2322_v59, 7 }
 0x640   : > { %v3419_v7 = vpop.permute.xlu0 %3418  ;;  %v2644_v40 = vsel %vm563_vm1, %v2641_v6, %v2643_v11 }
 0x641   : > { %v3718_v15 = vsel %vm3703_vm3, %v3685_v48, %v3419_v7  ;;  %v3331_v61 = vpop.permute.xlu1 %3330 }
 0x642   : > { %2970 = vrot.lane.b32.xlu0 %v9243_v27, %s5786_s28  ;;  %5482 = vmatprep.mubr.msk.f32.mxu1 %vm3745_vm4, %v3718_v15  ;;  %v3686_v62 = vsel %vm3670_vm15, %v3653_v42, %v3331_v61 }
 0x643   : > { %2878 = vrot.lane.b32.xlu1 %v2714_v24, %s5781_s29 }
 0x644   : > { %v9268_v51 = vpop.permute.xlu0 %3052 }
 0x645   : > { %v9272_v17 = vpop.permute.xlu1 %2774 }
 0x646   : > { %3344 = vrot.lane.b32.xlu0 %v2642_v37, %s5790_s23 }
 0x647   : > { %3256 = vrot.lane.b32.xlu1 %v9246_v9, %s5788_s12 }
 0x648   : > { %v3421_v5 = vpop.permute.xlu0 %3420 }
 0x649   : > { %v3719_v43 = vsel %vm3703_vm3, %v3686_v62, %v3421_v5  ;;  %v3147_v24 = vpop.permute.xlu1 %3146 }
 0x64a   : > { %3066 = vrot.lane.b32.xlu0 %v2642_v37, %s5787_s8  ;;  %5483 = vmatmul.mubr.msk.f32.gmra.mrb[14].mxu1 %vm3745_vm4, %v3719_v43 }
 0x64b   : > { %2972 = vrot.lane.b32.xlu1 %v9246_v9, %s5786_s28 }
 0x64c   : > { %v9289_v14 = vpop.permute.xlu0 %2864 }
 0x64d   : > { %v9291_v34 = vpop.permute.xlu1 %2776 }
 0x64e   : > { %3434 = vrot.lane.b32.xlu0 %v2717_v57, %s5791_s7 }
 0x64f   : > { %3346 = vrot.lane.b32.xlu1 %v2644_v40, %s5790_s23 }
 0x650   : > { %v3243_v16 = vpop.permute.xlu0 %3242 }
 0x651   : > { %v3149_v63 = vpop.permute.xlu1 %3148  ;;  %v9299_v44 = vpop.f32.mrb[0].mxu1 }
 0x652   : > { %v4068_v48 = vsel %vm1496_vm5, %v9299_v44, 0.0  ;;  %3068 = vrot.lane.b32.xlu0 %v2644_v40, %s5787_s8  ;;  %v9306_v7 = vpop.f32.mrb[1].mxu1 }
 0x653   : > { %v4067_v15 = vsel %vm1496_vm5, %v9306_v7, 0.0  ;;  %2790 = vrot.lane.b32.xlu1 %v2642_v37, %s5784_s25  ;;  %v3494_v37 = vsel %vm1496_vm5, %v8832_v60, %v9189_v23  ;;  %v9336_v60 = vsel %vm373_vm0, %v2356_v49, %v2430_v21  ;;  %v9339_v23 = vsel %vm373_vm0, %v2430_v21, %v2431_v58 }
 0x654   : > { %v4069_v13 = vadd.f32 %v4068_v48, %v4067_v15  ;;  %v9311_v61 = vpop.permute.xlu0 %2958  ;;  %v3524_v42 = vsel %vm1560_vm7, %v3494_v37, %v9206_v47  ;;  %v2645_v45 = vrot.slane %v9336_v60, 1  ;;  %v2646_v48 = vrot.slane %v9339_v23, 1 }
 0x655   : > { %v9313_v6 = vpop.permute.xlu1 %2866  ;;  %v3556_v3 = vsel %vm1626_vm9, %v3524_v42, %v9220_v52 }
 0x656   : > { %3436 = vrot.lane.b32.xlu0 %v2719_v36, %s5791_s7  ;;  %v3588_v5 = vsel %vm1692_vm11, %v3556_v3, %v9236_v55  ;;  %v2647_v21 = vsel %vm563_vm1, %v2645_v45, %v2646_v48  ;;  %v2720_v3 = vrot.slane %v9336_v60, 2 }
 0x657   : > { %3162 = vrot.lane.b32.xlu1 %v2717_v57, %s5789_s26  ;;  %v3621_v47 = vsel %vm3604_vm13, %v3588_v5, %v3147_v24  ;;  %v2721_v5 = vrot.slane %v9339_v23, 2 }
 0x658   : > { %v3333_v56 = vpop.permute.xlu0 %3332  ;;  %v3654_v8 = vsel %vm3637_vm14, %v3621_v47, %v3243_v16  ;;  %v3495_v16 = vsel %vm1496_vm5, %v8835_v46, %v9208_v31 }
 0x659   : > { %v3245_v1 = vpop.permute.xlu1 %3244  ;;  %v3687_v11 = vsel %vm3670_vm15, %v3654_v8, %v3333_v56  ;;  %v3525_v41 = vsel %vm1560_vm7, %v3495_v16, %v9222_v39  ;;  %v2722_v47 = vsel %vm639_vm2, %v2720_v3, %v2721_v5 }
 0x65a   : > { %2880 = vrot.lane.b32.xlu0 %v2717_v57, %s5781_s29  ;;  %v3557_v56 = vsel %vm1626_vm9, %v3525_v41, %v9240_v4 }
 0x65b   : > { %2792 = vrot.lane.b32.xlu1 %v2644_v40, %s5784_s25  ;;  %v3589_v46 = vsel %vm1692_vm11, %v3557_v56, %v9268_v51 }
 0x65c   : > { %v9327_v62 = vpop.permute.xlu0 %3054  ;;  %v3622_v37 = vsel %vm3604_vm13, %v3589_v46, %v3149_v63  ;;  %v3496_v46 = vsel %vm1496_vm5, %v8911_v26, %v9272_v17 }
 0x65d   : > { %v9331_v43 = vpop.permute.xlu1 %2960  ;;  %v9333_v54 = vpop.f32.mrb[2].mxu1  ;;  %v3655_v39 = vsel %vm3637_vm14, %v3622_v37, %v3245_v1 }
 0x65e   : > { %3258 = vrot.lane.b32.xlu0 %v9336_v60, %s5788_s12  ;;  %v9344_v52 = vpop.f32.mrb[3].mxu1  ;;  %v4072_v18 = vsel %vm1496_vm5, %v9333_v54, 0.0 }
 0x65f   : > { %v4070_v55 = vsel %vm1496_vm5, %v9344_v52, 0.0  ;;  %3164 = vrot.lane.b32.xlu1 %v2719_v36, %s5789_s26 }
 0x660   : > { %v4071_v57 = vadd.f32 %v4070_v55, %v4069_v13  ;;  %v3423_v40 = vpop.permute.xlu0 %3422  ;;  %v2499_v13 = vrot.slane %v2322_v59, 5 }
 0x661   : > { %v3720_v24 = vsel %vm3703_vm3, %v3687_v11, %v3423_v40  ;;  %v3335_v30 = vpop.permute.xlu1 %3334  ;;  %v2291_v11 = vmul.f32 %v8229_v10, %v7935_v2 }
 0x662   : > { %2974 = vrot.lane.b32.xlu0 %v9336_v60, %s5786_s28  ;;  %5485 = vmatprep.mubr.msk.f32.mxu1 %vm3745_vm4, %v3720_v24  ;;  %v9362_v15 = vadd.f32 %v4072_v18, %v4071_v57  ;;  %v2547_v4 = vsel %vm373_vm0, %v2431_v58, %v2499_v13  ;;  %v2292_v18 = vmul.f32 %v8229_v10, %v7938_v12 }
 0x663   : > { %2882 = vrot.lane.b32.xlu1 %v2719_v36, %s5781_s29  ;;  %v3688_v36 = vsel %vm3670_vm15, %v3655_v39, %v3335_v30  ;;  %v2648_v63 = vrot.slane %v2547_v4, 1  ;;  %v2723_v40 = vrot.slane %v2547_v4, 2  ;;  %v2323_v30 = vmax.f32 %v2291_v11, 0.0 }
 0x664   : > { %v9369_v49 = vpop.permute.xlu0 %3056  ;;  %v2324_v16 = vmax.f32 %v2292_v18, 0.0 }
 0x665   : > { %v9373_v31 = vpop.permute.xlu1 %2778  ;;  %v2649_v8 = vsel %vm563_vm1, %v2646_v48, %v2648_v63  ;;  %v2724_v48 = vsel %vm639_vm2, %v2721_v5, %v2723_v40  ;;  %v2357_v13 = vrot.slane %v2323_v30, 1  ;;  %v2433_v41 = vrot.slane %v2323_v30, 7 }
 0x666   : > { %3348 = vrot.lane.b32.xlu0 %v2647_v21, %s5790_s23  ;;  %v2434_v56 = vrot.slane %v2324_v16, 7  ;;  %v3497_v40 = vsel %vm1496_vm5, %v8914_v0, %v9291_v34  ;;  %v2500_v18 = vrot.slane %v2324_v16, 5 }
 0x667   : > { %3260 = vrot.lane.b32.xlu1 %v9339_v23, %s5788_s12  ;;  %v9429_v26 = vsel %vm373_vm0, %v2357_v13, %v2433_v41  ;;  %v3527_v30 = vsel %vm1560_vm7, %v3497_v40, %v9313_v6 }
 0x668   : > { %v3425_v59 = vpop.permute.xlu0 %3424  ;;  %v9432_v17 = vsel %vm373_vm0, %v2433_v41, %v2434_v56  ;;  %v2650_v11 = vrot.slane %v9429_v26, 1 }
 0x669   : > { %v3721_v51 = vsel %vm3703_vm3, %v3688_v36, %v3425_v59  ;;  %v3151_v42 = vpop.permute.xlu1 %3150 }
 0x66a   : > { %3070 = vrot.lane.b32.xlu0 %v2647_v21, %s5787_s8  ;;  %5486 = vmatmul.mubr.msk.f32.gmra.mrb[16].mxu1 %vm3745_vm4, %v3721_v51 }
 0x66b   : > { %2976 = vrot.lane.b32.xlu1 %v9339_v23, %s5786_s28 }
 0x66c   : > { %v9390_v1 = vpop.permute.xlu0 %2868 }
 0x66d   : > { %v9392_v58 = vpop.permute.xlu1 %2780 }
 0x66e   : > { %3438 = vrot.lane.b32.xlu0 %v2722_v47, %s5791_s7 }
 0x66f   : > { %3350 = vrot.lane.b32.xlu1 %v2649_v8, %s5790_s23 }
 0x670   : > { %v3247_v55 = vpop.permute.xlu0 %3246 }
 0x671   : > { %v3153_v57 = vpop.permute.xlu1 %3152 }
 0x672   : > { %3072 = vrot.lane.b32.xlu0 %v2649_v8, %s5787_s8 }
 0x673   : > { %2794 = vrot.lane.b32.xlu1 %v2647_v21, %s5784_s25  ;;  %v3526_v21 = vsel %vm1560_vm7, %v3496_v46, %v9289_v14 }
 0x674   : > { %v9404_v24 = vpop.permute.xlu0 %2962  ;;  %v3558_v37 = vsel %vm1626_vm9, %v3526_v21, %v9311_v61 }
 0x675   : > { %v9406_v45 = vpop.permute.xlu1 %2870  ;;  %v3590_v4 = vsel %vm1692_vm11, %v3558_v37, %v9327_v62  ;;  %v2725_v37 = vrot.slane %v9429_v26, 2 }
 0x676   : > { %3440 = vrot.lane.b32.xlu0 %v2724_v48, %s5791_s7  ;;  %v3623_v14 = vsel %vm3604_vm13, %v3590_v4, %v3151_v42  ;;  %v2726_v4 = vrot.slane %v9432_v17, 2 }
 0x677   : > { %3166 = vrot.lane.b32.xlu1 %v2722_v47, %s5789_s26  ;;  %v3656_v51 = vsel %vm3637_vm14, %v3623_v14, %v3247_v55  ;;  %v2651_v55 = vrot.slane %v9432_v17, 1 }
 0x678   : > { %v3337_v2 = vpop.permute.xlu0 %3336  ;;  %v2727_v14 = vsel %vm639_vm2, %v2725_v37, %v2726_v4 }
 0x679   : > { %v3249_v12 = vpop.permute.xlu1 %3248  ;;  %v3689_v3 = vsel %vm3670_vm15, %v3656_v51, %v3337_v2  ;;  %v3559_v2 = vsel %vm1626_vm9, %v3527_v30, %v9331_v43  ;;  %v2652_v41 = vsel %vm563_vm1, %v2650_v11, %v2651_v55  ;;  %v2548_v43 = vsel %vm373_vm0, %v2434_v56, %v2500_v18 }
 0x67a   : > { %2884 = vrot.lane.b32.xlu0 %v2722_v47, %s5781_s29  ;;  %v3591_v0 = vsel %vm1692_vm11, %v3559_v2, %v9369_v49  ;;  %v3498_v2 = vsel %vm1496_vm5, %v8994_v33, %v9373_v31 }
 0x67b   : > { %2796 = vrot.lane.b32.xlu1 %v2649_v8, %s5784_s25  ;;  %v3624_v46 = vsel %vm3604_vm13, %v3591_v0, %v3153_v57  ;;  %v2653_v57 = vrot.slane %v2548_v43, 1  ;;  %v3528_v0 = vsel %vm1560_vm7, %v3498_v2, %v9390_v1 }
 0x67c   : > { %v9420_v39 = vpop.permute.xlu0 %3058  ;;  %v3657_v6 = vsel %vm3637_vm14, %v3624_v46, %v3249_v12 }
 0x67d   : > { %v9424_v36 = vpop.permute.xlu1 %2964  ;;  %v9426_v59 = vpop.f32.mrb[4].mxu1  ;;  %v2654_v51 = vsel %vm563_vm1, %v2651_v55, %v2653_v57 }
 0x67e   : > { %3262 = vrot.lane.b32.xlu0 %v9429_v26, %s5788_s12  ;;  %v9437_v61 = vpop.f32.mrb[5].mxu1  ;;  %v4076_v42 = vsel %vm1496_vm5, %v9426_v59, 0.0 }
 0x67f   : > { %v4074_v62 = vsel %vm1496_vm5, %v9437_v61, 0.0  ;;  %3168 = vrot.lane.b32.xlu1 %v2724_v48, %s5789_s26 }
 0x680   : > { %v4075_v5 = vadd.f32 %v4074_v62, %v9362_v15  ;;  %v3427_v63 = vpop.permute.xlu0 %3426 }
 0x681   : > { %v3722_v47 = vsel %vm3703_vm3, %v3689_v3, %v3427_v63  ;;  %v3339_v8 = vpop.permute.xlu1 %3338  ;;  %v2293_v3 = vmul.f32 %v8229_v10, %v7941_v38  ;;  %v2728_v63 = vrot.slane %v2548_v43, 2 }
 0x682   : > { %2978 = vrot.lane.b32.xlu0 %v9429_v26, %s5786_s28  ;;  %5488 = vmatprep.mubr.msk.f32.mxu1 %vm3745_vm4, %v3722_v47  ;;  %v9456_v15 = vadd.f32 %v4076_v42, %v4075_v5  ;;  %v2294_v42 = vmul.f32 %v8229_v10, %v7944_v22 }
 0x683   : > { %2886 = vrot.lane.b32.xlu1 %v2724_v48, %s5781_s29  ;;  %v3690_v48 = vsel %vm3670_vm15, %v3657_v6, %v3339_v8  ;;  %v2325_v8 = vmax.f32 %v2293_v3, 0.0  ;;  %v2729_v55 = vsel %vm639_vm2, %v2726_v4, %v2728_v63 }
 0x684   : > { %v9463_v13 = vpop.permute.xlu0 %3060  ;;  %v2326_v40 = vmax.f32 %v2294_v42, 0.0 }
 0x685   : > { %v9467_v34 = vpop.permute.xlu1 %2782  ;;  %v2358_v18 = vrot.slane %v2325_v8, 1  ;;  %v2436_v30 = vrot.slane %v2325_v8, 7 }
 0x686   : > { %3352 = vrot.lane.b32.xlu0 %v2652_v41, %s5790_s23  ;;  %v2437_v10 = vrot.slane %v2326_v40, 7  ;;  %v2501_v42 = vrot.slane %v2326_v40, 5 }
 0x687   : > { %3264 = vrot.lane.b32.xlu1 %v9432_v17, %s5788_s12  ;;  %v2533_v33 = vsel %vm373_vm0, %v2358_v18, %v2436_v30 }
 0x688   : > { %v3429_v16 = vpop.permute.xlu0 %3428  ;;  %v2438_v31 = vsel %vm373_vm0, %v2436_v30, %v2437_v10  ;;  %v2737_v2 = vrot.slane %v2533_v33, 2 }
 0x689   : > { %v3723_v49 = vsel %vm3703_vm3, %v3690_v48, %v3429_v16  ;;  %v3155_v21 = vpop.permute.xlu1 %3154  ;;  %v2733_v3 = vrot.slane %v2438_v31, 1 }
 0x68a   : > { %3074 = vrot.lane.b32.xlu0 %v2652_v41, %s5787_s8  ;;  %5489 = vmatmul.mubr.msk.f32.gmra.mrb[18].mxu1 %vm3745_vm4, %v3723_v49 }
 0x68b   : > { %2980 = vrot.lane.b32.xlu1 %v9432_v17, %s5786_s28 }
 0x68c   : > { %v9484_v12 = vpop.permute.xlu0 %2872 }
 0x68d   : > { %v9486_v56 = vpop.permute.xlu1 %2784 }
 0x68e   : > { %3442 = vrot.lane.b32.xlu0 %v2727_v14, %s5791_s7 }
 0x68f   : > { %3354 = vrot.lane.b32.xlu1 %v2654_v51, %s5790_s23 }
 0x690   : > { %v3251_v62 = vpop.permute.xlu0 %3250 }
 0x691   : > { %v3157_v5 = vpop.permute.xlu1 %3156 }
 0x692   : > { %3076 = vrot.lane.b32.xlu0 %v2654_v51, %s5787_s8 }
 0x693   : > { %2798 = vrot.lane.b32.xlu1 %v2652_v41, %s5784_s25  ;;  %v3560_v41 = vsel %vm1626_vm9, %v3528_v0, %v9404_v24 }
 0x694   : > { %v9498_v47 = vpop.permute.xlu0 %2966  ;;  %v3592_v6 = vsel %vm1692_vm11, %v3560_v41, %v9420_v39  ;;  %v2738_v41 = vrot.slane %v2438_v31, 2 }
 0x695   : > { %v9500_v11 = vpop.permute.xlu1 %2874  ;;  %v3625_v1 = vsel %vm3604_vm13, %v3592_v6, %v3155_v21  ;;  %v2732_v21 = vrot.slane %v2533_v33, 1 }
 0x696   : > { %3444 = vrot.lane.b32.xlu0 %v2729_v55, %s5791_s7  ;;  %v3658_v24 = vsel %vm3637_vm14, %v3625_v1, %v3251_v62  ;;  %v3499_v62 = vsel %vm1496_vm5, %v8997_v29, %v9392_v58 }
 0x697   : > { %3170 = vrot.lane.b32.xlu1 %v2727_v14, %s5789_s26  ;;  %v2734_v29 = vsel %vm563_vm1, %v2732_v21, %v2733_v3  ;;  %v3500_v21 = vsel %vm1496_vm5, %v9077_v20, %v9467_v34 }
 0x698   : > { %v3341_v38 = vpop.permute.xlu0 %3340 }
 0x699   : > { %v3253_v22 = vpop.permute.xlu1 %3252  ;;  %v3691_v39 = vsel %vm3670_vm15, %v3658_v24, %v3341_v38 }
 0x69a   : > { %2888 = vrot.lane.b32.xlu0 %v2727_v14, %s5781_s29 }
 0x69b   : > { %2800 = vrot.lane.b32.xlu1 %v2654_v51, %s5784_s25 }
 0x69c   : > { %v9514_v46 = vpop.permute.xlu0 %3062 }
 0x69d   : > { %v9518_v43 = vpop.permute.xlu1 %2968  ;;  %v9520_v48 = vpop.f32.mrb[6].mxu1 }
 0x69e   : > { %3266 = vrot.lane.b32.xlu0 %v2533_v33, %s5788_s12  ;;  %v9526_v16 = vpop.f32.mrb[7].mxu1  ;;  %v4080_v57 = vsel %vm1496_vm5, %v9520_v48, 0.0 }
 0x69f   : > { %v4078_v49 = vsel %vm1496_vm5, %v9526_v16, 0.0  ;;  %3172 = vrot.lane.b32.xlu1 %v2729_v55, %s5789_s26 }
 0x6a0   : > { %v4079_v37 = vadd.f32 %v4078_v49, %v9456_v15  ;;  %v3431_v4 = vpop.permute.xlu0 %3430  ;;  %v3529_v15 = vsel %vm1560_vm7, %v3499_v62, %v9406_v45  ;;  %v2549_v45 = vsel %vm373_vm0, %v2437_v10, %v2501_v42  ;;  %v2739_v10 = vsel %vm639_vm2, %v2737_v2, %v2738_v41 }
 0x6a1   : > { %v3724_v14 = vsel %vm3703_vm3, %v3691_v39, %v3431_v4  ;;  %v3343_v51 = vpop.permute.xlu1 %3342  ;;  %v3561_v8 = vsel %vm1626_vm9, %v3529_v15, %v9424_v36  ;;  %v2740_v49 = vrot.slane %v2549_v45, 2 }
 0x6a2   : > { %2982 = vrot.lane.b32.xlu0 %v2533_v33, %s5786_s28  ;;  %5491 = vmatprep.mubr.msk.f32.mxu1 %vm3745_vm4, %v3724_v14  ;;  %v4081_v63 = vadd.f32 %v4080_v57, %v4079_v37  ;;  %v3593_v18 = vsel %vm1692_vm11, %v3561_v8, %v9463_v13  ;;  %v3530_v14 = vsel %vm1560_vm7, %v3500_v21, %v9484_v12 }
 0x6a3   : > { %2890 = vrot.lane.b32.xlu1 %v2729_v55, %s5781_s29  ;;  %v3626_v58 = vsel %vm3604_vm13, %v3593_v18, %v3157_v5  ;;  %v2735_v5 = vrot.slane %v2549_v45, 1  ;;  %v2741_v37 = vsel %vm639_vm2, %v2738_v41, %v2740_v49  ;;  %v3501_v45 = vsel %vm1496_vm5, %v9080_v28, %v9486_v56 }
 0x6a4   : > { %v3065_v38 = vpop.permute.xlu0 %3064  ;;  %v3659_v40 = vsel %vm3637_vm14, %v3626_v58, %v3253_v22 }
 0x6a5   : > { %v9549_v30 = vpop.permute.xlu1 %2786  ;;  %v3692_v36 = vsel %vm3670_vm15, %v3659_v40, %v3343_v51  ;;  %v2736_v33 = vsel %vm563_vm1, %v2733_v3, %v2735_v5  ;;  %v3562_v51 = vsel %vm1626_vm9, %v3530_v14, %v9498_v47 }
 0x6a6   : > { %3356 = vrot.lane.b32.xlu0 %v2734_v29, %s5790_s23  ;;  %v3594_v62 = vsel %vm1692_vm11, %v3562_v51, %v9514_v46 }
 0x6a7   : > { %3268 = vrot.lane.b32.xlu1 %v2438_v31, %s5788_s12  ;;  %s5214_s12 = sshll.u32 %s5844_s22, 7  ;;  %s5792_s22 = smov [#allocation5]  }
 0x6a8   : > { %v3433_v55 = vpop.permute.xlu0 %3432  ;;  %s10098_s16 = scalar_lea.hbm %s10148_s5, %s5214_s12 }
 0x6a9   : > { %v3725_v13 = vsel %vm3703_vm3, %v3692_v36, %v3433_v55  ;;  %v3159_v0 = vpop.permute.xlu1 %3158  ;;  %v3531_v55 = vsel %vm1560_vm7, %v3501_v45, %v9500_v11 }
 0x6aa   : > { %3078 = vrot.lane.b32.xlu0 %v2734_v29, %s5787_s8  ;;  %5492 = vmatmul.mubr.msk.f32.gmra.mrb[20].mxu1 %vm3745_vm4, %v3725_v13  ;;  %v3627_v8 = vsel %vm3604_vm13, %v3594_v62, %v3159_v0 }
 0x6ab   : > { %2984 = vrot.lane.b32.xlu1 %v2438_v31, %s5786_s28 }
 0x6ac   : > { %v2877_v22 = vpop.permute.xlu0 %2876 }
 0x6ad   : > { %v9562_v6 = vpop.permute.xlu1 %2788 }
 0x6ae   : > { %3446 = vrot.lane.b32.xlu0 %v2739_v10, %s5791_s7 }
 0x6af   : > { %3358 = vrot.lane.b32.xlu1 %v2736_v33, %s5790_s23 }
 0x6b0   : > { %v3255_v1 = vpop.permute.xlu0 %3254 }
 0x6b1   : > { %v3161_v24 = vpop.permute.xlu1 %3160  ;;  %v3660_v29 = vsel %vm3637_vm14, %v3627_v8, %v3255_v1 }
 0x6b2   : > { %3174 = vrot.lane.b32.xlu0 %v2739_v10, %s5789_s26 }
 0x6b3   : > { %3080 = vrot.lane.b32.xlu1 %v2736_v33, %s5787_s8 }
 0x6b4   : > { %v2971_v39 = vpop.permute.xlu0 %2970 }
 0x6b5   : > { %v9570_v31 = vpop.permute.xlu1 %2878 }
 0x6b6   : > { %3176 = vrot.lane.b32.xlu0 %v2741_v37, %s5789_s26  ;;  %s240_s26 = scalar_lea.vmem [#allocation5], %s5113_s17  ;;  %s5715_s17 = sshll.u32 %s5792_s22, 4  ;;  %s5716_s17 = int_to_ptr.vmem [resolvable:$false] %s5715_s17 }
 0x6b7   : > { %3448 = vrot.lane.b32.xlu1 %v2741_v37, %s5791_s7  ;;  %s5036_s23 = sshll.u32 %s240_s26, 4  ;;  %s5717_s9 = scalar_lea.vmem %s5716_s17, 256  ;;  %s10100_s23 = int_to_ptr.vmem [resolvable:$true] %s5036_s23 }
 0x6b8   : > { %v3345_v4 = vpop.permute.xlu0 %3344  ;;  %s5711_s7 = scalar_lea.vmem %s10100_s23, 128  ;;  %p5718_p7 = scmp.lt.s32.totalorder %s10100_s23, %s5716_s17 }
 0x6b9   : > { %v3257_v57 = vpop.permute.xlu1 %3256  ;;  %v3693_v34 = vsel %vm3670_vm15, %v3660_v29, %v3345_v4  ;;  %p5712_p6 = scmp.ne.s32.totalorder %s10100_s23, %s5711_s7  ;;  %p5719_p10 = scmp.lt.s32.totalorder %s5717_s9, %s5711_s7 }
 0x6bb   : > { %p5713_p12 = pnand %p5712_p6, %p10525_p11  ;;  %p5720_p2 = por %p5719_p10, %p5718_p7 }
 0x6bc   : > { %v3067_v3 = vpop.permute.xlu0 %3066 }
 0x6bd   : > { %v2973_v42 = vpop.permute.xlu1 %2972  ;;  %v9584_v15 = vpop.f32.mrb[8].mxu1  ;;  %p5714_p13 = pneg %p5713_p12 }
 0x6be   : > { %v9587_v18 = vpop.f32.mrb[9].mxu1  ;;  %v4084_v58 = vsel %vm1496_vm5, %v9584_v15, 0.0 }
 0x6bf   : > { %v4082_v20 = vsel %vm1496_vm5, %v9587_v18, 0.0  ;;  %p5721_p4 = pnand %p5720_p2, %p5714_p13 }
 0x6c0   : > { %v4083_v12 = vadd.f32 %v4082_v20, %v4081_v63  ;;  %v3435_v47 = vpop.permute.xlu0 %3434  ;;  %v3563_v63 = vsel %vm1626_vm9, %v3531_v55, %v9518_v43 }
 0x6c1   : > { %v3726_v46 = vsel %vm3703_vm3, %v3693_v34, %v3435_v47  ;;  %v3347_v40 = vpop.permute.xlu1 %3346  ;;  %v3595_v13 = vsel %vm1692_vm11, %v3563_v63, %v3065_v38 }
 0x6c2   : > { %5494 = vmatprep.mubr.msk.f32.mxu1 %vm3745_vm4, %v3726_v46  ;;  %v4085_v36 = vadd.f32 %v4084_v58, %v4083_v12  ;;  %v3628_v41 = vsel %vm3604_vm13, %v3595_v13, %v3161_v24  ;;  %v3503_v46 = vsel %vm1496_vm5, %v9163_v25, %v9562_v6 }
 0x6c3   : > { %v3661_v5 = vsel %vm3637_vm14, %v3628_v41, %v3257_v57  ;;  %v3502_v57 = vsel %vm1496_vm5, %v9160_v50, %v9549_v30  ;;  %v3533_v45 = vsel %vm1560_vm7, %v3503_v46, %v9570_v31 }
 0x6c4   : > { %v3069_v2 = vpop.permute.xlu0 %3068  ;;  %v3694_v10 = vsel %vm3670_vm15, %v3661_v5, %v3347_v40  ;;  %v3532_v21 = vsel %vm1560_vm7, %v3502_v57, %v2877_v22  ;;  %v3565_v55 = vsel %vm1626_vm9, %v3533_v45, %v2973_v42 }
 0x6c5   : > { %v2791_v0 = vpop.permute.xlu1 %2790  ;;  %v3564_v14 = vsel %vm1626_vm9, %v3532_v21, %v2971_v39  ;;  %v3597_v63 = vsel %vm1692_vm11, %v3565_v55, %v3069_v2 }
 0x6c6   : > { %v3596_v62 = vsel %vm1692_vm11, %v3564_v14, %v3067_v3 }
 0x6c8   : > { %v3437_v28 = vpop.permute.xlu0 %3436 }
 0x6c9   : > { %v3727_v56 = vsel %vm3703_vm3, %v3694_v10, %v3437_v28  ;;  %v3163_v33 = vpop.permute.xlu1 %3162 }
 0x6ca   : > { %5495 = vmatmul.mubr.msk.f32.gmra.mrb[22].mxu1 %vm3745_vm4, %v3727_v56  ;;  %v3629_v20 = vsel %vm3604_vm13, %v3596_v62, %v3163_v33 }
 0x6cc   : > { %v2881_v11 = vpop.permute.xlu0 %2880 }
 0x6cd   : > { %v9610_v1 = vpop.permute.xlu1 %2792 }
 0x6d0   : > { %v3259_v43 = vpop.permute.xlu0 %3258 }
 0x6d1   : > { %v3165_v49 = vpop.permute.xlu1 %3164  ;;  %v3662_v12 = vsel %vm3637_vm14, %v3629_v20, %v3259_v43 }
 0x6d2   : > { %v3630_v41 = vsel %vm3604_vm13, %v3597_v63, %v3165_v49 }
 0x6d4   : > { %v2975_v37 = vpop.permute.xlu0 %2974 }
 0x6d5   : > { %v9612_v38 = vpop.permute.xlu1 %2882 }
 0x6d8   : > { %v3349_v4 = vpop.permute.xlu0 %3348 }
 0x6d9   : > { %v3261_v24 = vpop.permute.xlu1 %3260  ;;  %v3695_v50 = vsel %vm3670_vm15, %v3662_v12, %v3349_v4 }
 0x6da   : > { %v3663_v5 = vsel %vm3637_vm14, %v3630_v41, %v3261_v24  ;;  %v3504_v24 = vsel %vm1496_vm5, %v9243_v27, %v2791_v0 }
 0x6db   : > { %v3534_v57 = vsel %vm1560_vm7, %v3504_v24, %v2881_v11 }
 0x6dc   : > { %v3071_v51 = vpop.permute.xlu0 %3070  ;;  %v3566_v21 = vsel %vm1626_vm9, %v3534_v57, %v2975_v37 }
 0x6dd   : > { %v2977_v8 = vpop.permute.xlu1 %2976  ;;  %v9620_v29 = vpop.f32.mrb[10].mxu1  ;;  %v3598_v62 = vsel %vm1692_vm11, %v3566_v21, %v3071_v51 }
 0x6de   : > { %v9623_v34 = vpop.f32.mrb[11].mxu1  ;;  %v4088_v39 = vsel %vm1496_vm5, %v9620_v29, 0.0 }
 0x6df   : > { %v4086_v47 = vsel %vm1496_vm5, %v9623_v34, 0.0 }
 0x6e0   : > { %v4087_v30 = vadd.f32 %v4086_v47, %v4085_v36  ;;  %v3439_v22 = vpop.permute.xlu0 %3438 }
 0x6e1   : > { %v3728_v3 = vsel %vm3703_vm3, %v3695_v50, %v3439_v22  ;;  %v3351_v58 = vpop.permute.xlu1 %3350 }
 0x6e2   : > { %5497 = vmatprep.mubr.msk.f32.mxu1 %vm3745_vm4, %v3728_v3  ;;  %v4089_v40 = vadd.f32 %v4088_v39, %v4087_v30  ;;  %v3696_v10 = vsel %vm3670_vm15, %v3663_v5, %v3351_v58  ;;  %v3505_v3 = vsel %vm1496_vm5, %v9246_v9, %v9610_v1 }
 0x6e3   : > { %v3535_v46 = vsel %vm1560_vm7, %v3505_v3, %v9612_v38 }
 0x6e4   : > { %v3073_v36 = vpop.permute.xlu0 %3072 }
 0x6e5   : > { %v2795_v13 = vpop.permute.xlu1 %2794 }
 0x6e6   : > { %v3506_v21 = vsel %vm1496_vm5, %v9336_v60, %v2795_v13 }
 0x6e8   : > { %v3441_v28 = vpop.permute.xlu0 %3440 }
 0x6e9   : > { %v3729_v25 = vsel %vm3703_vm3, %v3696_v10, %v3441_v28  ;;  %v3167_v6 = vpop.permute.xlu1 %3166 }
 0x6ea   : > { %5498 = vmatmul.mubr.msk.f32.gmra.mrb[24].mxu1 %vm3745_vm4, %v3729_v25  ;;  %v3631_v47 = vsel %vm3604_vm13, %v3598_v62, %v3167_v6 }
 0x6ec   : > { %v2885_v56 = vpop.permute.xlu0 %2884 }
 0x6ed   : > { %v9645_v31 = vpop.permute.xlu1 %2796  ;;  %v3536_v62 = vsel %vm1560_vm7, %v3506_v21, %v2885_v56 }
 0x6f0   : > { %v9647_v42 = vpop.permute.xlu0 %3262 }
 0x6f1   : > { %v3169_v33 = vpop.permute.xlu1 %3168  ;;  %v3664_v30 = vsel %vm3637_vm14, %v3631_v47, %v9647_v42 }
 0x6f4   : > { %v2979_v2 = vpop.permute.xlu0 %2978 }
 0x6f5   : > { %v9649_v43 = vpop.permute.xlu1 %2886  ;;  %v3568_v47 = vsel %vm1626_vm9, %v3536_v62, %v2979_v2 }
 0x6f8   : > { %v9651_v49 = vpop.permute.xlu0 %3352 }
 0x6f9   : > { %v9653_v4 = vpop.permute.xlu1 %3264  ;;  %v3697_v0 = vsel %vm3670_vm15, %v3664_v30, %v9651_v49 }
 0x6fc   : > { %v3075_v14 = vpop.permute.xlu0 %3074 }
 0x6fd   : > { %v2981_v20 = vpop.permute.xlu1 %2980  ;;  %v9660_v12 = vpop.f32.mrb[12].mxu1 }
 0x6fe   : > { %v9663_v50 = vpop.f32.mrb[13].mxu1  ;;  %v4092_v51 = vsel %vm1496_vm5, %v9660_v12, 0.0 }
 0x6ff   : > { %v4090_v27 = vsel %vm1496_vm5, %v9663_v50, 0.0 }
 0x700   : > { %v4091_v11 = vadd.f32 %v4090_v27, %v4089_v40  ;;  %v9671_v37 = vpop.permute.xlu0 %3442  ;;  %v3567_v40 = vsel %vm1626_vm9, %v3535_v46, %v2977_v8  ;;  %v3600_v27 = vsel %vm1692_vm11, %v3568_v47, %v3075_v14 }
 0x701   : > { %v3730_v22 = vsel %vm3703_vm3, %v3697_v0, %v9671_v37  ;;  %v9677_v39 = vpop.permute.xlu1 %3354  ;;  %v3599_v55 = vsel %vm1692_vm11, %v3567_v40, %v3073_v36 }
 0x702   : > { %5500 = vmatprep.mubr.msk.f32.mxu1 %vm3745_vm4, %v3730_v22  ;;  %v4093_v58 = vadd.f32 %v4092_v51, %v4091_v11  ;;  %v3632_v41 = vsel %vm3604_vm13, %v3599_v55, %v3169_v33 }
 0x703   : > { %v3665_v5 = vsel %vm3637_vm14, %v3632_v41, %v9653_v4 }
 0x704   : > { %v3077_v45 = vpop.permute.xlu0 %3076  ;;  %v3698_v9 = vsel %vm3670_vm15, %v3665_v5, %v9677_v39 }
 0x705   : > { %v2799_v63 = vpop.permute.xlu1 %2798 }
 0x706   : > { %v3508_v2 = vsel %vm1496_vm5, %v9429_v26, %v2799_v63 }
 0x708   : > { %v3445_v1 = vpop.permute.xlu0 %3444 }
 0x709   : > { %v3731_v10 = vsel %vm3703_vm3, %v3698_v9, %v3445_v1  ;;  %v3171_v28 = vpop.permute.xlu1 %3170  ;;  %v3507_v9 = vsel %vm1496_vm5, %v9339_v23, %v9645_v31 }
 0x70a   : > { %5501 = vmatmul.mubr.msk.f32.gmra.mrb[26].mxu1 %vm3745_vm4, %v3731_v10  ;;  %v3633_v51 = vsel %vm3604_vm13, %v3600_v27, %v3171_v28  ;;  %v3537_v26 = vsel %vm1560_vm7, %v3507_v9, %v9649_v43 }
 0x70b   : > { %v3569_v28 = vsel %vm1626_vm9, %v3537_v26, %v2981_v20 }
 0x70c   : > { %v2889_v38 = vpop.permute.xlu0 %2888  ;;  %v3601_v21 = vsel %vm1692_vm11, %v3569_v28, %v3077_v45 }
 0x70d   : > { %v2801_v8 = vpop.permute.xlu1 %2800  ;;  %v3538_v41 = vsel %vm1560_vm7, %v3508_v2, %v2889_v38 }
 0x70e   : > { %v3509_v38 = vsel %vm1496_vm5, %v9432_v17, %v2801_v8 }
 0x710   : > { %v3267_v25 = vpop.permute.xlu0 %3266 }
 0x711   : > { %v3173_v6 = vpop.permute.xlu1 %3172  ;;  %v3666_v3 = vsel %vm3637_vm14, %v3633_v51, %v3267_v25 }
 0x712   : > { %v3634_v43 = vsel %vm3604_vm13, %v3601_v21, %v3173_v6 }
 0x714   : > { %v2983_v36 = vpop.permute.xlu0 %2982 }
 0x715   : > { %v2891_v24 = vpop.permute.xlu1 %2890 }
 0x716   : > { %v3539_v23 = vsel %vm1560_vm7, %v3509_v38, %v2891_v24 }
 0x718   : > { %v3357_v57 = vpop.permute.xlu0 %3356 }
 0x719   : > { %v3269_v33 = vpop.permute.xlu1 %3268  ;;  %v3699_v60 = vsel %vm3670_vm15, %v3666_v3, %v3357_v57 }
 0x71a   : > { %v3667_v62 = vsel %vm3637_vm14, %v3634_v43, %v3269_v33 }
 0x71c   : > { %v3079_v30 = vpop.permute.xlu0 %3078 }
 0x71d   : > { %v2985_v0 = vpop.permute.xlu1 %2984  ;;  %v9699_v11 = vpop.f32.mrb[14].mxu1 }
 0x71e   : > { %v9702_v22 = vpop.f32.mrb[15].mxu1  ;;  %v4096_v14 = vsel %vm1496_vm5, %v9699_v11, 0.0 }
 0x71f   : > { %v4094_v46 = vsel %vm1496_vm5, %v9702_v22, 0.0 }
 0x720   : > { %v4095_v13 = vadd.f32 %v4094_v46, %v4093_v58  ;;  %v3447_v56 = vpop.permute.xlu0 %3446  ;;  %v3570_v58 = vsel %vm1626_vm9, %v3538_v41, %v2983_v36  ;;  %v3571_v36 = vsel %vm1626_vm9, %v3539_v23, %v2985_v0 }
 0x721   : > { %v3732_v40 = vsel %vm3703_vm3, %v3699_v60, %v3447_v56  ;;  %v3359_v55 = vpop.permute.xlu1 %3358  ;;  %v3602_v63 = vsel %vm1692_vm11, %v3570_v58, %v3079_v30 }
 0x722   : > { %5503 = vmatprep.mubr.msk.f32.mxu1 %vm3745_vm4, %v3732_v40  ;;  %v4097_v5 = vadd.f32 %v4096_v14, %v4095_v13  ;;  %v3700_v8 = vsel %vm3670_vm15, %v3667_v62, %v3359_v55 }
 0x724   : > { %v3175_v10 = vpop.permute.xlu0 %3174 }
 0x725   : > { %v3635_v25 = vsel %vm3604_vm13, %v3602_v63, %v3175_v10  ;;  %v3081_v57 = vpop.permute.xlu1 %3080 }
 0x726   : > { %v3668_v31 = vsel %vm3637_vm14, %v3635_v25, %v9647_v42  ;;  %v3603_v20 = vsel %vm1692_vm11, %v3571_v36, %v3081_v57 }
 0x727   : > { %v3701_v17 = vsel %vm3670_vm15, %v3668_v31, %v9651_v49 }
 0x728   : > { %v3177_v47 = vpop.permute.xlu0 %3176  ;;  %v3734_v33 = vsel %vm3703_vm3, %v3701_v17, %v9671_v37 }
 0x729   : > { %v3636_v45 = vsel %vm3604_vm13, %v3603_v20, %v3177_v47  ;;  %v3449_v24 = vpop.permute.xlu1 %3448 }
 0x72a   : > { %v3669_v42 = vsel %vm3637_vm14, %v3636_v45, %v9653_v4  ;;  %v3733_v6 = vsel %vm3703_vm3, %v3700_v8, %v3449_v24 }
 0x72b   : > { %5504 = vmatmul.mubr.msk.f32.gmra.mrb[28].mxu1 %vm3745_vm4, %v3733_v6  ;;  %v3702_v30 = vsel %vm3670_vm15, %v3669_v42, %v9677_v39 }
 0x72c   : > { %5506 = vmatprep.mubr.msk.f32.mxu1 %vm3745_vm4, %v3734_v33  ;;  %v3735_v49 = vsel %vm3703_vm3, %v3702_v30, %v3445_v1 }
 0x72f   : > { %5507 = vmatmul.mubr.msk.f32.gmra.mrb[30].mxu1 %vm3745_vm4, %v3735_v49 }
 0x73d   : > { %v9749_v27 = vpop.f32.mrb[16].mxu1 }
 0x73e   : > { %v9751_v0 = vpop.f32.mrb[17].mxu1  ;;  %v4100_v37 = vsel %vm1496_vm5, %v9749_v27, 0.0 }
 0x73f   : > { %v4098_v4 = vsel %vm1496_vm5, %v9751_v0, 0.0 }
 0x740   : > { %v4099_v51 = vadd.f32 %v4098_v4, %v4097_v5 }
 0x742   : > { %v4101_v3 = vadd.f32 %v4100_v37, %v4099_v51 }
 0x75d   : > { %v9757_v46 = vpop.f32.mrb[18].mxu1 }
 0x75e   : > { %v9759_v39 = vpop.f32.mrb[19].mxu1  ;;  %v4104_v13 = vsel %vm1496_vm5, %v9757_v46, 0.0 }
 0x75f   : > { %v4102_v1 = vsel %vm1496_vm5, %v9759_v39, 0.0 }
 0x760   : > { %v4103_v60 = vadd.f32 %v4102_v1, %v4101_v3 }
 0x762   : > { %v4105_v56 = vadd.f32 %v4104_v13, %v4103_v60 }
 0x77d   : > { %v9765_v2 = vpop.f32.mrb[20].mxu1 }
 0x77e   : > { %v4008_v14 = vpop.f32.mrb[21].mxu1  ;;  %v4108_v41 = vsel %vm1496_vm5, %v9765_v2, 0.0 }
 0x77f   : > { %v4106_v40 = vsel %vm1496_vm5, %v4008_v14, 0.0 }
 0x780   : > { %v4107_v55 = vadd.f32 %v4106_v40, %v4105_v56 }
 0x782   : > { %v4109_v5 = vadd.f32 %v4108_v41, %v4107_v55 }
 0x79d   : > { %v5496_v9 = vpop.f32.mrb[22].mxu1 }
 0x79e   : > { %v4018_v58 = vpop.f32.mrb[23].mxu1  ;;  %v4112_v10 = vsel %vm1496_vm5, %v5496_v9, 0.0 }
 0x79f   : > { %v4110_v26 = vsel %vm1496_vm5, %v4018_v58, 0.0 }
 0x7a0   : > { %v4111_v63 = vadd.f32 %v4110_v26, %v4109_v5 }
 0x7a2   : > { %v4113_v28 = vadd.f32 %v4112_v10, %v4111_v63 }
 0x7bd   : > { %v5499_v38 = vpop.f32.mrb[24].mxu1 }
 0x7be   : > { %v4028_v25 = vpop.f32.mrb[25].mxu1  ;;  %v4116_v23 = vsel %vm1496_vm5, %v5499_v38, 0.0 }
 0x7bf   : > { %v4114_v57 = vsel %vm1496_vm5, %v4028_v25, 0.0 }
 0x7c0   : > { %v4115_v21 = vadd.f32 %v4114_v57, %v4113_v28 }
 0x7c2   : > { %v4117_v31 = vadd.f32 %v4116_v23, %v4115_v21 }
 0x7dd   : > { %v5502_v43 = vpop.f32.mrb[26].mxu1 }
 0x7de   : > { %v4038_v36 = vpop.f32.mrb[27].mxu1  ;;  %v4120_v47 = vsel %vm1496_vm5, %v5502_v43, 0.0 }
 0x7df   : > { %v4118_v62 = vsel %vm1496_vm5, %v4038_v36, 0.0 }
 0x7e0   : > { %v4119_v20 = vadd.f32 %v4118_v62, %v4117_v31 }
 0x7e2   : > { %v4121_v17 = vadd.f32 %v4120_v47, %v4119_v20 }
 0x7fe   : > { %v5505_v8 = vpop.f32.mrb[28].mxu1 }
 0x7ff   : > { %v4048_v45 = vpop.f32.mrb[29].mxu1  ;;  %v4124_v6 = vsel %vm1496_vm5, %v5505_v8, 0.0 }
 0x800   : > { %v4122_v24 = vsel %vm1496_vm5, %v4048_v45, 0.0 }
 0x801   : > { %v4123_v42 = vadd.f32 %v4122_v24, %v4121_v17 }
 0x802   : > { %v5508_v33 = vpop.f32.mrb[30].mxu1 }
 0x803   : > { %v4058_v30 = vpop.f32.mrb[31].mxu1  ;;  %v4125_v49 = vadd.f32 %v4124_v6, %v4123_v42  ;;  %v4128_v37 = vsel %vm1496_vm5, %v5508_v33, 0.0 }
 0x804   : > { %v4126_v4 = vsel %vm1496_vm5, %v4058_v30, 0.0 }
 0x805   : > { %v4127_v51 = vadd.f32 %v4126_v4, %v4125_v49 }
 0x807   : > { %v4129_v3 = vadd.f32 %v4128_v37, %v4127_v51  ;;  %v4869_v37 = vld [vmem:[%s10147_s4 + $0x8] sm:$0xff] }
 0x808   : > { %4948 = vmatprep.mubr.f32.mxu1 %v4869_v37 }
 0x809   : > { %v4130_v1 = vrot.slane %v4129_v3, 4 }
 0x80b   : > { %v4131_v60 = vadd.f32 %v4130_v1, %v4129_v3 }
 0x80d   : > { %v4132_v13 = vrot.slane %v4131_v60, 2 }
 0x80f   : > { %v4133_v56 = vadd.f32 %v4132_v13, %v4131_v60 }
 0x811   : > { %v4134_v40 = vrot.slane %v4133_v56, 1 }
 0x813   : > { %v4135_v55 = vadd.f32 %v4134_v40, %v4133_v56 }
 0x815   : > { %v4136_v41 = vmul.f32 0.00390625, %v4135_v55 }
 0x817   : > { %v9781_v5 = vsub.f32 %v9306_v7, %v4136_v41  ;;  %v9784_v26 = vsub.f32 %v9299_v44, %v4136_v41  ;;  %v9787_v63 = vsub.f32 %v9344_v52, %v4136_v41  ;;  %v9790_v10 = vsub.f32 %v9333_v54, %v4136_v41 }
 0x818   : > { %v9793_v28 = vsub.f32 %v9437_v61, %v4136_v41  ;;  %v9796_v57 = vsub.f32 %v9426_v59, %v4136_v41  ;;  %v9799_v21 = vsub.f32 %v9526_v16, %v4136_v41  ;;  %v9802_v7 = vsub.f32 %v9520_v48, %v4136_v41 }
 0x819   : > { %v9805_v44 = vsub.f32 %v9587_v18, %v4136_v41  ;;  %v9808_v52 = vsub.f32 %v9584_v15, %v4136_v41  ;;  %v9811_v54 = vsub.f32 %v9623_v34, %v4136_v41  ;;  %v9814_v61 = vsub.f32 %v9620_v29, %v4136_v41 }
 0x81a   : > { %v9817_v59 = vsub.f32 %v9663_v50, %v4136_v41  ;;  %v9820_v16 = vsub.f32 %v9660_v12, %v4136_v41  ;;  %v9823_v48 = vsub.f32 %v9702_v22, %v4136_v41  ;;  %v9826_v18 = vsub.f32 %v9699_v11, %v4136_v41 }
 0x81b   : > { %v9829_v15 = vsub.f32 %v9751_v0, %v4136_v41  ;;  %v9832_v34 = vsub.f32 %v9749_v27, %v4136_v41  ;;  %v9835_v29 = vsub.f32 %v9759_v39, %v4136_v41  ;;  %v9838_v50 = vsub.f32 %v9757_v46, %v4136_v41 }
 0x81c   : > { %v9840_v12 = vsub.f32 %v4008_v14, %v4136_v41  ;;  %v9843_v22 = vsub.f32 %v9765_v2, %v4136_v41  ;;  %v9845_v23 = vsub.f32 %v4018_v58, %v4136_v41  ;;  %v9847_v11 = vsub.f32 %v5496_v9, %v4136_v41 }
 0x81d   : > { %v9849_v0 = vsub.f32 %v4028_v25, %v4136_v41  ;;  %v9851_v31 = vsub.f32 %v5499_v38, %v4136_v41  ;;  %v9853_v27 = vsub.f32 %v4038_v36, %v4136_v41  ;;  %v9855_v39 = vsub.f32 %v5502_v43, %v4136_v41 }
 0x81e   : > { %v9857_v62 = vsub.f32 %v4048_v45, %v4136_v41  ;;  %v9859_v46 = vsub.f32 %v5505_v8, %v4136_v41  ;;  %v9861_v14 = vsub.f32 %v4058_v30, %v4136_v41  ;;  %v9863_v2 = vsub.f32 %v5508_v33, %v4136_v41 }
 0x81f   : > { %v4169_v9 = vmul.f32 %v9781_v5, %v9781_v5  ;;  %v4170_v58 = vmul.f32 %v9784_v26, %v9784_v26  ;;  %v4171_v38 = vmul.f32 %v9787_v63, %v9787_v63  ;;  %v4172_v25 = vmul.f32 %v9790_v10, %v9790_v10 }
 0x820   : > { %v4173_v47 = vmul.f32 %v9793_v28, %v9793_v28  ;;  %v4174_v45 = vmul.f32 %v9796_v57, %v9796_v57  ;;  %v4175_v6 = vmul.f32 %v9799_v21, %v9799_v21  ;;  %v4176_v49 = vmul.f32 %v9802_v7, %v9802_v7 }
 0x821   : > { %v4201_v43 = vsel %vm1496_vm5, %v4169_v9, 0.0  ;;  %v4202_v36 = vsel %vm1496_vm5, %v4170_v58, 0.0  ;;  %v4204_v17 = vsel %vm1496_vm5, %v4171_v38, 0.0  ;;  %v4206_v24 = vsel %vm1496_vm5, %v4172_v25, 0.0 }
 0x822   : > { %v4203_v20 = vadd.f32 %v4202_v36, %v4201_v43  ;;  %v4208_v33 = vsel %vm1496_vm5, %v4173_v47, 0.0  ;;  %v4210_v4 = vsel %vm1496_vm5, %v4174_v45, 0.0  ;;  %v4177_v3 = vmul.f32 %v9805_v44, %v9805_v44 }
 0x823   : > { %v4212_v1 = vsel %vm1496_vm5, %v4175_v6, 0.0  ;;  %v4178_v13 = vmul.f32 %v9808_v52, %v9808_v52  ;;  %v4214_v56 = vsel %vm1496_vm5, %v4176_v49, 0.0  ;;  %v4179_v55 = vmul.f32 %v9811_v54, %v9811_v54 }
 0x824   : > { %v4205_v8 = vadd.f32 %v4204_v17, %v4203_v20  ;;  %v4216_v41 = vsel %vm1496_vm5, %v4177_v3, 0.0  ;;  %v4180_v58 = vmul.f32 %v9814_v61, %v9814_v61  ;;  %v4181_v43 = vmul.f32 %v9817_v59, %v9817_v59 }
 0x825   : > { %v4218_v38 = vsel %vm1496_vm5, %v4178_v13, 0.0  ;;  %v4220_v36 = vsel %vm1496_vm5, %v4179_v55, 0.0  ;;  %v4182_v47 = vmul.f32 %v9820_v16, %v9820_v16  ;;  %v4183_v45 = vmul.f32 %v9823_v48, %v9823_v48 }
 0x826   : > { %v4207_v42 = vadd.f32 %v4206_v24, %v4205_v8  ;;  %v4222_v17 = vsel %vm1496_vm5, %v4180_v58, 0.0  ;;  %v4224_v24 = vsel %vm1496_vm5, %v4181_v43, 0.0  ;;  %v4184_v6 = vmul.f32 %v9826_v18, %v9826_v18 }
 0x827   : > { %v4185_v49 = vmul.f32 %v9829_v15, %v9829_v15  ;;  %v4186_v37 = vmul.f32 %v9832_v34, %v9832_v34 }
 0x828   : > { %v4209_v30 = vadd.f32 %v4208_v33, %v4207_v42  ;;  %v4226_v33 = vsel %vm1496_vm5, %v4182_v47, 0.0  ;;  %v4230_v3 = vsel %vm1496_vm5, %v4184_v6, 0.0 }
 0x829   : > { %v4232_v13 = vsel %vm1496_vm5, %v4185_v49, 0.0  ;;  %v4234_v55 = vsel %vm1496_vm5, %v4186_v37, 0.0 }
 0x82a   : > { %v4211_v51 = vadd.f32 %v4210_v4, %v4209_v30  ;;  %v4228_v4 = vsel %vm1496_vm5, %v4183_v45, 0.0 }
 0x82c   : > { %v4213_v60 = vadd.f32 %v4212_v1, %v4211_v51 }
 0x82e   : > { %v4215_v40 = vadd.f32 %v4214_v56, %v4213_v60  ;;  %v4187_v60 = vmul.f32 %v9835_v29, %v9835_v29 }
 0x830   : > { %v4217_v9 = vadd.f32 %v4216_v41, %v4215_v40  ;;  %v4188_v40 = vmul.f32 %v9838_v50, %v9838_v50  ;;  %v4236_v58 = vsel %vm1496_vm5, %v4187_v60, 0.0 }
 0x832   : > { %v4219_v25 = vadd.f32 %v4218_v38, %v4217_v9  ;;  %v4189_v9 = vmul.f32 %v9840_v12, %v9840_v12  ;;  %v4238_v43 = vsel %vm1496_vm5, %v4188_v40, 0.0 }
 0x834   : > { %v4221_v20 = vadd.f32 %v4220_v36, %v4219_v25  ;;  %v4190_v25 = vmul.f32 %v9843_v22, %v9843_v22  ;;  %v4240_v47 = vsel %vm1496_vm5, %v4189_v9, 0.0 }
 0x836   : > { %v4223_v8 = vadd.f32 %v4222_v17, %v4221_v20  ;;  %v4191_v20 = vmul.f32 %v9845_v23, %v9845_v23  ;;  %v4242_v45 = vsel %vm1496_vm5, %v4190_v25, 0.0 }
 0x838   : > { %v4225_v42 = vadd.f32 %v4224_v24, %v4223_v8  ;;  %v4192_v8 = vmul.f32 %v9847_v11, %v9847_v11  ;;  %v4244_v6 = vsel %vm1496_vm5, %v4191_v20, 0.0 }
 0x83a   : > { %v4227_v30 = vadd.f32 %v4226_v33, %v4225_v42  ;;  %v4193_v42 = vmul.f32 %v9849_v0, %v9849_v0  ;;  %v4246_v49 = vsel %vm1496_vm5, %v4192_v8, 0.0 }
 0x83c   : > { %v4229_v51 = vadd.f32 %v4228_v4, %v4227_v30  ;;  %v4194_v30 = vmul.f32 %v9851_v31, %v9851_v31  ;;  %v4248_v37 = vsel %vm1496_vm5, %v4193_v42, 0.0 }
 0x83e   : > { %v4231_v1 = vadd.f32 %v4230_v3, %v4229_v51  ;;  %v4195_v51 = vmul.f32 %v9853_v27, %v9853_v27  ;;  %v4250_v60 = vsel %vm1496_vm5, %v4194_v30, 0.0 }
 0x840   : > { %v4233_v56 = vadd.f32 %v4232_v13, %v4231_v1  ;;  %v4196_v1 = vmul.f32 %v9855_v39, %v9855_v39  ;;  %v4252_v40 = vsel %vm1496_vm5, %v4195_v51, 0.0 }
 0x842   : > { %v4235_v41 = vadd.f32 %v4234_v55, %v4233_v56  ;;  %v4197_v56 = vmul.f32 %v9857_v62, %v9857_v62  ;;  %v4254_v9 = vsel %vm1496_vm5, %v4196_v1, 0.0  ;;  %v10494_v1 = vld [vmem:[#allocation53_spill] sm:$0xff] }
 0x844   : > { %v4237_v38 = vadd.f32 %v4236_v58, %v4235_v41  ;;  %v4198_v41 = vmul.f32 %v9859_v46, %v9859_v46  ;;  %v4256_v25 = vsel %vm1496_vm5, %v4197_v56, 0.0 }
 0x846   : > { %v4239_v36 = vadd.f32 %v4238_v43, %v4237_v38  ;;  %v4199_v38 = vmul.f32 %v9861_v14, %v9861_v14  ;;  %v4258_v20 = vsel %vm1496_vm5, %v4198_v41, 0.0  ;;  %v4808_v41 = vmul.f32 %v8512_v32, %v8146_v35 }
 0x848   : > { %v4241_v17 = vadd.f32 %v4240_v47, %v4239_v36  ;;  %v4200_v36 = vmul.f32 %v9863_v2, %v9863_v2 }
 0x84a   : > { %v4243_v24 = vadd.f32 %v4242_v45, %v4241_v17  ;;  %v4260_v17 = vsel %vm1496_vm5, %v4199_v38, 0.0  ;;  %v4262_v45 = vsel %vm1496_vm5, %v4200_v36, 0.0  ;;  %v10498_v38 = vld [vmem:[#allocation58_spill] sm:$0xff]  ;;  %v10500_v36 = vld [vmem:[#allocation17_spill] sm:$0xff] }
 0x84c   : > { %v4245_v33 = vadd.f32 %v4244_v6, %v4243_v24 }
 0x84e   : > { %v4247_v4 = vadd.f32 %v4246_v49, %v4245_v33 }
 0x850   : > { %v4249_v3 = vadd.f32 %v4248_v37, %v4247_v4 }
 0x852   : > { %v4251_v13 = vadd.f32 %v4250_v60, %v4249_v3  ;;  %v4804_v3 = vmul.f32 %v8512_v32, %v8134_v19  ;;  %v4805_v60 = vmul.f32 %v8512_v32, %v10494_v1 }
 0x854   : > { %v4253_v55 = vadd.f32 %v4252_v40, %v4251_v13  ;;  %v10495_v13 = vld [vmem:[#allocation39_spill] sm:$0xff]  ;;  %v10496_v40 = vld [vmem:[#allocation52_spill] sm:$0xff] }
 0x855   : > { %v4806_v56 = vmul.f32 %v8512_v32, %v10495_v13 }
 0x856   : > { %v4255_v58 = vadd.f32 %v4254_v9, %v4253_v55  ;;  %v4807_v55 = vmul.f32 %v8512_v32, %v10496_v40  ;;  %v10497_v9 = vld [vmem:[#allocation56_spill] sm:$0xff] }
 0x858   : > { %v4257_v43 = vadd.f32 %v4256_v25, %v4255_v58  ;;  %v4809_v58 = vmul.f32 %v8512_v32, %v10497_v9  ;;  %v4810_v25 = vmul.f32 %v8512_v32, %v10498_v38 }
 0x85a   : > { %v4259_v47 = vadd.f32 %v4258_v20, %v4257_v43  ;;  %v10499_v43 = vld [vmem:[#allocation54_spill] sm:$0xff]  ;;  %v4812_v20 = vmul.f32 %v8512_v32, %v10500_v36 }
 0x85b   : > { %v4811_v19 = vmul.f32 %v8512_v32, %v10499_v43 }
 0x85c   : > { %v4261_v8 = vadd.f32 %v4260_v17, %v4259_v47  ;;  %v10501_v47 = vld [vmem:[#allocation57_spill] sm:$0xff] }
 0x85d   : > { %v4813_v17 = vmul.f32 %v8512_v32, %v10501_v47 }
 0x85e   : > { %v4263_v24 = vadd.f32 %v4262_v45, %v4261_v8  ;;  %v10502_v8 = vld [vmem:[#allocation59_spill] sm:$0xff] }
 0x85f   : > { %v4814_v45 = vmul.f32 %v8512_v32, %v10502_v8 }
 0x860   : > { %v4264_v42 = vrot.slane %v4263_v24, 4 }
 0x862   : > { %v4265_v6 = vadd.f32 %v4264_v42, %v4263_v24  ;;  %v10503_v24 = vld [vmem:[#allocation60_spill] sm:$0xff] }
 0x863   : > { %v4815_v35 = vmul.f32 %v8512_v32, %v10503_v24 }
 0x864   : > { %v4266_v33 = vrot.slane %v4265_v6, 2 }
 0x866   : > { %v4267_v30 = vadd.f32 %v4266_v33, %v4265_v6  ;;  %v10504_v6 = vld [vmem:[#allocation16_spill] sm:$0xff] }
 0x867   : > { %v4816_v33 = vmul.f32 %v8512_v32, %v10504_v6 }
 0x868   : > { %v4268_v49 = vrot.slane %v4267_v30, 1 }
 0x86a   : > { %v4269_v4 = vadd.f32 %v4268_v49, %v4267_v30  ;;  %v10505_v30 = vld [vmem:[#allocation65_spill] sm:$0xff] }
 0x86b   : > { %v4817_v49 = vmul.f32 %v8512_v32, %v10505_v30 }
 0x86c   : > { %v4270_v51 = vmul.f32 0.00390625, %v4269_v4  ;;  %v10506_v4 = vld [vmem:[#allocation67_spill] sm:$0xff] }
 0x86e   : > { %v4271_v37 = vadd.f32 1e-05, %v4270_v51  ;;  %v4818_v51 = vmul.f32 %v8512_v32, %v10506_v4 }
 0x870   : > { %5679 = vrsqrt.f32 %v4271_v37  ;;  %v10507_v37 = vld [vmem:[#allocation71_spill] sm:$0xff] }
 0x871   : > { %v4819_v1 = vmul.f32 %v8512_v32, %v10507_v37 }
 0x87a   : > { %v5680_v42 = vpop.eup %5679 }
 0x87b   : > { %v4303_v13 = vmul.f32 %v5680_v42, %v9861_v14  ;;  %v4273_v40 = vmul.f32 %v5680_v42, %v9781_v5  ;;  %v4274_v9 = vmul.f32 %v5680_v42, %v9784_v26  ;;  %v4275_v38 = vmul.f32 %v5680_v42, %v9787_v63 }
 0x87c   : > { %v4276_v43 = vmul.f32 %v5680_v42, %v9790_v10  ;;  %v4277_v36 = vmul.f32 %v5680_v42, %v9793_v28  ;;  %v4278_v47 = vmul.f32 %v5680_v42, %v9796_v57  ;;  %v4279_v8 = vmul.f32 %v5680_v42, %v9799_v21 }
 0x87d   : > { %v10005_v24 = vadd.f32 %v8516_v53, %v4303_v13  ;;  %v4280_v32 = vmul.f32 %v5680_v42, %v9802_v7  ;;  %v4281_v14 = vmul.f32 %v5680_v42, %v9805_v44  ;;  %v4282_v5 = vmul.f32 %v5680_v42, %v9808_v52 }
 0x87e   : > { %v4283_v26 = vmul.f32 %v5680_v42, %v9811_v54  ;;  %v4284_v63 = vmul.f32 %v5680_v42, %v9814_v61  ;;  %v4285_v10 = vmul.f32 %v5680_v42, %v9817_v59  ;;  %v4286_v28 = vmul.f32 %v5680_v42, %v9820_v16 }
 0x87f   : > { %10508 = vst [vmem:[#allocation21_spill] sm:$0xff] %v10005_v24  ;;  %v4287_v57 = vmul.f32 %v5680_v42, %v9823_v48  ;;  %v4288_v21 = vmul.f32 %v5680_v42, %v9826_v18  ;;  %v4289_v53 = vmul.f32 %v5680_v42, %v9829_v15  ;;  %v4290_v7 = vmul.f32 %v5680_v42, %v9832_v34 }
 0x880   : > { %v4291_v44 = vmul.f32 %v5680_v42, %v9835_v29  ;;  %v4292_v52 = vmul.f32 %v5680_v42, %v9838_v50  ;;  %v4293_v54 = vmul.f32 %v5680_v42, %v9840_v12  ;;  %v4294_v61 = vmul.f32 %v5680_v42, %v9843_v22 }
 0x881   : > { %v4295_v59 = vmul.f32 %v5680_v42, %v9845_v23  ;;  %v4296_v16 = vmul.f32 %v5680_v42, %v9847_v11  ;;  %v4297_v48 = vmul.f32 %v5680_v42, %v9849_v0  ;;  %v4298_v18 = vmul.f32 %v5680_v42, %v9851_v31 }
 0x882   : > { %v4299_v15 = vmul.f32 %v5680_v42, %v9853_v27  ;;  %v4300_v34 = vmul.f32 %v5680_v42, %v9855_v39  ;;  %v4301_v29 = vmul.f32 %v5680_v42, %v9857_v62  ;;  %v4302_v50 = vmul.f32 %v5680_v42, %v9859_v46 }
 0x883   : > { %v4304_v12 = vmul.f32 %v5680_v42, %v9863_v2  ;;  %v4836_v6 = vadd.f32 %v4804_v3, %v4273_v40  ;;  %v4837_v22 = vadd.f32 %v4805_v60, %v4274_v9  ;;  %v4838_v30 = vadd.f32 %v4806_v56, %v4275_v38  ;;  %v10509_v42 = vld [vmem:[#allocation49_spill] sm:$0xff]  ;;  %v10510_v40 = vld [vmem:[#allocation72_spill] sm:$0xff]  ;;  %v10512_v56 = vld [vmem:[#allocation55_spill] sm:$0xff] }
 0x884   : > { %v4839_v23 = vadd.f32 %v4807_v55, %v4276_v43  ;;  %v4840_v4 = vadd.f32 %v4808_v41, %v4277_v36  ;;  %v4841_v11 = vadd.f32 %v4809_v58, %v4278_v47  ;;  %v4842_v37 = vadd.f32 %v4810_v25, %v4279_v8  ;;  %v10511_v60 = vld [vmem:[#allocation73_spill] sm:$0xff]  ;;  %v10513_v41 = vld [vmem:[#allocation8_spill] sm:$0xff]  ;;  %v10519_v43 = vld [vmem:[#allocation14_spill] sm:$0xff] }
 0x885   : > { %v4843_v0 = vadd.f32 %v4811_v19, %v4280_v32  ;;  %v4844_v13 = vadd.f32 %v4812_v20, %v4281_v14  ;;  %v4845_v31 = vadd.f32 %v4813_v17, %v4282_v5  ;;  %v4846_v24 = vadd.f32 %v4814_v45, %v4283_v26  ;;  %v10514_v25 = vld [vmem:[#allocation9_spill] sm:$0xff]  ;;  %v10515_v20 = vld [vmem:[#allocation10_spill] sm:$0xff]  ;;  %v10516_v45 = vld [vmem:[#allocation11_spill] sm:$0xff] }
 0x886   : > { %v4847_v27 = vadd.f32 %v4815_v35, %v4284_v63  ;;  %v4848_v39 = vadd.f32 %v4816_v33, %v4285_v10  ;;  %v4849_v62 = vadd.f32 %v4817_v49, %v4286_v28  ;;  %v4850_v46 = vadd.f32 %v4818_v51, %v4287_v57  ;;  %v10517_v33 = vld [vmem:[#allocation12_spill] sm:$0xff]  ;;  %v10518_v51 = vld [vmem:[#allocation13_spill] sm:$0xff]  ;;  %v10520_v47 = vld [vmem:[#allocation15_spill] sm:$0xff] }
 0x887   : > { %v4851_v2 = vadd.f32 %v4819_v1, %v4288_v21  ;;  %v4852_v3 = vadd.f32 %v10509_v42, %v4289_v53  ;;  %v4853_v9 = vadd.f32 %v10510_v40, %v4290_v7  ;;  %v4854_v38 = vadd.f32 %v10511_v60, %v4291_v44  ;;  %v10521_v32 = vld [vmem:[#allocation18_spill] sm:$0xff]  ;;  %v10522_v5 = vld [vmem:[#allocation19_spill] sm:$0xff]  ;;  %v10523_v63 = vld [vmem:[#allocation20_spill] sm:$0xff] }
 0x888   : > { %v4855_v55 = vadd.f32 %v10512_v56, %v4292_v52  ;;  %v4856_v58 = vadd.f32 %v10513_v41, %v4293_v54  ;;  %v4857_v19 = vadd.f32 %v10514_v25, %v4294_v61  ;;  %v4858_v17 = vadd.f32 %v10515_v20, %v4295_v59 }
 0x889   : > { %v4859_v35 = vadd.f32 %v10516_v45, %v4296_v16  ;;  %v4860_v49 = vadd.f32 %v10517_v33, %v4297_v48  ;;  %v4861_v1 = vadd.f32 %v10518_v51, %v4298_v18  ;;  %v4862_v36 = vadd.f32 %v10519_v43, %v4299_v15 }
 0x88a   : > { %v4863_v8 = vadd.f32 %v10520_v47, %v4300_v34  ;;  %v4864_v14 = vadd.f32 %v10521_v32, %v4301_v29  ;;  %v4865_v26 = vadd.f32 %v10522_v5, %v4302_v50  ;;  %v4867_v10 = vadd.f32 %v10523_v63, %v4304_v12  ;;  %v10524_v34 = vld [vmem:[#allocation21_spill] sm:$0xff]  ;;  %v4871_v12 = vld [vmem:[%s10147_s4 + $0x18] sm:$0xff] }
 0x88b   : > { %v5583_v28 = vpack.c.bf16 %v4853_v9, %v4852_v3  ;;  %v5585_v57 = vpack.c.bf16 %v4837_v22, %v4836_v6  ;;  %v5587_v21 = vpack.c.bf16 %v4855_v55, %v4854_v38  ;;  %v5589_v53 = vpack.c.bf16 %v4839_v23, %v4838_v30  ;;  %v4870_v6 = vld [vmem:[%s10147_s4 + $0x10] sm:$0xff]  ;;  %v4873_v22 = vld [vmem:[%s10147_s4 + $0x28] sm:$0xff]  ;;  %v4872_v30 = vld [vmem:[%s10147_s4 + $0x20] sm:$0xff] }
 0x88c   : > { %v5591_v7 = vpack.c.bf16 %v4857_v19, %v4856_v58  ;;  %v5593_v44 = vpack.c.bf16 %v4841_v11, %v4840_v4  ;;  %v5595_v52 = vpack.c.bf16 %v4859_v35, %v4858_v17  ;;  %v5597_v54 = vpack.c.bf16 %v4843_v0, %v4842_v37  ;;  %v4875_v23 = vld [vmem:[%s10147_s4 + $0x38] sm:$0xff]  ;;  %v4874_v4 = vld [vmem:[%s10147_s4 + $0x30] sm:$0xff]  ;;  %v4877_v11 = vld [vmem:[%s10147_s4 + $0x48] sm:$0xff] }
 0x88d   : > { %5584 = vmatprep.subr.bf16.mxu1 %v5583_v28  ;;  %v5599_v61 = vpack.c.bf16 %v4861_v1, %v4860_v49  ;;  %v5601_v59 = vpack.c.bf16 %v4845_v31, %v4844_v13  ;;  %v5603_v16 = vpack.c.bf16 %v4863_v8, %v4862_v36  ;;  %v5605_v48 = vpack.c.bf16 %v4847_v27, %v4846_v24  ;;  %v4868_v24 = vld [vmem:[%s10147_s4] sm:$0xff]  ;;  %v4879_v0 = vld [vmem:[%s10147_s4 + $0x58] sm:$0xff]  ;;  %v4878_v13 = vld [vmem:[%s10147_s4 + $0x50] sm:$0xff] }
 0x88e   : > { %5586 = vmatpush3.bf16.msra.mxu1 %v5585_v57  ;;  %v5607_v18 = vpack.c.bf16 %v4865_v26, %v4864_v14  ;;  %v5609_v15 = vpack.c.bf16 %v4849_v62, %v4848_v39  ;;  %v5611_v29 = vpack.c.bf16 %v4867_v10, %v10524_v34  ;;  %v5613_v50 = vpack.c.bf16 %v4851_v2, %v4850_v46  ;;  %v4876_v37 = vld [vmem:[%s10147_s4 + $0x40] sm:$0xff]  ;;  %v4881_v31 = vld [vmem:[%s10147_s4 + $0x68] sm:$0xff]  ;;  %v4883_v39 = vld [vmem:[%s10147_s4 + $0x78] sm:$0xff] }
 0x88f   : > { %5588 = vmatprep.subr.bf16.mxu1 %v5587_v21  ;;  %v4880_v27 = vld [vmem:[%s10147_s4 + $0x60] sm:$0xff]  ;;  %v4882_v62 = vld [vmem:[%s10147_s4 + $0x70] sm:$0xff] }
 0x892   : > { %5590 = vmatpush3.bf16.msra.mxu1 %v5589_v53 }
 0x893   : > { %5592 = vmatprep.subr.bf16.mxu1 %v5591_v7 }
 0x896   : > { %5594 = vmatpush3.bf16.msra.mxu1 %v5593_v44 }
 0x897   : > { %5596 = vmatprep.subr.bf16.mxu1 %v5595_v52 }
 0x89a   : > { %5598 = vmatpush3.bf16.msra.mxu1 %v5597_v54 }
 0x89b   : > { %5600 = vmatprep.subr.bf16.mxu1 %v5599_v61 }
 0x89e   : > { %5602 = vmatpush3.bf16.msra.mxu1 %v5601_v59 }
 0x89f   : > { %5604 = vmatprep.subr.bf16.mxu1 %v5603_v16 }
 0x8a2   : > { %5606 = vmatpush3.bf16.msra.mxu1 %v5605_v48 }
 0x8a3   : > { %5608 = vmatprep.subr.bf16.mxu1 %v5607_v18 }
 0x8a6   : > { %5610 = vmatpush3.bf16.msra.mxu1 %v5609_v15 }
 0x8a7   : > { %5612 = vmatprep.subr.bf16.mxu1 %v5611_v29 }
 0x8aa   : > { %5614 = vmatpush3.bf16.msra.mxu1 %v5613_v50 }
 0x8ad   : > { %4949 = vmatmul.mubr.f32.vlgmr.msra.gmra.mrb[32].mxu1 %v4868_v24 }
 0x8ae   : > { %4953 = vmatprep.mubr.f32.mxu1 %v4871_v12 }
 0x8b1   : > { %4954 = vmatmul.mubr.f32.gmra.mrb[34].mxu1 %v4870_v6 }
 0x8b2   : > { %4958 = vmatprep.mubr.f32.mxu1 %v4873_v22 }
 0x8b5   : > { %4959 = vmatmul.mubr.f32.gmra.mrb[36].mxu1 %v4872_v30 }
 0x8b6   : > { %4963 = vmatprep.mubr.f32.mxu1 %v4875_v23 }
 0x8b9   : > { %4964 = vmatmul.mubr.f32.gmra.mrb[38].mxu1 %v4874_v4 }
 0x8ba   : > { %4968 = vmatprep.mubr.f32.mxu1 %v4877_v11 }
 0x8bd   : > { %4969 = vmatmul.mubr.f32.gmra.mrb[40].mxu1 %v4876_v37 }
 0x8be   : > { %4973 = vmatprep.mubr.f32.mxu1 %v4879_v0 }
 0x8c1   : > { %4974 = vmatmul.mubr.f32.gmra.mrb[42].mxu1 %v4878_v13 }
 0x8c2   : > { %4978 = vmatprep.mubr.f32.mxu1 %v4881_v31 }
 0x8c5   : > { %4979 = vmatmul.mubr.f32.gmra.mrb[44].mxu1 %v4880_v27 }
 0x8c6   : > { %4983 = vmatprep.mubr.f32.mxu1 %v4883_v39 }
 0x8c9   : > { %4984 = vmatmul.mubr.f32.gmra.mrb[46].mxu1 %v4882_v62 }
 0x980   : > { %v5361_v46 = vpop.f32.mrb[32].mxu1 }
 0x981   : > { %v5362_v2 = vpop.f32.mrb[33].mxu1 }
 0x982   : > { %v5363_v42 = vadd.f32 %v5362_v2, %v5361_v46 }
 0x984   : > { %v5364_v3 = vpop.f32.mrb[34].mxu1  ;;  %4989 = vxpose.xlu1.b32.start [1/8] (short) (narrow) %v5363_v42, 8 }
 0x985   : > { %v5365_v40 = vpop.f32.mrb[35].mxu1 }
 0x986   : > { %v5366_v9 = vadd.f32 %v5365_v40, %v5364_v3 }
 0x988   : > { %v5367_v60 = vpop.f32.mrb[36].mxu1  ;;  %4990 = vxpose.xlu1.b32.cont [2/8] (short) (narrow) %v5366_v9, 8 }
 0x989   : > { %v5368_v38 = vpop.f32.mrb[37].mxu1 }
 0x98a   : > { %v5369_v56 = vadd.f32 %v5368_v38, %v5367_v60 }
 0x98c   : > { %v5370_v55 = vpop.f32.mrb[38].mxu1  ;;  %4991 = vxpose.xlu1.b32.cont [3/8] (short) (narrow) %v5369_v56, 8 }
 0x98d   : > { %v5371_v41 = vpop.f32.mrb[39].mxu1 }
 0x98e   : > { %v5372_v58 = vadd.f32 %v5371_v41, %v5370_v55 }
 0x990   : > { %v5373_v25 = vpop.f32.mrb[40].mxu1  ;;  %4992 = vxpose.xlu1.b32.cont [4/8] (short) (narrow) %v5372_v58, 8 }
 0x991   : > { %v5374_v19 = vpop.f32.mrb[41].mxu1 }
 0x992   : > { %v5375_v20 = vadd.f32 %v5374_v19, %v5373_v25 }
 0x994   : > { %v5376_v17 = vpop.f32.mrb[42].mxu1  ;;  %4993 = vxpose.xlu1.b32.cont [5/8] (short) (narrow) %v5375_v20, 8 }
 0x995   : > { %v5377_v45 = vpop.f32.mrb[43].mxu1 }
 0x996   : > { %v5378_v35 = vadd.f32 %v5377_v45, %v5376_v17 }
 0x998   : > { %v5379_v33 = vpop.f32.mrb[44].mxu1  ;;  %4994 = vxpose.xlu1.b32.cont [6/8] (short) (narrow) %v5378_v35, 8 }
 0x999   : > { %v5380_v49 = vpop.f32.mrb[45].mxu1 }
 0x99a   : > { %v5381_v51 = vadd.f32 %v5380_v49, %v5379_v33 }
 0x99c   : > { %v5382_v1 = vpop.f32.mrb[46].mxu1  ;;  %4995 = vxpose.xlu1.b32.cont [7/8] (short) (narrow) %v5381_v51, 8 }
 0x99d   : > { %v5383_v43 = vpop.f32.mrb[47].mxu1 }
 0x99e   : > { %v5384_v36 = vadd.f32 %v5383_v43, %v5382_v1 }
 0x9a0   : > { %4996 = vxpose.xlu1.b32.end [8/8] (short) (narrow) %v5384_v36, 8 }
 0xa04   : > { %v5005_v47 = vpop.trf.xlu1 }
 0xa05   : > { %5021 = vst.msk [vmem:[%s240_s26] sm:$0xff] %vm3703_vm3, %v5005_v47 }
 0xa06   : > { %5724 = shalt.err (!%p5721_p4)
}
 0xa07   : > { %s5725_s13 = scalar_lea.hbm %s10098_s16, 128  ;;  %s5729_s25 = scalar_lea.hbm %s10148_s5, 256 }
 0xa08   : > { %p5726_p5 = scmp.ne.s32.totalorder %s10098_s16, %s5725_s13  ;;  %p5730_p0 = scmp.lt.u32.totalorder %s10098_s16, %s10148_s5 }
 0xa09   : > { %p5731_p1 = scmp.lt.u32.totalorder %s5729_s25, %s5725_s13  ;;  %p5733_p6 = scmp.lt.u32.totalorder %s5725_s13, %s10098_s16 }
 0xa0a   : > { %p5727_p8 = pnand %p5726_p5, %p10525_p11 }
 0xa0b   : > { %p5732_p3 = por %p5731_p1, %p5730_p0 }
 0xa0c   : > { %p5728_p9 = pneg %p5727_p8 }
 0xa0d   : > { %p5734_p12 = por %p5733_p6, %p5732_p3 }
 0xa0f   : > { %p5735_p13 = pnand %p5734_p12, %p5728_p9 }
 0xa11   : > { %5738 = shalt.err (!%p5735_p13)
}
 0xa12   : > { %5617 = dma.vmem_to_hbm [thread:$0]  (%p10525_p11), %s10100_s23, 128, %s10098_s16, %s5023_s15  }
 0xa13 PF: > { %s5048_s12 = sand.u32 1, %s5765_s18   ;;  %p10526_p7 = scmp.ne.s32.totalorder %s10262_s6, 0 }
 0xa14   : > { %p10527_p10 = scmp.ge.s32.totalorder %s5777_s21, 2  ;;  %s5049_s26 = scalar_lea.sflag [#allocation4], %s5048_s12 }
 0xa16   : > { %p5624_p2 = pnand %p10527_p10, %p10526_p7 }
 0xa18   : > { %5760 = dma.done.wait (!%p5624_p2), %s5049_s26, 128  }
 0xa19   : > { %5762 = vsyncadd (!%p5624_p2), %s5049_s26, 4294967168  ;;  %p18_p4 = scmp.ge.s32.totalorder %s5848_s24, 4   ;;  %s10528_s18 = smov %s5769_s19 }
 0xa1a   : > { %s10529_s19 = smov %s5773_s20  ;;  %s10530_s20 = smov %s5860_s27 }
 0xa1b   : > { %s10531_s21 = smov %s5848_s24  ;;  %20 = sbr.rel (!%p18_p4) target bundleno = 5 (0x5), region = 85 }
 0xa22   :  { %5054 = vsyncpa [#allocation3], 1 }
 0xa23   :  { %5056 = vsyncpa [#allocation3 + $0x1], 1 }
 0xa24   :  { %5057 = vsyncpa [#allocation4], 1 }
 0xa25   :  { %5059 = vsyncpa [#allocation4 + $0x1], 1 }

</bundles_post_ra>
